<compile_context>
chip_gen: v7x
topology: tpu7x:2x2x1
jax: 0.10.0
libtpu: 0.0.40
codegen_flags: <defaults>
</compile_context>

<pallas_src>
import jax
import jax.numpy as jnp
from jax import lax
from jax.experimental import pallas as pl
from jax.experimental.pallas import tpu as pltpu

NEG_SLOPE = 0.2          # LeakyReLU slope
BN_EPS = 1e-5            # PyTorch BatchNorm1d default eps
KW = 4                   # conv kernel width
PADW = 1                 # conv padding
OUT_LANES = 128          # lane-dense padding of the single output channel

C0, C1, C2, C3, C4, C5 = 2, 64, 128, 256, 512, 1   # channel plan of the module


def _lrelu(v):
    return jnp.where(v >= 0, v, NEG_SLOPE * v)


# ------------------------------ fused kernel --------------------------------

def _make_kernel(N, M):
    """M = L0 // 8: per-batch row count of the folded layer-1/2/3 stages."""
    M4, M5 = M - 1, M - 2        # layer-4 / layer-5 output lengths per batch
    BF = jnp.bfloat16

    def bn_lrelu(y, g, b, fold):
        # Train-mode BatchNorm1d (batch stats, biased variance, like PyTorch
        # .train()) + LeakyReLU, all in f32.  `y` carries `fold` consecutive
        # time steps per row as column blocks of C channels.
        c = y.shape[1] // fold
        cnt = float(y.shape[0] * fold)

        def fold_cols(v):        # (1, fold*C) -> (1, C): sum the fold blocks
            if fold == 1:
                return v
            acc = v[:, 0:c]
            for t in range(1, fold):
                acc = acc + v[:, t * c:(t + 1) * c]
            return acc

        def unfold_cols(v):      # (1, C) -> (1, fold*C): tile back
            return v if fold == 1 else jnp.concatenate([v] * fold, axis=1)

        mean = fold_cols(y.sum(axis=0, keepdims=True)) / cnt
        d = y - unfold_cols(mean)
        var = fold_cols((d * d).sum(axis=0, keepdims=True)) / cnt
        scale = lax.rsqrt(var + BN_EPS) * g
        shift = b - mean * scale
        return _lrelu(y * unfold_cols(scale) + unfold_cols(shift))

    def kernel(xin_ref, w1_ref, b1_ref,
               w2_ref, g2_ref, be2_ref,
               w3_ref, g3_ref, be3_ref,
               w4_ref, g4_ref, be4_ref,
               w5_ref, b5_ref,
               out_ref,
               s1, s2, s3, s4, s5):
        # ===== layer 1: conv(C0->C1, s=2, bias) + LeakyReLU ==================
        # LHS row m of batch n = padded input rows 8m..8m+15 (input folded by
        # 8 in the wrapper); two contiguous copies per batch.  One dot yields
        # the layer-1 output folded by 4 (row m = h1[4m..4m+3]).
        for n in range(N):
            p = n * (M + 1)
            r = n * M
            s1[r:r + M, 0:8 * C0] = xin_ref[p:p + M, :]
            s1[r:r + M, 8 * C0:16 * C0] = xin_ref[p + 1:p + M + 1, :]

        a1 = _lrelu(jnp.dot(s1[...], w1_ref[...],
                            preferred_element_type=jnp.float32) + b1_ref[...])
        a1 = a1.astype(BF)                                    # (N*M, 4*C1)

        # ===== layer 2: conv(C1->C2, s=2) + BN + LeakyReLU ===================
        # LHS row m = [h1[4m..4m+3] | h1[4m-1] | h1[4m+4]] (bulk block first so
        # the big copy stays lane-aligned); conv pad rows are concatenated in.
        # One dot yields the layer-2 output folded by 2 (row m = y2[2m], y2[2m+1]).
        s2[:, 0:4 * C1] = a1
        zc1 = jnp.zeros((1, C1), BF)
        for n in range(N):
            r = n * M
            s2[r:r + M, 4 * C1:5 * C1] = jnp.concatenate(
                [zc1, a1[r:r + M - 1, 3 * C1:4 * C1]], axis=0)
            s2[r:r + M, 5 * C1:6 * C1] = jnp.concatenate(
                [a1[r + 1:r + M, 0:C1], zc1], axis=0)

        y2 = jnp.dot(s2[...], w2_ref[...], preferred_element_type=jnp.float32)
        a2 = bn_lrelu(y2, g2_ref[...], be2_ref[...], fold=2).astype(BF)   # (N*M, 2*C2)

        # ===== layer 3: conv(C2->C3, s=2) + BN + LeakyReLU ===================
        # LHS row j = [y2[2j-1] | y2[2j] | y2[2j+1] | y2[2j+2]] - all contiguous
        # slices of the fold-2 layer-2 output.  Output returns to natural layout.
        s3[:, C2:2 * C2] = a2[:, 0:C2]
        s3[:, 2 * C2:3 * C2] = a2[:, C2:2 * C2]
        zc2 = jnp.zeros((1, C2), BF)
        for n in range(N):
            r = n * M
            s3[r:r + M, 0:C2] = jnp.concatenate(
                [zc2, a2[r:r + M - 1, C2:2 * C2]], axis=0)
            s3[r:r + M, 3 * C2:4 * C2] = jnp.concatenate(
                [a2[r + 1:r + M, 0:C2], zc2], axis=0)

        y3 = jnp.dot(s3[...], w3_ref[...], preferred_element_type=jnp.float32)
        a3 = bn_lrelu(y3, g3_ref[...], be3_ref[...], fold=1).astype(BF)   # (N*M, C3)

        # ===== layer 4: conv(C3->C4, s=1) + BN + LeakyReLU ===================
        zc3 = jnp.zeros((1, C3), BF)
        for n in range(N):
            r3, r4 = n * M, n * M4
            s4[r4:r4 + M4, 0:C3] = jnp.concatenate(
                [zc3, a3[r3:r3 + M4 - 1, :]], axis=0)
            s4[r4:r4 + M4, C3:2 * C3] = a3[r3:r3 + M4, :]
            s4[r4:r4 + M4, 2 * C3:3 * C3] = a3[r3 + 1:r3 + M, :]
            s4[r4:r4 + M4, 3 * C3:4 * C3] = jnp.concatenate(
                [a3[r3 + 2:r3 + M, :], zc3], axis=0)

        y4 = jnp.dot(s4[...], w4_ref[...], preferred_element_type=jnp.float32)
        a4 = bn_lrelu(y4, g4_ref[...], be4_ref[...], fold=1).astype(BF)   # (N*M4, C4)

        # ===== layer 5: conv(C4->1, s=1, bias); lane-padded to OUT_LANES =====
        zc4 = jnp.zeros((1, C4), BF)
        for n in range(N):
            r4, r5 = n * M4, n * M5
            s5[r5:r5 + M5, 0:C4] = jnp.concatenate(
                [zc4, a4[r4:r4 + M5 - 1, :]], axis=0)
            s5[r5:r5 + M5, C4:2 * C4] = a4[r4:r4 + M5, :]
            s5[r5:r5 + M5, 2 * C4:3 * C4] = a4[r4 + 1:r4 + M5 + 1, :]
            s5[r5:r5 + M5, 3 * C4:4 * C4] = jnp.concatenate(
                [a4[r4 + 2:r4 + M4, :], zc4], axis=0)

        out_ref[...] = (jnp.dot(s5[...], w5_ref[...],
                                preferred_element_type=jnp.float32)
                        + b5_ref[...])

    return kernel


# ------------------------- one-time parameter packing ------------------------

def prepare_params(p):
    """One-time packing of PyTorch-layout params into kernel-ready operands
    (kept out of the per-call jitted path, per the performance review)."""
    f32, bf = jnp.float32, jnp.bfloat16
    w1 = p["w1"].astype(f32)      # (C1, C0, KW)
    w2 = p["w2"].astype(f32)      # (C2, C1, KW)
    w3 = p["w3"].astype(f32)      # (C3, C2, KW)
    w4 = p["w4"].astype(f32)      # (C4, C3, KW)
    w5 = p["w5"].astype(f32)      # (C5, C4, KW)

    # layer 1 (fold-4 output): LHS position C0*r + c <-> padded-input row 8m+r
    # (r = 0..15), channel c.  Output column block t*C1 holds h1[4m+t], which
    # reads padded rows 8m + 2t + k  ->  rows C0*2t .. C0*2t + KW*C0 of W.
    w1t = jnp.transpose(w1, (2, 1, 0)).reshape(KW * C0, C1)      # row = C0*k + c
    w1p = jnp.zeros((16 * C0, 4 * C1), f32)
    for t in range(4):
        w1p = w1p.at[2 * C0 * t:2 * C0 * t + KW * C0, t * C1:(t + 1) * C1].set(w1t)
    b1p = jnp.tile(p["b1"].reshape(1, C1).astype(f32), (1, 4))

    # layer 2 (fold-2 output): LHS col layout [h1[4m+0..3] | h1[4m-1] | h1[4m+4]].
    # Output column block t*C2 holds y2[2m+t], which reads h1[4m + 2t + k - 1].
    w2t = jnp.transpose(w2, (2, 1, 0))                           # (KW, C1, C2)
    w2p = jnp.zeros((6 * C1, 2 * C2), f32)
    for t in range(2):
        cols = slice(t * C2, (t + 1) * C2)
        for k in range(KW):
            d = 2 * t + k - 1                                    # h1 offset delta
            if d == -1:
                rows = slice(4 * C1, 5 * C1)
            elif d == 4:
                rows = slice(5 * C1, 6 * C1)
            else:
                rows = slice(d * C1, (d + 1) * C1)
            w2p = w2p.at[rows, cols].set(w2t[k])

    # layers 3-5: natural tap-major packing (KW*C_in, C_out)
    w3p = jnp.transpose(w3, (2, 1, 0)).reshape(KW * C2, C3)
    w4p = jnp.transpose(w4, (2, 1, 0)).reshape(KW * C3, C4)
    w5p = jnp.zeros((KW * C4, OUT_LANES), f32).at[:, :C5].set(
        jnp.transpose(w5, (2, 1, 0)).reshape(KW * C4, C5))
    b5p = jnp.zeros((1, OUT_LANES), f32).at[:, :C5].set(
        p["b5"].reshape(1, C5).astype(f32))

    return dict(
        w1=w1p.astype(bf), b1=b1p,
        w2=w2p.astype(bf),
        g2=p["g2"].reshape(1, C2).astype(f32), be2=p["be2"].reshape(1, C2).astype(f32),
        w3=w3p.astype(bf),
        g3=p["g3"].reshape(1, C3).astype(f32), be3=p["be3"].reshape(1, C3).astype(f32),
        w4=w4p.astype(bf),
        g4=p["g4"].reshape(1, C4).astype(f32), be4=p["be4"].reshape(1, C4).astype(f32),
        w5=w5p.astype(bf), b5=b5p,
    )


# --------------------------------- forward ----------------------------------

def _vmem():
    return pl.BlockSpec(memory_space=pltpu.MemorySpace.VMEM)


def patchgan_forward(x, pp):
    """x: (N, 2, L0) NCL input; pp: packed params from prepare_params()."""
    N, c_in, L0 = x.shape
    assert c_in == C0 and L0 % 8 == 0 and L0 >= 24
    M = L0 // 8                  # folded row count of layers 1-3 (per batch)
    M5 = M - 2                   # layer-5 output length (per batch)

    # Per-call layout plumbing only (no gather, no weight packing): NCL ->
    # channels-last, one conv zero-pad row in front, pad rows to L0+8, fold 8
    # padded rows into each slab row.  The layer-1 im2col happens in-kernel.
    x_cl = jnp.transpose(x.astype(jnp.float32), (0, 2, 1))            # (N, L0, C0)
    x_pad = jnp.pad(x_cl, ((0, 0), (PADW, 8 - PADW), (0, 0)))          # (N, L0+8, C0)
    xin = x_pad.reshape(N * (M + 1), 8 * C0).astype(jnp.bfloat16)      # (N*(M+1), 16)

    out2d = pl.pallas_call(
        _make_kernel(N, M),
        out_shape=jax.ShapeDtypeStruct((N * M5, OUT_LANES), jnp.float32),
        in_specs=[_vmem()] * 14,
        out_specs=_vmem(),
        scratch_shapes=[
            pltpu.VMEM((N * M, 16 * C0), jnp.bfloat16),        # layer-1 LHS slab
            pltpu.VMEM((N * M, 6 * C1), jnp.bfloat16),         # layer-2 LHS slab
            pltpu.VMEM((N * M, KW * C2), jnp.bfloat16),        # layer-3 LHS slab
            pltpu.VMEM((N * (M - 1), KW * C3), jnp.bfloat16),  # layer-4 LHS slab
            pltpu.VMEM((N * M5, KW * C4), jnp.bfloat16),       # layer-5 LHS slab
        ],
    )(xin, pp["w1"], pp["b1"], pp["w2"], pp["g2"], pp["be2"],
      pp["w3"], pp["g3"], pp["be3"], pp["w4"], pp["g4"], pp["be4"],
      pp["w5"], pp["b5"])

    # lane-dense slab -> (N, 1, L5) NCL output
    out = out2d.reshape(N, M5, OUT_LANES)[:, :, :C5]
    return jnp.transpose(out, (0, 2, 1))


# --------------------------- parameter construction -------------------------

def init_params(key, input_nc=2, ndf=64, kw=KW):
    """Deterministic synthetic parameters with PyTorch Conv1d-like shapes."""
    params = {}
    chans = [input_nc, ndf, ndf * 2, ndf * 4, ndf * 8, 1]   # strides [2,2,2,1,1]
    keys = jax.random.split(key, 16)
    ki = 0

    def conv_init(k, c_out, c_in):
        bound = 1.0 / jnp.sqrt(c_in * kw)
        return jax.random.uniform(k, (c_out, c_in, kw), jnp.float32, -bound, bound)

    params["w1"] = conv_init(keys[ki], chans[1], chans[0]); ki += 1
    params["b1"] = jax.random.uniform(keys[ki], (chans[1],), jnp.float32, -0.1, 0.1); ki += 1
    for li in range(2, 5):       # conv(bias=False) + BatchNorm1d + LeakyReLU
        params[f"w{li}"] = conv_init(keys[ki], chans[li], chans[li - 1]); ki += 1
        params[f"g{li}"] = 1.0 + 0.05 * jax.random.normal(keys[ki], (chans[li],), jnp.float32); ki += 1
        params[f"be{li}"] = 0.05 * jax.random.normal(keys[ki], (chans[li],), jnp.float32); ki += 1
    params["w5"] = conv_init(keys[ki], chans[5], chans[4]); ki += 1
    params["b5"] = jax.random.uniform(keys[ki], (chans[5],), jnp.float32, -0.1, 0.1); ki += 1
    return params


# ----------------------------- pure-JAX reference ----------------------------

def _reference_forward(x, p):
    """f32 reference of the PyTorch module forward (train-mode BatchNorm)."""
    def conv(h, w, b, stride):
        y = lax.conv_general_dilated(
            h, w, window_strides=(stride,), padding=[(PADW, PADW)],
            dimension_numbers=("NCH", "OIH", "NCH"))
        return y if b is None else y + b.reshape(1, -1, 1)

    def bn(h, g, b):
        mean = h.mean(axis=(0, 2), keepdims=True)
        var = ((h - mean) ** 2).mean(axis=(0, 2), keepdims=True)
        return (h - mean) * lax.rsqrt(var + BN_EPS) * g.reshape(1, -1, 1) + b.reshape(1, -1, 1)

    h = _lrelu(conv(x, p["w1"], p["b1"], 2))
    h = _lrelu(bn(conv(h, p["w2"], None, 2), p["g2"], p["be2"]))
    h = _lrelu(bn(conv(h, p["w3"], None, 2), p["g3"], p["be3"]))
    h = _lrelu(bn(conv(h, p["w4"], None, 1), p["g4"], p["be4"]))
    return conv(h, p["w5"], p["b5"], 1)


# TODO(synk): BatchNorm running_mean/running_var buffer updates (stateful) are
# not modeled; training-mode batch statistics are used for normalization,
# matching the PyTorch forward in train() mode.

if __name__ == "__main__":
    key = jax.random.PRNGKey(0)
    pkey, xkey = jax.random.split(key)
    params = init_params(pkey)
    packed = prepare_params(params)          # one-time packing, outside hot path

    # input: (N=2, C=input_nc=2, L=64) in PyTorch NCL layout
    x = jax.random.normal(xkey, (2, 2, 64), jnp.float32)

    fwd = jax.jit(patchgan_forward)
    out = jax.block_until_ready(fwd(x, packed))

    # expected output: 64 -> 32 -> 16 -> 8 -> 7 -> 6 positions, 1 channel
    assert out.shape == (2, 1, 6), out.shape
    assert bool(jnp.all(jnp.isfinite(out)))

    # loose check vs an f32 reference (kernel uses bf16 MXU operands)
    ref = _reference_forward(x, params)
    err = float(jnp.max(jnp.abs(out - ref)))
    tol = 0.05 * float(jnp.max(jnp.abs(ref))) + 0.03
    assert err < tol, (err, tol)

    print("KERNEL_OK")
</pallas_src>

<mosaic_0001>
module attributes {stable_mosaic.version = 11 : i64} {
  func.func @kernel(%arg0: memref<18x16xbf16, #tpu.memory_space<vmem>>, %arg1: memref<32x256xbf16, #tpu.memory_space<vmem>>, %arg2: memref<1x256xf32, #tpu.memory_space<vmem>>, %arg3: memref<384x256xbf16, #tpu.memory_space<vmem>>, %arg4: memref<1x128xf32, #tpu.memory_space<vmem>>, %arg5: memref<1x128xf32, #tpu.memory_space<vmem>>, %arg6: memref<512x256xbf16, #tpu.memory_space<vmem>>, %arg7: memref<1x256xf32, #tpu.memory_space<vmem>>, %arg8: memref<1x256xf32, #tpu.memory_space<vmem>>, %arg9: memref<1024x512xbf16, #tpu.memory_space<vmem>>, %arg10: memref<1x512xf32, #tpu.memory_space<vmem>>, %arg11: memref<1x512xf32, #tpu.memory_space<vmem>>, %arg12: memref<2048x128xbf16, #tpu.memory_space<vmem>>, %arg13: memref<1x128xf32, #tpu.memory_space<vmem>>, %arg14: memref<12x128xf32, #tpu.memory_space<vmem>>, %arg15: memref<16x32xbf16, #tpu.memory_space<vmem>>, %arg16: memref<16x384xbf16, #tpu.memory_space<vmem>>, %arg17: memref<16x512xbf16, #tpu.memory_space<vmem>>, %arg18: memref<14x1024xbf16, #tpu.memory_space<vmem>>, %arg19: memref<12x2048xbf16, #tpu.memory_space<vmem>>) attributes {dimension_semantics = [], scalar_prefetch = 0 : i64, scratch_operands = 5 : i64, tpu.core_type = #tpu.core_type<tc>} {
    %c0 = arith.constant 0 : index
    %c0_0 = arith.constant 0 : index
    %0 = vector.load %arg0[%c0, %c0_0] : memref<18x16xbf16, #tpu.memory_space<vmem>>, vector<8x16xbf16>
    %c0_1 = arith.constant 0 : index
    %c0_2 = arith.constant 0 : index
    %1 = vector.load %arg15[%c0_1, %c0_2] : memref<16x32xbf16, #tpu.memory_space<vmem>>, vector<8x16xbf16>
    tpu.vector_store %arg15[%c0_1, %c0_2], %0 {strides = array<i32>} : memref<16x32xbf16, #tpu.memory_space<vmem>>, vector<8x16xbf16>,
    %c1 = arith.constant 1 : index
    %c0_3 = arith.constant 0 : index
    %2 = vector.load %arg0[%c1, %c0_3] : memref<18x16xbf16, #tpu.memory_space<vmem>>, vector<8x16xbf16>
    %c0_4 = arith.constant 0 : index
    %c16 = arith.constant 16 : index
    %3 = vector.load %arg15[%c0_4, %c16] : memref<16x32xbf16, #tpu.memory_space<vmem>>, vector<8x16xbf16>
    tpu.vector_store %arg15[%c0_4, %c16], %2 {strides = array<i32>} : memref<16x32xbf16, #tpu.memory_space<vmem>>, vector<8x16xbf16>,
    %c9 = arith.constant 9 : index
    %c0_5 = arith.constant 0 : index
    %4 = vector.load %arg0[%c9, %c0_5] : memref<18x16xbf16, #tpu.memory_space<vmem>>, vector<8x16xbf16>
    %c8 = arith.constant 8 : index
    %c0_6 = arith.constant 0 : index
    %5 = vector.load %arg15[%c8, %c0_6] : memref<16x32xbf16, #tpu.memory_space<vmem>>, vector<8x16xbf16>
    tpu.vector_store %arg15[%c8, %c0_6], %4 {strides = array<i32>} : memref<16x32xbf16, #tpu.memory_space<vmem>>, vector<8x16xbf16>,
    %c10 = arith.constant 10 : index
    %c0_7 = arith.constant 0 : index
    %6 = vector.load %arg0[%c10, %c0_7] : memref<18x16xbf16, #tpu.memory_space<vmem>>, vector<8x16xbf16>
    %c8_8 = arith.constant 8 : index
    %c16_9 = arith.constant 16 : index
    %7 = vector.load %arg15[%c8_8, %c16_9] : memref<16x32xbf16, #tpu.memory_space<vmem>>, vector<8x16xbf16>
    tpu.vector_store %arg15[%c8_8, %c16_9], %6 {strides = array<i32>} : memref<16x32xbf16, #tpu.memory_space<vmem>>, vector<8x16xbf16>,
    %c0_10 = arith.constant 0 : index
    %c0_11 = arith.constant 0 : index
    %8 = vector.load %arg15[%c0_10, %c0_11] : memref<16x32xbf16, #tpu.memory_space<vmem>>, vector<16x32xbf16>
    %c0_12 = arith.constant 0 : index
    %c0_13 = arith.constant 0 : index
    %9 = vector.load %arg1[%c0_12, %c0_13] : memref<32x256xbf16, #tpu.memory_space<vmem>>, vector<32x256xbf16>
    %cst = arith.constant dense<0.000000e+00> : vector<16x256xf32>
    %10 = tpu.matmul %8, %9, %cst {dimension_numbers = #tpu.dot_dimension_numbers<[1], [0], [0], [1], [0, 0, 1, 1], [], []>} : vector<16x32xbf16>, vector<32x256xbf16>, vector<16x256xf32> -> vector<16x256xf32>
    %c0_14 = arith.constant 0 : index
    %c0_15 = arith.constant 0 : index
    %11 = vector.load %arg2[%c0_14, %c0_15] : memref<1x256xf32, #tpu.memory_space<vmem>>, vector<1x256xf32>
    %12 = vector.broadcast %11 : vector<1x256xf32> to vector<16x256xf32>
    %13 = arith.addf %10, %12 : vector<16x256xf32>
    %cst_16 = arith.constant 0.000000e+00 : f32
    %14 = vector.broadcast %cst_16 : f32 to vector<16x256xf32>
    %15 = arith.cmpf oge, %13, %14 : vector<16x256xf32>
    %cst_17 = arith.constant 2.000000e-01 : f32
    %16 = vector.broadcast %cst_17 : f32 to vector<16x256xf32>
    %17 = arith.mulf %16, %13 : vector<16x256xf32>
    %18 = arith.select %15, %13, %17 : vector<16x256xi1>, vector<16x256xf32>
    %19 = arith.truncf %18 : vector<16x256xf32> to vector<16x256xbf16>
    %c0_18 = arith.constant 0 : index
    %c0_19 = arith.constant 0 : index
    %20 = vector.load %arg16[%c0_18, %c0_19] : memref<16x384xbf16, #tpu.memory_space<vmem>>, vector<16x256xbf16>
    tpu.vector_store %arg16[%c0_18, %c0_19], %19 {strides = array<i32>} : memref<16x384xbf16, #tpu.memory_space<vmem>>, vector<16x256xbf16>,
    %cst_20 = arith.constant 0.000000e+00 : bf16
    %21 = vector.broadcast %cst_20 : bf16 to vector<1x64xbf16>
    %22 = vector.extract_strided_slice %19 {offsets = [0, 192], sizes = [7, 64], strides = [1, 1]} : vector<16x256xbf16> to vector<7x64xbf16>
    %23 = tpu.concatenate %21, %22 in 0 : vector<1x64xbf16>, vector<7x64xbf16> -> vector<8x64xbf16>
    %c0_21 = arith.constant 0 : index
    %c256 = arith.constant 256 : index
    %24 = vector.load %arg16[%c0_21, %c256] : memref<16x384xbf16, #tpu.memory_space<vmem>>, vector<8x64xbf16>
    tpu.vector_store %arg16[%c0_21, %c256], %23 {strides = array<i32>} : memref<16x384xbf16, #tpu.memory_space<vmem>>, vector<8x64xbf16>,
    %25 = vector.extract_strided_slice %19 {offsets = [1, 0], sizes = [7, 64], strides = [1, 1]} : vector<16x256xbf16> to vector<7x64xbf16>
    %26 = tpu.concatenate %25, %21 in 0 : vector<7x64xbf16>, vector<1x64xbf16> -> vector<8x64xbf16>
    %c0_22 = arith.constant 0 : index
    %c320 = arith.constant 320 : index
    %27 = vector.load %arg16[%c0_22, %c320] : memref<16x384xbf16, #tpu.memory_space<vmem>>, vector<8x64xbf16>
    tpu.vector_store %arg16[%c0_22, %c320], %26 {strides = array<i32>} : memref<16x384xbf16, #tpu.memory_space<vmem>>, vector<8x64xbf16>,
    %28 = vector.extract_strided_slice %19 {offsets = [8, 192], sizes = [7, 64], strides = [1, 1]} : vector<16x256xbf16> to vector<7x64xbf16>
    %29 = tpu.concatenate %21, %28 in 0 : vector<1x64xbf16>, vector<7x64xbf16> -> vector<8x64xbf16>
    %c8_23 = arith.constant 8 : index
    %c256_24 = arith.constant 256 : index
    %30 = vector.load %arg16[%c8_23, %c256_24] : memref<16x384xbf16, #tpu.memory_space<vmem>>, vector<8x64xbf16>
    tpu.vector_store %arg16[%c8_23, %c256_24], %29 {strides = array<i32>} : memref<16x384xbf16, #tpu.memory_space<vmem>>, vector<8x64xbf16>,
    %31 = vector.extract_strided_slice %19 {offsets = [9, 0], sizes = [7, 64], strides = [1, 1]} : vector<16x256xbf16> to vector<7x64xbf16>
    %32 = tpu.concatenate %31, %21 in 0 : vector<7x64xbf16>, vector<1x64xbf16> -> vector<8x64xbf16>
    %c8_25 = arith.constant 8 : index
    %c320_26 = arith.constant 320 : index
    %33 = vector.load %arg16[%c8_25, %c320_26] : memref<16x384xbf16, #tpu.memory_space<vmem>>, vector<8x64xbf16>
    tpu.vector_store %arg16[%c8_25, %c320_26], %32 {strides = array<i32>} : memref<16x384xbf16, #tpu.memory_space<vmem>>, vector<8x64xbf16>,
    %c0_27 = arith.constant 0 : index
    %c0_28 = arith.constant 0 : index
    %34 = vector.load %arg16[%c0_27, %c0_28] : memref<16x384xbf16, #tpu.memory_space<vmem>>, vector<16x384xbf16>
    %c0_29 = arith.constant 0 : index
    %c0_30 = arith.constant 0 : index
    %35 = vector.load %arg3[%c0_29, %c0_30] : memref<384x256xbf16, #tpu.memory_space<vmem>>, vector<384x256xbf16>
    %cst_31 = arith.constant dense<0.000000e+00> : vector<16x256xf32>
    %36 = tpu.matmul %34, %35, %cst_31 {dimension_numbers = #tpu.dot_dimension_numbers<[1], [0], [0], [1], [0, 0, 1, 1], [], []>} : vector<16x384xbf16>, vector<384x256xbf16>, vector<16x256xf32> -> vector<16x256xf32>
    %c0_32 = arith.constant 0 : index
    %c0_33 = arith.constant 0 : index
    %37 = vector.load %arg4[%c0_32, %c0_33] : memref<1x128xf32, #tpu.memory_space<vmem>>, vector<1x128xf32>
    %c0_34 = arith.constant 0 : index
    %c0_35 = arith.constant 0 : index
    %38 = vector.load %arg5[%c0_34, %c0_35] : memref<1x128xf32, #tpu.memory_space<vmem>>, vector<1x128xf32>
    %cst_36 = arith.constant dense<0.000000e+00> : vector<256xf32>
    %39 = vector.multi_reduction <add>, %36, %cst_36 [0] : vector<16x256xf32> to vector<256xf32>
    %40 = vector.shape_cast %39 : vector<256xf32> to vector<1x256xf32>
    %41 = vector.extract_strided_slice %40 {offsets = [0, 0], sizes = [1, 128], strides = [1, 1]} : vector<1x256xf32> to vector<1x128xf32>
    %42 = vector.extract_strided_slice %40 {offsets = [0, 128], sizes = [1, 128], strides = [1, 1]} : vector<1x256xf32> to vector<1x128xf32>
    %43 = arith.addf %41, %42 : vector<1x128xf32>
    %cst_37 = arith.constant 3.200000e+01 : f32
    %44 = vector.broadcast %cst_37 : f32 to vector<1x128xf32>
    %45 = arith.divf %43, %44 : vector<1x128xf32>
    %46 = tpu.concatenate %45, %45 in 1 : vector<1x128xf32>, vector<1x128xf32> -> vector<1x256xf32>
    %47 = vector.broadcast %46 : vector<1x256xf32> to vector<16x256xf32>
    %48 = arith.subf %36, %47 : vector<16x256xf32>
    %49 = arith.mulf %48, %48 : vector<16x256xf32>
    %cst_38 = arith.constant dense<0.000000e+00> : vector<256xf32>
    %50 = vector.multi_reduction <add>, %49, %cst_38 [0] : vector<16x256xf32> to vector<256xf32>
    %51 = vector.shape_cast %50 : vector<256xf32> to vector<1x256xf32>
    %52 = vector.extract_strided_slice %51 {offsets = [0, 0], sizes = [1, 128], strides = [1, 1]} : vector<1x256xf32> to vector<1x128xf32>
    %53 = vector.extract_strided_slice %51 {offsets = [0, 128], sizes = [1, 128], strides = [1, 1]} : vector<1x256xf32> to vector<1x128xf32>
    %54 = arith.addf %52, %53 : vector<1x128xf32>
    %cst_39 = arith.constant 3.200000e+01 : f32
    %55 = vector.broadcast %cst_39 : f32 to vector<1x128xf32>
    %56 = arith.divf %54, %55 : vector<1x128xf32>
    %cst_40 = arith.constant 9.99999974E-6 : f32
    %57 = vector.broadcast %cst_40 : f32 to vector<1x128xf32>
    %58 = arith.addf %56, %57 : vector<1x128xf32>
    %59 = math.rsqrt %58 : vector<1x128xf32>
    %60 = arith.mulf %59, %37 : vector<1x128xf32>
    %61 = arith.mulf %45, %60 : vector<1x128xf32>
    %62 = arith.subf %38, %61 : vector<1x128xf32>
    %63 = tpu.concatenate %60, %60 in 1 : vector<1x128xf32>, vector<1x128xf32> -> vector<1x256xf32>
    %64 = vector.broadcast %63 : vector<1x256xf32> to vector<16x256xf32>
    %65 = arith.mulf %36, %64 : vector<16x256xf32>
    %66 = tpu.concatenate %62, %62 in 1 : vector<1x128xf32>, vector<1x128xf32> -> vector<1x256xf32>
    %67 = vector.broadcast %66 : vector<1x256xf32> to vector<16x256xf32>
    %68 = arith.addf %65, %67 : vector<16x256xf32>
    %cst_41 = arith.constant 0.000000e+00 : f32
    %69 = vector.broadcast %cst_41 : f32 to vector<16x256xf32>
    %70 = arith.cmpf oge, %68, %69 : vector<16x256xf32>
    %cst_42 = arith.constant 2.000000e-01 : f32
    %71 = vector.broadcast %cst_42 : f32 to vector<16x256xf32>
    %72 = arith.mulf %71, %68 : vector<16x256xf32>
    %73 = arith.select %70, %68, %72 : vector<16x256xi1>, vector<16x256xf32>
    %74 = arith.truncf %73 : vector<16x256xf32> to vector<16x256xbf16>
    %75 = vector.extract_strided_slice %74 {offsets = [0, 0], sizes = [16, 128], strides = [1, 1]} : vector<16x256xbf16> to vector<16x128xbf16>
    %c0_43 = arith.constant 0 : index
    %c128 = arith.constant 128 : index
    %76 = vector.load %arg17[%c0_43, %c128] : memref<16x512xbf16, #tpu.memory_space<vmem>>, vector<16x128xbf16>
    tpu.vector_store %arg17[%c0_43, %c128], %75 {strides = array<i32>} : memref<16x512xbf16, #tpu.memory_space<vmem>>, vector<16x128xbf16>,
    %77 = vector.extract_strided_slice %74 {offsets = [0, 128], sizes = [16, 128], strides = [1, 1]} : vector<16x256xbf16> to vector<16x128xbf16>
    %c0_44 = arith.constant 0 : index
    %c256_45 = arith.constant 256 : index
    %78 = vector.load %arg17[%c0_44, %c256_45] : memref<16x512xbf16, #tpu.memory_space<vmem>>, vector<16x128xbf16>
    tpu.vector_store %arg17[%c0_44, %c256_45], %77 {strides = array<i32>} : memref<16x512xbf16, #tpu.memory_space<vmem>>, vector<16x128xbf16>,
    %cst_46 = arith.constant 0.000000e+00 : bf16
    %79 = vector.broadcast %cst_46 : bf16 to vector<1x128xbf16>
    %80 = vector.extract_strided_slice %74 {offsets = [0, 128], sizes = [7, 128], strides = [1, 1]} : vector<16x256xbf16> to vector<7x128xbf16>
    %81 = tpu.concatenate %79, %80 in 0 : vector<1x128xbf16>, vector<7x128xbf16> -> vector<8x128xbf16>
    %c0_47 = arith.constant 0 : index
    %c0_48 = arith.constant 0 : index
    %82 = vector.load %arg17[%c0_47, %c0_48] : memref<16x512xbf16, #tpu.memory_space<vmem>>, vector<8x128xbf16>
    tpu.vector_store %arg17[%c0_47, %c0_48], %81 {strides = array<i32>} : memref<16x512xbf16, #tpu.memory_space<vmem>>, vector<8x128xbf16>,
    %83 = vector.extract_strided_slice %74 {offsets = [1, 0], sizes = [7, 128], strides = [1, 1]} : vector<16x256xbf16> to vector<7x128xbf16>
    %84 = tpu.concatenate %83, %79 in 0 : vector<7x128xbf16>, vector<1x128xbf16> -> vector<8x128xbf16>
    %c0_49 = arith.constant 0 : index
    %c384 = arith.constant 384 : index
    %85 = vector.load %arg17[%c0_49, %c384] : memref<16x512xbf16, #tpu.memory_space<vmem>>, vector<8x128xbf16>
    tpu.vector_store %arg17[%c0_49, %c384], %84 {strides = array<i32>} : memref<16x512xbf16, #tpu.memory_space<vmem>>, vector<8x128xbf16>,
    %86 = vector.extract_strided_slice %74 {offsets = [8, 128], sizes = [7, 128], strides = [1, 1]} : vector<16x256xbf16> to vector<7x128xbf16>
    %87 = tpu.concatenate %79, %86 in 0 : vector<1x128xbf16>, vector<7x128xbf16> -> vector<8x128xbf16>
    %c8_50 = arith.constant 8 : index
    %c0_51 = arith.constant 0 : index
    %88 = vector.load %arg17[%c8_50, %c0_51] : memref<16x512xbf16, #tpu.memory_space<vmem>>, vector<8x128xbf16>
    tpu.vector_store %arg17[%c8_50, %c0_51], %87 {strides = array<i32>} : memref<16x512xbf16, #tpu.memory_space<vmem>>, vector<8x128xbf16>,
    %89 = vector.extract_strided_slice %74 {offsets = [9, 0], sizes = [7, 128], strides = [1, 1]} : vector<16x256xbf16> to vector<7x128xbf16>
    %90 = tpu.concatenate %89, %79 in 0 : vector<7x128xbf16>, vector<1x128xbf16> -> vector<8x128xbf16>
    %c8_52 = arith.constant 8 : index
    %c384_53 = arith.constant 384 : index
    %91 = vector.load %arg17[%c8_52, %c384_53] : memref<16x512xbf16, #tpu.memory_space<vmem>>, vector<8x128xbf16>
    tpu.vector_store %arg17[%c8_52, %c384_53], %90 {strides = array<i32>} : memref<16x512xbf16, #tpu.memory_space<vmem>>, vector<8x128xbf16>,
    %c0_54 = arith.constant 0 : index
    %c0_55 = arith.constant 0 : index
    %92 = vector.load %arg17[%c0_54, %c0_55] : memref<16x512xbf16, #tpu.memory_space<vmem>>, vector<16x512xbf16>
    %c0_56 = arith.constant 0 : index
    %c0_57 = arith.constant 0 : index
    %93 = vector.load %arg6[%c0_56, %c0_57] : memref<512x256xbf16, #tpu.memory_space<vmem>>, vector<512x256xbf16>
    %cst_58 = arith.constant dense<0.000000e+00> : vector<16x256xf32>
    %94 = tpu.matmul %92, %93, %cst_58 {dimension_numbers = #tpu.dot_dimension_numbers<[1], [0], [0], [1], [0, 0, 1, 1], [], []>} : vector<16x512xbf16>, vector<512x256xbf16>, vector<16x256xf32> -> vector<16x256xf32>
    %c0_59 = arith.constant 0 : index
    %c0_60 = arith.constant 0 : index
    %95 = vector.load %arg7[%c0_59, %c0_60] : memref<1x256xf32, #tpu.memory_space<vmem>>, vector<1x256xf32>
    %c0_61 = arith.constant 0 : index
    %c0_62 = arith.constant 0 : index
    %96 = vector.load %arg8[%c0_61, %c0_62] : memref<1x256xf32, #tpu.memory_space<vmem>>, vector<1x256xf32>
    %cst_63 = arith.constant dense<0.000000e+00> : vector<256xf32>
    %97 = vector.multi_reduction <add>, %94, %cst_63 [0] : vector<16x256xf32> to vector<256xf32>
    %98 = vector.shape_cast %97 : vector<256xf32> to vector<1x256xf32>
    %cst_64 = arith.constant 1.600000e+01 : f32
    %99 = vector.broadcast %cst_64 : f32 to vector<1x256xf32>
    %100 = arith.divf %98, %99 : vector<1x256xf32>
    %101 = vector.broadcast %100 : vector<1x256xf32> to vector<16x256xf32>
    %102 = arith.subf %94, %101 : vector<16x256xf32>
    %103 = arith.mulf %102, %102 : vector<16x256xf32>
    %cst_65 = arith.constant dense<0.000000e+00> : vector<256xf32>
    %104 = vector.multi_reduction <add>, %103, %cst_65 [0] : vector<16x256xf32> to vector<256xf32>
    %105 = vector.shape_cast %104 : vector<256xf32> to vector<1x256xf32>
    %cst_66 = arith.constant 1.600000e+01 : f32
    %106 = vector.broadcast %cst_66 : f32 to vector<1x256xf32>
    %107 = arith.divf %105, %106 : vector<1x256xf32>
    %cst_67 = arith.constant 9.99999974E-6 : f32
    %108 = vector.broadcast %cst_67 : f32 to vector<1x256xf32>
    %109 = arith.addf %107, %108 : vector<1x256xf32>
    %110 = math.rsqrt %109 : vector<1x256xf32>
    %111 = arith.mulf %110, %95 : vector<1x256xf32>
    %112 = arith.mulf %100, %111 : vector<1x256xf32>
    %113 = arith.subf %96, %112 : vector<1x256xf32>
    %114 = vector.broadcast %111 : vector<1x256xf32> to vector<16x256xf32>
    %115 = arith.mulf %94, %114 : vector<16x256xf32>
    %116 = vector.broadcast %113 : vector<1x256xf32> to vector<16x256xf32>
    %117 = arith.addf %115, %116 : vector<16x256xf32>
    %cst_68 = arith.constant 0.000000e+00 : f32
    %118 = vector.broadcast %cst_68 : f32 to vector<16x256xf32>
    %119 = arith.cmpf oge, %117, %118 : vector<16x256xf32>
    %cst_69 = arith.constant 2.000000e-01 : f32
    %120 = vector.broadcast %cst_69 : f32 to vector<16x256xf32>
    %121 = arith.mulf %120, %117 : vector<16x256xf32>
    %122 = arith.select %119, %117, %121 : vector<16x256xi1>, vector<16x256xf32>
    %123 = arith.truncf %122 : vector<16x256xf32> to vector<16x256xbf16>
    %cst_70 = arith.constant 0.000000e+00 : bf16
    %124 = vector.broadcast %cst_70 : bf16 to vector<1x256xbf16>
    %125 = vector.extract_strided_slice %123 {offsets = [0, 0], sizes = [6, 256], strides = [1, 1]} : vector<16x256xbf16> to vector<6x256xbf16>
    %126 = tpu.concatenate %124, %125 in 0 : vector<1x256xbf16>, vector<6x256xbf16> -> vector<7x256xbf16>
    %c0_71 = arith.constant 0 : index
    %c0_72 = arith.constant 0 : index
    %127 = vector.load %arg18[%c0_71, %c0_72] : memref<14x1024xbf16, #tpu.memory_space<vmem>>, vector<7x256xbf16>
    tpu.vector_store %arg18[%c0_71, %c0_72], %126 {strides = array<i32>} : memref<14x1024xbf16, #tpu.memory_space<vmem>>, vector<7x256xbf16>,
    %128 = vector.extract_strided_slice %123 {offsets = [0, 0], sizes = [7, 256], strides = [1, 1]} : vector<16x256xbf16> to vector<7x256xbf16>
    %c0_73 = arith.constant 0 : index
    %c256_74 = arith.constant 256 : index
    %129 = vector.load %arg18[%c0_73, %c256_74] : memref<14x1024xbf16, #tpu.memory_space<vmem>>, vector<7x256xbf16>
    tpu.vector_store %arg18[%c0_73, %c256_74], %128 {strides = array<i32>} : memref<14x1024xbf16, #tpu.memory_space<vmem>>, vector<7x256xbf16>,
    %130 = vector.extract_strided_slice %123 {offsets = [1, 0], sizes = [7, 256], strides = [1, 1]} : vector<16x256xbf16> to vector<7x256xbf16>
    %c0_75 = arith.constant 0 : index
    %c512 = arith.constant 512 : index
    %131 = vector.load %arg18[%c0_75, %c512] : memref<14x1024xbf16, #tpu.memory_space<vmem>>, vector<7x256xbf16>
    tpu.vector_store %arg18[%c0_75, %c512], %130 {strides = array<i32>} : memref<14x1024xbf16, #tpu.memory_space<vmem>>, vector<7x256xbf16>,
    %132 = vector.extract_strided_slice %123 {offsets = [2, 0], sizes = [6, 256], strides = [1, 1]} : vector<16x256xbf16> to vector<6x256xbf16>
    %133 = tpu.concatenate %132, %124 in 0 : vector<6x256xbf16>, vector<1x256xbf16> -> vector<7x256xbf16>
    %c0_76 = arith.constant 0 : index
    %c768 = arith.constant 768 : index
    %134 = vector.load %arg18[%c0_76, %c768] : memref<14x1024xbf16, #tpu.memory_space<vmem>>, vector<7x256xbf16>
    tpu.vector_store %arg18[%c0_76, %c768], %133 {strides = array<i32>} : memref<14x1024xbf16, #tpu.memory_space<vmem>>, vector<7x256xbf16>,
    %135 = vector.extract_strided_slice %123 {offsets = [8, 0], sizes = [6, 256], strides = [1, 1]} : vector<16x256xbf16> to vector<6x256xbf16>
    %136 = tpu.concatenate %124, %135 in 0 : vector<1x256xbf16>, vector<6x256xbf16> -> vector<7x256xbf16>
    %c7 = arith.constant 7 : index
    %c0_77 = arith.constant 0 : index
    %137 = vector.load %arg18[%c7, %c0_77] : memref<14x1024xbf16, #tpu.memory_space<vmem>>, vector<7x256xbf16>
    tpu.vector_store %arg18[%c7, %c0_77], %136 {strides = array<i32>} : memref<14x1024xbf16, #tpu.memory_space<vmem>>, vector<7x256xbf16>,
    %138 = vector.extract_strided_slice %123 {offsets = [8, 0], sizes = [7, 256], strides = [1, 1]} : vector<16x256xbf16> to vector<7x256xbf16>
    %c7_78 = arith.constant 7 : index
    %c256_79 = arith.constant 256 : index
    %139 = vector.load %arg18[%c7_78, %c256_79] : memref<14x1024xbf16, #tpu.memory_space<vmem>>, vector<7x256xbf16>
    tpu.vector_store %arg18[%c7_78, %c256_79], %138 {strides = array<i32>} : memref<14x1024xbf16, #tpu.memory_space<vmem>>, vector<7x256xbf16>,
    %140 = vector.extract_strided_slice %123 {offsets = [9, 0], sizes = [7, 256], strides = [1, 1]} : vector<16x256xbf16> to vector<7x256xbf16>
    %c7_80 = arith.constant 7 : index
    %c512_81 = arith.constant 512 : index
    %141 = vector.load %arg18[%c7_80, %c512_81] : memref<14x1024xbf16, #tpu.memory_space<vmem>>, vector<7x256xbf16>
    tpu.vector_store %arg18[%c7_80, %c512_81], %140 {strides = array<i32>} : memref<14x1024xbf16, #tpu.memory_space<vmem>>, vector<7x256xbf16>,
    %142 = vector.extract_strided_slice %123 {offsets = [10, 0], sizes = [6, 256], strides = [1, 1]} : vector<16x256xbf16> to vector<6x256xbf16>
    %143 = tpu.concatenate %142, %124 in 0 : vector<6x256xbf16>, vector<1x256xbf16> -> vector<7x256xbf16>
    %c7_82 = arith.constant 7 : index
    %c768_83 = arith.constant 768 : index
    %144 = vector.load %arg18[%c7_82, %c768_83] : memref<14x1024xbf16, #tpu.memory_space<vmem>>, vector<7x256xbf16>
    tpu.vector_store %arg18[%c7_82, %c768_83], %143 {strides = array<i32>} : memref<14x1024xbf16, #tpu.memory_space<vmem>>, vector<7x256xbf16>,
    %c0_84 = arith.constant 0 : index
    %c0_85 = arith.constant 0 : index
    %145 = vector.load %arg18[%c0_84, %c0_85] : memref<14x1024xbf16, #tpu.memory_space<vmem>>, vector<14x1024xbf16>
    %c0_86 = arith.constant 0 : index
    %c0_87 = arith.constant 0 : index
    %146 = vector.load %arg9[%c0_86, %c0_87] : memref<1024x512xbf16, #tpu.memory_space<vmem>>, vector<1024x512xbf16>
    %cst_88 = arith.constant dense<0.000000e+00> : vector<14x512xf32>
    %147 = tpu.matmul %145, %146, %cst_88 {dimension_numbers = #tpu.dot_dimension_numbers<[1], [0], [0], [1], [0, 0, 1, 1], [], []>} : vector<14x1024xbf16>, vector<1024x512xbf16>, vector<14x512xf32> -> vector<14x512xf32>
    %c0_89 = arith.constant 0 : index
    %c0_90 = arith.constant 0 : index
    %148 = vector.load %arg10[%c0_89, %c0_90] : memref<1x512xf32, #tpu.memory_space<vmem>>, vector<1x512xf32>
    %c0_91 = arith.constant 0 : index
    %c0_92 = arith.constant 0 : index
    %149 = vector.load %arg11[%c0_91, %c0_92] : memref<1x512xf32, #tpu.memory_space<vmem>>, vector<1x512xf32>
    %cst_93 = arith.constant dense<0.000000e+00> : vector<512xf32>
    %150 = vector.multi_reduction <add>, %147, %cst_93 [0] : vector<14x512xf32> to vector<512xf32>
    %151 = vector.shape_cast %150 : vector<512xf32> to vector<1x512xf32>
    %cst_94 = arith.constant 1.400000e+01 : f32
    %152 = vector.broadcast %cst_94 : f32 to vector<1x512xf32>
    %153 = arith.divf %151, %152 : vector<1x512xf32>
    %154 = vector.broadcast %153 : vector<1x512xf32> to vector<14x512xf32>
    %155 = arith.subf %147, %154 : vector<14x512xf32>
    %156 = arith.mulf %155, %155 : vector<14x512xf32>
    %cst_95 = arith.constant dense<0.000000e+00> : vector<512xf32>
    %157 = vector.multi_reduction <add>, %156, %cst_95 [0] : vector<14x512xf32> to vector<512xf32>
    %158 = vector.shape_cast %157 : vector<512xf32> to vector<1x512xf32>
    %cst_96 = arith.constant 1.400000e+01 : f32
    %159 = vector.broadcast %cst_96 : f32 to vector<1x512xf32>
    %160 = arith.divf %158, %159 : vector<1x512xf32>
    %cst_97 = arith.constant 9.99999974E-6 : f32
    %161 = vector.broadcast %cst_97 : f32 to vector<1x512xf32>
    %162 = arith.addf %160, %161 : vector<1x512xf32>
    %163 = math.rsqrt %162 : vector<1x512xf32>
    %164 = arith.mulf %163, %148 : vector<1x512xf32>
    %165 = arith.mulf %153, %164 : vector<1x512xf32>
    %166 = arith.subf %149, %165 : vector<1x512xf32>
    %167 = vector.broadcast %164 : vector<1x512xf32> to vector<14x512xf32>
    %168 = arith.mulf %147, %167 : vector<14x512xf32>
    %169 = vector.broadcast %166 : vector<1x512xf32> to vector<14x512xf32>
    %170 = arith.addf %168, %169 : vector<14x512xf32>
    %cst_98 = arith.constant 0.000000e+00 : f32
    %171 = vector.broadcast %cst_98 : f32 to vector<14x512xf32>
    %172 = arith.cmpf oge, %170, %171 : vector<14x512xf32>
    %cst_99 = arith.constant 2.000000e-01 : f32
    %173 = vector.broadcast %cst_99 : f32 to vector<14x512xf32>
    %174 = arith.mulf %173, %170 : vector<14x512xf32>
    %175 = arith.select %172, %170, %174 : vector<14x512xi1>, vector<14x512xf32>
    %176 = arith.truncf %175 : vector<14x512xf32> to vector<14x512xbf16>
    %cst_100 = arith.constant 0.000000e+00 : bf16
    %177 = vector.broadcast %cst_100 : bf16 to vector<1x512xbf16>
    %178 = vector.extract_strided_slice %176 {offsets = [0, 0], sizes = [5, 512], strides = [1, 1]} : vector<14x512xbf16> to vector<5x512xbf16>
    %179 = tpu.concatenate %177, %178 in 0 : vector<1x512xbf16>, vector<5x512xbf16> -> vector<6x512xbf16>
    %c0_101 = arith.constant 0 : index
    %c0_102 = arith.constant 0 : index
    %180 = vector.load %arg19[%c0_101, %c0_102] : memref<12x2048xbf16, #tpu.memory_space<vmem>>, vector<6x512xbf16>
    tpu.vector_store %arg19[%c0_101, %c0_102], %179 {strides = array<i32>} : memref<12x2048xbf16, #tpu.memory_space<vmem>>, vector<6x512xbf16>,
    %181 = vector.extract_strided_slice %176 {offsets = [0, 0], sizes = [6, 512], strides = [1, 1]} : vector<14x512xbf16> to vector<6x512xbf16>
    %c0_103 = arith.constant 0 : index
    %c512_104 = arith.constant 512 : index
    %182 = vector.load %arg19[%c0_103, %c512_104] : memref<12x2048xbf16, #tpu.memory_space<vmem>>, vector<6x512xbf16>
    tpu.vector_store %arg19[%c0_103, %c512_104], %181 {strides = array<i32>} : memref<12x2048xbf16, #tpu.memory_space<vmem>>, vector<6x512xbf16>,
    %183 = vector.extract_strided_slice %176 {offsets = [1, 0], sizes = [6, 512], strides = [1, 1]} : vector<14x512xbf16> to vector<6x512xbf16>
    %c0_105 = arith.constant 0 : index
    %c1024 = arith.constant 1024 : index
    %184 = vector.load %arg19[%c0_105, %c1024] : memref<12x2048xbf16, #tpu.memory_space<vmem>>, vector<6x512xbf16>
    tpu.vector_store %arg19[%c0_105, %c1024], %183 {strides = array<i32>} : memref<12x2048xbf16, #tpu.memory_space<vmem>>, vector<6x512xbf16>,
    %185 = vector.extract_strided_slice %176 {offsets = [2, 0], sizes = [5, 512], strides = [1, 1]} : vector<14x512xbf16> to vector<5x512xbf16>
    %186 = tpu.concatenate %185, %177 in 0 : vector<5x512xbf16>, vector<1x512xbf16> -> vector<6x512xbf16>
    %c0_106 = arith.constant 0 : index
    %c1536 = arith.constant 1536 : index
    %187 = vector.load %arg19[%c0_106, %c1536] : memref<12x2048xbf16, #tpu.memory_space<vmem>>, vector<6x512xbf16>
    tpu.vector_store %arg19[%c0_106, %c1536], %186 {strides = array<i32>} : memref<12x2048xbf16, #tpu.memory_space<vmem>>, vector<6x512xbf16>,
    %188 = vector.extract_strided_slice %176 {offsets = [7, 0], sizes = [5, 512], strides = [1, 1]} : vector<14x512xbf16> to vector<5x512xbf16>
    %189 = tpu.concatenate %177, %188 in 0 : vector<1x512xbf16>, vector<5x512xbf16> -> vector<6x512xbf16>
    %c6 = arith.constant 6 : index
    %c0_107 = arith.constant 0 : index
    %190 = vector.load %arg19[%c6, %c0_107] : memref<12x2048xbf16, #tpu.memory_space<vmem>>, vector<6x512xbf16>
    tpu.vector_store %arg19[%c6, %c0_107], %189 {strides = array<i32>} : memref<12x2048xbf16, #tpu.memory_space<vmem>>, vector<6x512xbf16>,
    %191 = vector.extract_strided_slice %176 {offsets = [7, 0], sizes = [6, 512], strides = [1, 1]} : vector<14x512xbf16> to vector<6x512xbf16>
    %c6_108 = arith.constant 6 : index
    %c512_109 = arith.constant 512 : index
    %192 = vector.load %arg19[%c6_108, %c512_109] : memref<12x2048xbf16, #tpu.memory_space<vmem>>, vector<6x512xbf16>
    tpu.vector_store %arg19[%c6_108, %c512_109], %191 {strides = array<i32>} : memref<12x2048xbf16, #tpu.memory_space<vmem>>, vector<6x512xbf16>,
    %193 = vector.extract_strided_slice %176 {offsets = [8, 0], sizes = [6, 512], strides = [1, 1]} : vector<14x512xbf16> to vector<6x512xbf16>
    %c6_110 = arith.constant 6 : index
    %c1024_111 = arith.constant 1024 : index
    %194 = vector.load %arg19[%c6_110, %c1024_111] : memref<12x2048xbf16, #tpu.memory_space<vmem>>, vector<6x512xbf16>
    tpu.vector_store %arg19[%c6_110, %c1024_111], %193 {strides = array<i32>} : memref<12x2048xbf16, #tpu.memory_space<vmem>>, vector<6x512xbf16>,
    %195 = vector.extract_strided_slice %176 {offsets = [9, 0], sizes = [5, 512], strides = [1, 1]} : vector<14x512xbf16> to vector<5x512xbf16>
    %196 = tpu.concatenate %195, %177 in 0 : vector<5x512xbf16>, vector<1x512xbf16> -> vector<6x512xbf16>
    %c6_112 = arith.constant 6 : index
    %c1536_113 = arith.constant 1536 : index
    %197 = vector.load %arg19[%c6_112, %c1536_113] : memref<12x2048xbf16, #tpu.memory_space<vmem>>, vector<6x512xbf16>
    tpu.vector_store %arg19[%c6_112, %c1536_113], %196 {strides = array<i32>} : memref<12x2048xbf16, #tpu.memory_space<vmem>>, vector<6x512xbf16>,
    %c0_114 = arith.constant 0 : index
    %c0_115 = arith.constant 0 : index
    %198 = vector.load %arg19[%c0_114, %c0_115] : memref<12x2048xbf16, #tpu.memory_space<vmem>>, vector<12x2048xbf16>
    %c0_116 = arith.constant 0 : index
    %c0_117 = arith.constant 0 : index
    %199 = vector.load %arg12[%c0_116, %c0_117] : memref<2048x128xbf16, #tpu.memory_space<vmem>>, vector<2048x128xbf16>
    %cst_118 = arith.constant dense<0.000000e+00> : vector<12x128xf32>
    %200 = tpu.matmul %198, %199, %cst_118 {dimension_numbers = #tpu.dot_dimension_numbers<[1], [0], [0], [1], [0, 0, 1, 1], [], []>} : vector<12x2048xbf16>, vector<2048x128xbf16>, vector<12x128xf32> -> vector<12x128xf32>
    %c0_119 = arith.constant 0 : index
    %c0_120 = arith.constant 0 : index
    %201 = vector.load %arg13[%c0_119, %c0_120] : memref<1x128xf32, #tpu.memory_space<vmem>>, vector<1x128xf32>
    %202 = vector.broadcast %201 : vector<1x128xf32> to vector<12x128xf32>
    %203 = arith.addf %200, %202 : vector<12x128xf32>
    %c0_121 = arith.constant 0 : index
    %c0_122 = arith.constant 0 : index
    %204 = vector.load %arg14[%c0_121, %c0_122] : memref<12x128xf32, #tpu.memory_space<vmem>>, vector<12x128xf32>
    tpu.vector_store %arg14[%c0_121, %c0_122], %203 {strides = array<i32>} : memref<12x128xf32, #tpu.memory_space<vmem>>, vector<12x128xf32>,
    return
  }
}

</mosaic_0001>

<bundles_post_ra>
// kernel: patchgan_forward.1
= control target key start
LH: loop header
LB: loop body
LE: loop exit
PB: predicated region body
PF: predicated region fallthrough
CT: control target
= control target key end

     0   :  { %19 = vsyncpa [#allocation8], 0  ;;  %s7618_s0 = inlined_call_operand.vmem [shape: bf16[18,16], index: 0, kind: input, shape index: {}]   ;;  %s7619_s1 = inlined_call_operand.vmem [shape: bf16[32,256], index: 1, kind: input, shape index: {}]   ;;  %s7620_s2 = inlined_call_operand.vmem [shape: f32[1,256], index: 2, kind: input, shape index: {}]   ;;  %s7621_s3 = inlined_call_operand.hbm [shape: bf16[384,256], index: 3, kind: input, shape index: {}]   ;;  %s7622_s4 = inlined_call_operand.vmem [shape: f32[1,128], index: 4, kind: input, shape index: {}]   ;;  %s7623_s5 = inlined_call_operand.vmem [shape: f32[1,128], index: 5, kind: input, shape index: {}]   ;;  %s7624_s6 = inlined_call_operand.hbm [shape: bf16[512,256], index: 6, kind: input, shape index: {}]   ;;  %s7625_s7 = inlined_call_operand.vmem [shape: f32[1,256], index: 7, kind: input, shape index: {}]   ;;  %s7626_s8 = inlined_call_operand.vmem [shape: f32[1,256], index: 8, kind: input, shape index: {}]   ;;  %s7627_s9 = inlined_call_operand.hbm [shape: bf16[1024,512], index: 9, kind: input, shape index: {}]   ;;  %s7628_s10 = inlined_call_operand.vmem [shape: f32[1,512], index: 10, kind: input, shape index: {}]   ;;  %s7629_s11 = inlined_call_operand.vmem [shape: f32[1,512], index: 11, kind: input, shape index: {}]   ;;  %s7630_s12 = inlined_call_operand.hbm [shape: bf16[2048,128], index: 12, kind: input, shape index: {}]   ;;  %s7631_s13 = inlined_call_operand.vmem [shape: f32[1,128], index: 13, kind: input, shape index: {}]   ;;  %s7632_s14 = inlined_call_operand.vmem [shape: f32[12,128], index: 14, kind: output, shape index: {}]  }
   0x1   :  { %20 = vsyncpa [#allocation10], 0 }
   0x2   :  { %21 = vsyncpa [#allocation13], 0  ;;  %s7011_s29 = smov [#allocation9]   ;;  %s7012_s15 = smov [#allocation7]  }
   0x3   :  { %s49_s30 = sshll.u32 %s7011_s29, 4  ;;  %s33_s16 = sshll.u32 %s7012_s15, 4  ;;  %s50_s30 = int_to_ptr.vmem [resolvable:$true] %s49_s30  ;;  %s7098_s16 = int_to_ptr.vmem [resolvable:$true] %s33_s16 }
   0x4   :  { %s6917_s19 = scalar_lea.hbm %s7624_s6, 8192 }
   0x5   :  { %p6918_p0 = scmp.ne.s32.totalorder %s7624_s6, %s6917_s19  ;;  %p6921_p1 = scmp.lt.u32.totalorder %s6917_s19, %s7624_s6 }
   0x7   :  { %p6923_p2 = pnand %p6921_p1, %p6918_p0 }
   0x9   :  { %6926 = shalt.err (!%p6923_p2)
}
   0xa   :  { %s6927_s24 = scalar_lea.vmem %s50_s30, 8192  ;;  %p6932_p4 = scmp.lt.s32.totalorder %s50_s30, %s50_s30 }
   0xb   :  { %p6928_p3 = scmp.ne.s32.totalorder %s50_s30, %s6927_s24  ;;  %p6933_p5 = scmp.lt.s32.totalorder %s6927_s24, %s6927_s24 }
   0xd   :  { %p6934_p6 = por %p6933_p5, %p6932_p4 }
   0xf   :  { %p6935_p7 = pnand %p6934_p6, %p6928_p3 }
  0x11   :  { %6938 = shalt.err (!%p6935_p7)
}
  0x12   :  { %s7013_s25 = smov 128   ;;  %s7014_s26 = smov 8  }
  0x13   :  { %55 = dma.hbm_to_vmem [thread:$0]  %s7624_s6, 8192, %s50_s30, [#allocation10], %s7013_s25, %s7013_s25, %s7014_s26  }
  0x14   :  { %s6939_s17 = scalar_lea.hbm %s7621_s3, 6144 }
  0x15   :  { %p6940_p8 = scmp.ne.s32.totalorder %s7621_s3, %s6939_s17  ;;  %p6943_p9 = scmp.lt.u32.totalorder %s6939_s17, %s7621_s3 }
  0x17   :  { %p6945_p10 = pnand %p6943_p9, %p6940_p8 }
  0x19   :  { %6948 = shalt.err (!%p6945_p10)
}
  0x1a   :  { %s6949_s22 = scalar_lea.vmem %s7098_s16, 6144  ;;  %p6954_p12 = scmp.lt.s32.totalorder %s7098_s16, %s7098_s16 }
  0x1b   :  { %p6950_p11 = scmp.ne.s32.totalorder %s7098_s16, %s6949_s22  ;;  %p6955_p13 = scmp.lt.s32.totalorder %s6949_s22, %s6949_s22 }
  0x1d   :  { %p6956_p0 = por %p6955_p13, %p6954_p12 }
  0x1f   :  { %p6957_p1 = pnand %p6956_p0, %p6950_p11 }
  0x21   :  { %6960 = shalt.err (!%p6957_p1)
}
  0x22   :  { %39 = dma.hbm_to_vmem [thread:$0]  %s7621_s3, 6144, %s7098_s16, [#allocation8], %s7013_s25, %s7013_s25, %s7014_s26  }
  0x23   :  { %s7015_s23 = smov [#allocation11]   ;;  %s6961_s29 = scalar_lea.hbm %s7627_s9, 32768 }
  0x24   :  { %s65_s24 = sshll.u32 %s7015_s23, 4  ;;  %p6962_p2 = scmp.ne.s32.totalorder %s7627_s9, %s6961_s29  ;;  %s66_s24 = int_to_ptr.vmem [resolvable:$true] %s65_s24 }
  0x25   :  { %p6965_p3 = scmp.lt.u32.totalorder %s6961_s29, %s7627_s9 }
  0x27   :  { %p6967_p4 = pnand %p6965_p3, %p6962_p2 }
  0x29   :  { %6970 = shalt.err (!%p6967_p4)
}
  0x2a   :  { %s6971_s20 = scalar_lea.vmem %s66_s24, 32768  ;;  %p6976_p6 = scmp.lt.s32.totalorder %s66_s24, %s66_s24 }
  0x2b   :  { %p6972_p5 = scmp.ne.s32.totalorder %s66_s24, %s6971_s20  ;;  %p6977_p7 = scmp.lt.s32.totalorder %s6971_s20, %s6971_s20 }
  0x2d   :  { %p6978_p8 = por %p6977_p7, %p6976_p6 }
  0x2f   :  { %p6979_p9 = pnand %p6978_p8, %p6972_p5 }
  0x31   :  { %6982 = shalt.err (!%p6979_p9)
}
  0x32   :  { %s7016_s3 = smov 256   ;;  %s7017_s16 = smov 16  }
  0x33   :  { %71 = dma.hbm_to_vmem [thread:$0]  %s7627_s9, 32768, %s66_s24, [#allocation10], %s7016_s3, %s7016_s3, %s7017_s16  }
  0x34   :  { %s7018_s21 = smov [#allocation12]   ;;  %s6983_s23 = scalar_lea.hbm %s7630_s12, 16384 }
  0x35   :  { %s81_s22 = sshll.u32 %s7018_s21, 4  ;;  %p6984_p10 = scmp.ne.s32.totalorder %s7630_s12, %s6983_s23  ;;  %s82_s22 = int_to_ptr.vmem [resolvable:$true] %s81_s22 }
  0x36   :  { %p6987_p11 = scmp.lt.u32.totalorder %s6983_s23, %s7630_s12 }
  0x38   :  { %p6989_p12 = pnand %p6987_p11, %p6984_p10 }
  0x3a   :  { %6992 = shalt.err (!%p6989_p12)
}
  0x3b   :  { %s6993_s17 = scalar_lea.vmem %s82_s22, 16384  ;;  %p6998_p0 = scmp.lt.s32.totalorder %s82_s22, %s82_s22 }
  0x3c   :  { %p6994_p13 = scmp.ne.s32.totalorder %s82_s22, %s6993_s17  ;;  %p6999_p1 = scmp.lt.s32.totalorder %s6993_s17, %s6993_s17 }
  0x3e   :  { %p7000_p2 = por %p6999_p1, %p6998_p0 }
  0x40   :  { %p7001_p3 = pnand %p7000_p2, %p6994_p13 }
  0x42   :  { %7004 = shalt.err (!%p7001_p3)
}
  0x43   :  { %s7019_s9 = smov 64   ;;  %s7020_s24 = smov 4  }
  0x44   :  { %87 = dma.hbm_to_vmem [thread:$0]  %s7630_s12, 16384, %s82_s22, [#allocation13], %s7019_s9, %s7019_s9, %s7020_s24  }
  0x45   :  { %7005 = dma.done.wait [#allocation8], 6144  }
  0x46   :  { %7006 = vsyncadd [#allocation8], 4294961152 }
  0x47   :  { %7007 = dma.done.wait [#allocation10], 40960  }
  0x48   :  { %7008 = vsyncadd [#allocation10], 4294926336 }
  0x49   :  { %7009 = dma.done.wait [#allocation13], 16384  }
  0x4a   :  { %7010 = vsyncadd [#allocation13], 4294950912  ;;  %vm104_vm0 = vcmask 125952   ;;  %v6214_v0 = vld [vmem:[%s7618_s0] sm:$0x1f]   ;;  %v7021_v1 = vmov 0   ;;  %v163_v55 = vlaneseq }
  0x4b   :  { %229 = vmatprep.mubr.bf16.mxu0 %v7021_v1  ;;  %v114_v2 = vshrl.u32 %v6214_v0, 16  ;;  %v116_v3 = vshll.u32 %v6214_v0, 16  ;;  %v6215_v4 = vld [vmem:[%s7618_s0 + $0x4] sm:$0x1e]   ;;  %v103_v5 = vld [vmem:[%s7618_s0] sm:$0xf] }
  0x4c   :  { %105 = vst.msk [vmem:[#allocation2] sm:$0xf] %vm104_vm0, %v103_v5  ;;  %v6216_v6 = vld [vmem:[%s7618_s0 + $0x4] sm:$0x1f]   ;;  %v6220_v12 = vld [vmem:[%s7619_s1 + $0x14] ss:$8 sps:$4 sm:$0xff]  }
  0x4d   :  { %v118_v7 = vrot.slane %v116_v3, 1  ;;  %v6217_v8 = vld [vmem:[%s7619_s1 + $0x4] ss:$8 sps:$4 sm:$0xff]   ;;  %v6219_v9 = vld [vmem:[%s7619_s1] ss:$8 sps:$4 sm:$0xff]   ;;  %v133_v10 = vshrl.u32 %v6216_v6, 16 }
  0x4e   :  { %v136_v11 = vshll.u32 %v6216_v6, 16  ;;  %197 = vmatprep.subr.bf16.mxu0 %v6217_v8  ;;  %v6222_v14 = vld [vmem:[%s7619_s1 + $0x10] ss:$8 sps:$4 sm:$0xff]   ;;  %v6223_v17 = vld [vmem:[#allocation7 + $0x4] ss:$8 sps:$4 sm:$0xff]   ;;  %v150_v19 = vrot.slane %v6215_v4, 5 }
  0x4f   :  { %v119_v13 = vor.u32 %v118_v7, %v114_v2  ;;  %v135_v15 = vrot.slane %v133_v10, 4  ;;  %198 = vmatpush1.bf16.msra.mxu0 %v6219_v9  ;;  %v6225_v18 = vld [vmem:[#allocation7] ss:$8 sps:$4 sm:$0xff]   ;;  %vm141_vm1 = vcmask 130052   ;;  %v6226_v20 = vld [vmem:[#allocation7 + $0x14] ss:$8 sps:$4 sm:$0xff]   ;;  %605 = vmatprep.subr.bf16.mxu1 %v6223_v17 }
  0x50   :  { %v138_v16 = vrot.slane %v136_v11, 5  ;;  %199 = vmatprep.subr.bf16.mxu0 %v6220_v12  ;;  %606 = vmatpush1.bf16.msra.mxu1 %v6225_v18  ;;  %v6228_v22 = vld [vmem:[#allocation7 + $0x10] ss:$8 sps:$4 sm:$0xff]   ;;  %v6229_v23 = vld [vmem:[#allocation7 + $0x24] ss:$8 sps:$4 sm:$0xff]   ;;  %vm123_vm2 = vcmask 257152  }
  0x51   :  { %120 = vrot.lane.b32.xlu0 %v119_v13, %s7017_s16  ;;  %607 = vmatprep.subr.bf16.mxu1 %v6226_v20  ;;  %v6231_v24 = vld [vmem:[#allocation7 + $0x20] ss:$8 sps:$4 sm:$0xff]   ;;  %v6232_v25 = vld [vmem:[#allocation7 + $0x34] ss:$8 sps:$4 sm:$0xff]   ;;  %v6234_v26 = vld [vmem:[#allocation7 + $0x30] ss:$8 sps:$4 sm:$0xff]  }
  0x52   :  { %v139_v21 = vor.u32 %v138_v16, %v135_v15  ;;  %v6235_v27 = vld [vmem:[#allocation7 + $0x44] ss:$8 sps:$4 sm:$0xff]   ;;  %v6237_v28 = vld [vmem:[#allocation7 + $0x40] ss:$8 sps:$4 sm:$0xff]   ;;  %v6238_v29 = vld [vmem:[#allocation7 + $0x54] ss:$8 sps:$4 sm:$0xff]  }
  0x53   :  { %200 = vmatpush1.bf16.msra.mxu0 %v6222_v14  ;;  %v6240_v30 = vld [vmem:[#allocation7 + $0x50] ss:$8 sps:$4 sm:$0xff]   ;;  %v6241_v31 = vld [vmem:[#allocation7 + $0x64] ss:$8 sps:$4 sm:$0xff]   ;;  %v6243_v32 = vld [vmem:[#allocation7 + $0x60] ss:$8 sps:$4 sm:$0xff]  }
  0x54   :  { %142 = vst.msk [vmem:[#allocation2] sm:$0xf0] %vm141_vm1, %v139_v21  ;;  %608 = vmatpush1.bf16.msra.mxu1 %v6228_v22  ;;  %v6244_v33 = vld [vmem:[#allocation7 + $0x74] ss:$8 sps:$4 sm:$0xff]   ;;  %v6246_v34 = vld [vmem:[#allocation7 + $0x70] ss:$8 sps:$4 sm:$0xff]  }
  0x55   :  { %151 = vrot.lane.b32.xlu0 %v150_v19, %s7017_s16  ;;  %609 = vmatprep.subr.bf16.mxu1 %v6229_v23  ;;  %v6247_v35 = vld [vmem:[#allocation7 + $0x84] ss:$8 sps:$4 sm:$0xff]   ;;  %v6249_v36 = vld [vmem:[#allocation7 + $0x80] ss:$8 sps:$4 sm:$0xff]   ;;  %v6250_v37 = vld [vmem:[#allocation7 + $0x94] ss:$8 sps:$4 sm:$0xff]  }
  0x56   :  { %v6252_v38 = vld [vmem:[#allocation7 + $0x90] ss:$8 sps:$4 sm:$0xff]   ;;  %v6253_v39 = vld [vmem:[#allocation7 + $0xa4] ss:$8 sps:$4 sm:$0xff]   ;;  %v6255_v40 = vld [vmem:[#allocation7 + $0xa0] ss:$8 sps:$4 sm:$0xff]  }
  0x57   :  { %vm154_vm3 = vcmask 261252   ;;  %vm193_vm4 = vcmask 261120   ;;  %v6256_v44 = vld [vmem:[#allocation7 + $0xb4] ss:$8 sps:$4 sm:$0xff]   ;;  %v6258_v45 = vld [vmem:[#allocation7 + $0xb0] ss:$8 sps:$4 sm:$0xff]  }
  0x58   :  { %610 = vmatpush1.bf16.msra.mxu1 %v6231_v24  ;;  %v6259_v46 = vld [vmem:[#allocation7 + $0xc4] ss:$8 sps:$4 sm:$0xff]   ;;  %v6261_v47 = vld [vmem:[#allocation7 + $0xc0] ss:$8 sps:$4 sm:$0xff]   ;;  %v6262_v48 = vld [vmem:[#allocation7 + $0xd4] ss:$8 sps:$4 sm:$0xff]  }
  0x59   :  { %611 = vmatprep.subr.bf16.mxu1 %v6232_v25  ;;  %v6264_v49 = vld [vmem:[#allocation7 + $0xd0] ss:$8 sps:$4 sm:$0xff]   ;;  %v6265_v50 = vld [vmem:[#allocation7 + $0xe4] ss:$8 sps:$4 sm:$0xff]   ;;  %v6267_v51 = vld [vmem:[#allocation7 + $0xe0] ss:$8 sps:$4 sm:$0xff]  }
  0x5a   :  { %v6268_v52 = vld [vmem:[#allocation7 + $0xf4] ss:$8 sps:$4 sm:$0xff]   ;;  %v6270_v53 = vld [vmem:[#allocation7 + $0xf0] ss:$8 sps:$4 sm:$0xff]   ;;  %v6273_v54 = vld [vmem:[#allocation7 + $0x104] ss:$8 sps:$4 sm:$0xff]  }
  0x5b   :  { %v7183_v56 = vshrl.u32 %v163_v55, 7  ;;  %v161_v58 = vld [vmem:[%s7620_s2] sm:$0x3]  ;;  %vm280_vm9 = vcmask 1043456   ;;  %vm281_vm10 = vsmask.f32 3328 }
  0x5c   :  { %612 = vmatpush1.bf16.msra.mxu1 %v6234_v26  ;;  %v6271_v17 = vld [vmem:[#allocation7 + $0x100] ss:$8 sps:$4 sm:$0xff]   ;;  %v6276_v20 = vld [vmem:[#allocation7 + $0x114] ss:$8 sps:$4 sm:$0xff]   ;;  %vm7198_vm11 = vmand %vm280_vm9, %vm281_vm10  ;;  %vm266_vm12 = vcmask 1040384   ;;  %vm300_vm15 = vcmask 523268  }
  0x5d   :  { %613 = vmatprep.subr.bf16.mxu1 %v6235_v27  ;;  %v7186_v57 = vsub.s32 0, %v7183_v56  ;;  %v7192_v59 = vsub.s32 1, %v7183_v56  ;;  %vm267_vm13 = vsmask.f32 256  ;;  %vm270_vm0 = vcmask 519168  }
  0x5e   :  { %vm7211_vm14 = vmand %vm266_vm12, %vm267_vm13  ;;  %vm288_vm1 = vcmask 1043968  }
  0x5f   :  { %v166_v60 = vrot.slane %v161_v58, %v7186_v57  ;;  %v170_v61 = vrot.slane %v161_v58, %v7192_v59 }
  0x60   :  { %614 = vmatpush1.bf16.msra.mxu1 %v6237_v28 }
  0x61   :  { %615 = vmatprep.subr.bf16.mxu1 %v6238_v29 }
  0x64   :  { %616 = vmatpush1.bf16.msra.mxu1 %v6240_v30  ;;  %v6274_v30 = vld [vmem:[#allocation7 + $0x110] ss:$8 sps:$4 sm:$0xff]  }
  0x65   :  { %617 = vmatprep.subr.bf16.mxu1 %v6241_v31 }
  0x68   :  { %618 = vmatpush1.bf16.msra.mxu1 %v6243_v32 }
  0x69   :  { %619 = vmatprep.subr.bf16.mxu1 %v6244_v33  ;;  %v6279_v33 = vld [vmem:[#allocation7 + $0x124] ss:$8 sps:$4 sm:$0xff]  }
  0x6c   :  { %620 = vmatpush1.bf16.msra.mxu1 %v6246_v34 }
  0x6d   :  { %621 = vmatprep.subr.bf16.mxu1 %v6247_v35 }
  0x70   :  { %622 = vmatpush1.bf16.msra.mxu1 %v6249_v36  ;;  %v6277_v36 = vld [vmem:[#allocation7 + $0x120] ss:$8 sps:$4 sm:$0xff]  }
  0x71   :  { %623 = vmatprep.subr.bf16.mxu1 %v6250_v37 }
  0x74   :  { %624 = vmatpush1.bf16.msra.mxu1 %v6252_v38  ;;  %v6282_v38 = vld [vmem:[#allocation7 + $0x134] ss:$8 sps:$4 sm:$0xff]  }
  0x75   :  { %625 = vmatprep.subr.bf16.mxu1 %v6253_v39  ;;  %v6280_v39 = vld [vmem:[#allocation7 + $0x130] ss:$8 sps:$4 sm:$0xff]  }
  0x78   :  { %626 = vmatpush1.bf16.msra.mxu1 %v6255_v40 }
  0x79   :  { %627 = vmatprep.subr.bf16.mxu1 %v6256_v44  ;;  %v6286_v44 = vld [vmem:[#allocation7 + $0x150] ss:$8 sps:$4 sm:$0xff]  }
  0x7c   :  { %628 = vmatpush1.bf16.msra.mxu1 %v6258_v45  ;;  %v6291_v45 = vld [vmem:[#allocation7 + $0x164] ss:$8 sps:$4 sm:$0xff]  }
  0x7d   :  { %629 = vmatprep.subr.bf16.mxu1 %v6259_v46  ;;  %v6289_v46 = vld [vmem:[#allocation7 + $0x160] ss:$8 sps:$4 sm:$0xff]  }
  0x80   :  { %630 = vmatpush1.bf16.msra.mxu1 %v6261_v47  ;;  %v6294_v47 = vld [vmem:[#allocation7 + $0x174] ss:$8 sps:$4 sm:$0xff]  }
  0x81   :  { %631 = vmatprep.subr.bf16.mxu1 %v6262_v48  ;;  %v6292_v48 = vld [vmem:[#allocation7 + $0x170] ss:$8 sps:$4 sm:$0xff]  }
  0x84   :  { %632 = vmatpush1.bf16.msra.mxu1 %v6264_v49 }
  0x85   :  { %633 = vmatprep.subr.bf16.mxu1 %v6265_v50 }
  0x88   :  { %634 = vmatpush1.bf16.msra.mxu1 %v6267_v51 }
  0x89   :  { %635 = vmatprep.subr.bf16.mxu1 %v6268_v52 }
  0x8c   :  { %636 = vmatpush1.bf16.msra.mxu1 %v6270_v53 }
  0x8d   :  { %648 = vmatprep.subr.bf16.mxu1 %v6273_v54 }
  0xc3   :  { %v121_v41 = vpop.permute.xlu0 %120 }
  0xc4   :  { %124 = vst.msk [vmem:[#allocation2] sm:$0xf] %vm123_vm2, %v121_v41  ;;  %v6285_v41 = vld [vmem:[#allocation7 + $0x144] ss:$8 sps:$4 sm:$0xff]   ;;  %vm312_vm2 = vcmask 1048068  }
  0xc7   :  { %v152_v42 = vpop.permute.xlu0 %151 }
  0xc8   :  { %155 = vst.msk [vmem:[#allocation2] sm:$0xf0] %vm154_vm3, %v152_v42  ;;  %v6283_v42 = vld [vmem:[#allocation7 + $0x140] ss:$8 sps:$4 sm:$0xff]  }
  0xcf   :  { %v156_v43 = vld [vmem:[#allocation2] sm:$0xff] }
  0xd0   :  { %5448 = vmatmul.mubr.msk.bf16.vlgmr.msra.gmra.mrb[0].mxu0 %vm193_vm4, %v156_v43  ;;  %v6288_v43 = vld [vmem:[#allocation7 + $0x154] ss:$8 sps:$4 sm:$0xff]  }
 0x1a3   :  { %v231_v62 = vpop.f32.mrb[0].mxu0 }
 0x1a4   :  { %v232_v63 = vadd.f32 %v231_v62, %v166_v60  ;;  %v233_v0 = vpop.f32.mrb[1].mxu0  ;;  %v6295_v62 = vld [vmem:[#allocation9] ss:$8 sps:$4 sm:$0xff]  }
 0x1a5   :  { %v234_v2 = vadd.f32 %v233_v0, %v170_v61  ;;  %v235_v3 = vpop.f32.mrb[2].mxu0  ;;  %v6298_v0 = vld [vmem:[#allocation9 + $0x10] ss:$8 sps:$4 sm:$0xff]  }
 0x1a6   :  { %v244_v4 = vmul.f32 0.2, %v232_v63  ;;  %v236_v5 = vadd.f32 %v235_v3, %v166_v60  ;;  %v237_v6 = vpop.f32.mrb[3].mxu0  ;;  %vm240_vm5 = vcmp.ge.f32.partialorder %v232_v63, 0.0  ;;  %v6301_v3 = vld [vmem:[#allocation9 + $0x20] ss:$8 sps:$4 sm:$0xff]  }
 0x1a7   :  { %v245_v7 = vmul.f32 0.2, %v234_v2  ;;  %v238_v8 = vadd.f32 %v237_v6, %v170_v61  ;;  %vm241_vm6 = vcmp.ge.f32.partialorder %v234_v2, 0.0  ;;  %v6297_v61 = vld [vmem:[#allocation9 + $0x4] ss:$8 sps:$4 sm:$0xff]  }
 0x1a8   :  { %vm242_vm7 = vcmp.ge.f32.partialorder %v236_v5, 0.0  ;;  %v246_v9 = vmul.f32 0.2, %v236_v5  ;;  %v248_v11 = vsel %vm240_vm5, %v232_v63, %v244_v4  ;;  %1201 = vmatprep.subr.bf16.mxu0 %v6297_v61  ;;  %v6300_v63 = vld [vmem:[#allocation9 + $0x14] ss:$8 sps:$4 sm:$0xff]  }
 0x1a9   :  { %vm243_vm8 = vcmp.ge.f32.partialorder %v238_v8, 0.0  ;;  %v247_v10 = vmul.f32 0.2, %v238_v8  ;;  %v249_v13 = vsel %vm241_vm6, %v234_v2, %v245_v7  ;;  %1202 = vmatpush1.bf16.msra.mxu0 %v6295_v62  ;;  %v6303_v2 = vld [vmem:[#allocation9 + $0x24] ss:$8 sps:$4 sm:$0xff]  }
 0x1aa   :  { %v250_v12 = vsel %vm242_vm7, %v236_v5, %v246_v9  ;;  %1203 = vmatprep.subr.bf16.mxu0 %v6300_v63  ;;  %v6306_v4 = vld [vmem:[#allocation9 + $0x34] ss:$8 sps:$4 sm:$0xff]   ;;  %v6304_v5 = vld [vmem:[#allocation9 + $0x30] ss:$8 sps:$4 sm:$0xff]   ;;  %v6309_v6 = vld [vmem:[#allocation9 + $0x44] ss:$8 sps:$4 sm:$0xff]  }
 0x1ab   :  { %v252_v14 = vpack.c.bf16 %v250_v12, %v248_v11  ;;  %v251_v15 = vsel %vm243_vm8, %v238_v8, %v247_v10  ;;  %v6307_v7 = vld [vmem:[#allocation9 + $0x40] ss:$8 sps:$4 sm:$0xff]   ;;  %v6312_v8 = vld [vmem:[#allocation9 + $0x54] ss:$8 sps:$4 sm:$0xff]   ;;  %v6310_v9 = vld [vmem:[#allocation9 + $0x50] ss:$8 sps:$4 sm:$0xff]  }
 0x1ac   :  { %v253_v16 = vpack.c.bf16 %v251_v15, %v249_v13  ;;  %v6315_v10 = vld [vmem:[#allocation9 + $0x64] ss:$8 sps:$4 sm:$0xff]   ;;  %v6313_v11 = vld [vmem:[#allocation9 + $0x60] ss:$8 sps:$4 sm:$0xff]   ;;  %v6318_v12 = vld [vmem:[#allocation9 + $0x74] ss:$8 sps:$4 sm:$0xff]  }
 0x1ad   :  { %v273_v18 = vshrl.u32 %v252_v14, 16  ;;  %v275_v19 = vshll.u32 %v252_v14, 16  ;;  %1204 = vmatpush1.bf16.msra.mxu0 %v6298_v0  ;;  %v6316_v13 = vld [vmem:[#allocation9 + $0x70] ss:$8 sps:$4 sm:$0xff]   ;;  %v6319_v15 = vld [vmem:[#allocation9 + $0x80] ss:$8 sps:$4 sm:$0xff]  }
 0x1ae   :  { %v257_v21 = vshrl.u32 %v253_v16, 16  ;;  %v260_v22 = vshll.u32 %v253_v16, 16  ;;  %637 = vmatprep.mubr.bf16.mxu1 %v253_v16  ;;  %1205 = vmatprep.subr.bf16.mxu0 %v6303_v2  ;;  %v6324_v16 = vld [vmem:[#allocation9 + $0x94] ss:$8 sps:$4 sm:$0xff]   ;;  %vm1433_vm7 = vcmask 1047556  }
 0x1af   :  { %v277_v23 = vrot.slane %v275_v19, 1  ;;  %638 = vmatmul.mubr.bf16.vlgmr.msra.gmra.mrb[0].mxu1 %v252_v14  ;;  %v302_v24 = vrot.slane %v273_v18, 4  ;;  %v303_v25 = vrot.slane %v275_v19, 5  ;;  %v6321_v14 = vld [vmem:[#allocation9 + $0x84] ss:$8 sps:$4 sm:$0xff]  }
 0x1b0   :  { %v290_v26 = vrot.slane %v257_v21, 3  ;;  %v291_v27 = vrot.slane %v260_v22, 4  ;;  %649 = vmatpush1.bf16.msra.mxu1 %v6271_v17  ;;  %680 = vmatprep.mubr.bf16.mxu1 %v7021_v1  ;;  %v259_v32 = vrot.slane %v257_v21, 7  ;;  %v6322_v17 = vld [vmem:[#allocation9 + $0x90] ss:$8 sps:$4 sm:$0xff]  }
 0x1b1   :  { %v278_v29 = vor.u32 %v277_v23, %v273_v18  ;;  %650 = vmatprep.subr.bf16.mxu1 %v6276_v20  ;;  %v304_v35 = vor.u32 %v303_v25, %v302_v24  ;;  %1206 = vmatpush1.bf16.msra.mxu0 %v6301_v3  ;;  %v6327_v18 = vld [vmem:[#allocation9 + $0xa4] ss:$8 sps:$4 sm:$0xff]   ;;  %v6325_v19 = vld [vmem:[#allocation9 + $0xa0] ss:$8 sps:$4 sm:$0xff]   ;;  %v6330_v20 = vld [vmem:[#allocation9 + $0xb4] ss:$8 sps:$4 sm:$0xff]  }
 0x1b2   :  { %v292_v31 = vor.u32 %v291_v27, %v290_v26  ;;  %v262_v37 = vor.u32 %v260_v22, %v259_v32  ;;  %1207 = vmatprep.subr.bf16.mxu0 %v6306_v4  ;;  %v6328_v21 = vld [vmem:[#allocation9 + $0xb0] ss:$8 sps:$4 sm:$0xff]   ;;  %v6333_v22 = vld [vmem:[#allocation9 + $0xc4] ss:$8 sps:$4 sm:$0xff]   ;;  %v6331_v23 = vld [vmem:[#allocation9 + $0xc0] ss:$8 sps:$4 sm:$0xff]  }
 0x1b3   :  { %v283_v34 = vsel %vm7198_vm11, %v278_v29, 0  ;;  %v306_v1 = vsel %vm7198_vm11, %v304_v35, 0  ;;  %v6336_v24 = vld [vmem:[#allocation9 + $0xd4] ss:$8 sps:$4 sm:$0xff]   ;;  %v6334_v25 = vld [vmem:[#allocation9 + $0xd0] ss:$8 sps:$4 sm:$0xff]  }
 0x1b4   :  { %293 = vrot.lane.b32.xlu1 %v292_v31, %s7019_s9  ;;  %285 = vrot.lane.b32.xlu0 %v283_v34, %s7019_s9  ;;  %v308_v40 = vrot.slane %v306_v1, 4  ;;  %v6339_v26 = vld [vmem:[#allocation9 + $0xe4] ss:$8 sps:$4 sm:$0xff]   ;;  %v6337_v27 = vld [vmem:[#allocation9 + $0xe0] ss:$8 sps:$4 sm:$0xff]  }
 0x1b5   :  { %651 = vmatpush1.bf16.msra.mxu1 %v6274_v30  ;;  %1208 = vmatpush1.bf16.msra.mxu0 %v6304_v5  ;;  %v6340_v29 = vld [vmem:[#allocation9 + $0xf0] ss:$8 sps:$4 sm:$0xff]   ;;  %v6342_v30 = vld [vmem:[#allocation9 + $0xf4] ss:$8 sps:$4 sm:$0xff]   ;;  %v6345_v31 = vld [vmem:[#allocation9 + $0x104] ss:$8 sps:$4 sm:$0xff]  }
 0x1b6   :  { %652 = vmatprep.subr.bf16.mxu1 %v6279_v33  ;;  %1209 = vmatprep.subr.bf16.mxu0 %v6309_v6  ;;  %vm1434_vm8 = vsmask.f32 7424 }
 0x1b7   :  { %vm1435_vm9 = vmand %vm1433_vm7, %vm1434_vm8 }
 0x1b8   :  { %263 = vrot.lane.b32.xlu1 %v262_v37, %s7019_s9 }
 0x1b9   :  { %653 = vmatpush1.bf16.msra.mxu1 %v6277_v36  ;;  %1210 = vmatpush1.bf16.msra.mxu0 %v6307_v7 }
 0x1ba   :  { %654 = vmatprep.subr.bf16.mxu1 %v6282_v38  ;;  %1211 = vmatprep.subr.bf16.mxu0 %v6312_v8 }
 0x1bc   :  { %309 = vrot.lane.b32.xlu1 %v308_v40, %s7019_s9 }
 0x1bd   :  { %655 = vmatpush1.bf16.msra.mxu1 %v6280_v39  ;;  %1212 = vmatpush1.bf16.msra.mxu0 %v6310_v9 }
 0x1be   :  { %656 = vmatprep.subr.bf16.mxu1 %v6285_v41  ;;  %1213 = vmatprep.subr.bf16.mxu0 %v6315_v10 }
 0x1c1   :  { %657 = vmatpush1.bf16.msra.mxu1 %v6283_v42  ;;  %1214 = vmatpush1.bf16.msra.mxu0 %v6313_v11 }
 0x1c2   :  { %658 = vmatprep.subr.bf16.mxu1 %v6288_v43  ;;  %1215 = vmatprep.subr.bf16.mxu0 %v6318_v12 }
 0x1c5   :  { %659 = vmatpush1.bf16.msra.mxu1 %v6286_v44  ;;  %1216 = vmatpush1.bf16.msra.mxu0 %v6316_v13 }
 0x1c6   :  { %660 = vmatprep.subr.bf16.mxu1 %v6291_v45  ;;  %1217 = vmatprep.subr.bf16.mxu0 %v6321_v14 }
 0x1c9   :  { %661 = vmatpush1.bf16.msra.mxu1 %v6289_v46  ;;  %1218 = vmatpush1.bf16.msra.mxu0 %v6319_v15 }
 0x1ca   :  { %662 = vmatprep.subr.bf16.mxu1 %v6294_v47  ;;  %1219 = vmatprep.subr.bf16.mxu0 %v6324_v16 }
 0x1cd   :  { %663 = vmatpush1.bf16.msra.mxu1 %v6292_v48  ;;  %1220 = vmatpush1.bf16.msra.mxu0 %v6322_v17 }
 0x1ce   :  { %1221 = vmatprep.subr.bf16.mxu0 %v6327_v18  ;;  %v691_v18 = vld [vmem:[%s7622_s4] sm:$0x1] }
 0x1d1   :  { %1222 = vmatpush1.bf16.msra.mxu0 %v6325_v19 }
 0x1d2   :  { %1223 = vmatprep.subr.bf16.mxu0 %v6330_v20 }
 0x1d5   :  { %1224 = vmatpush1.bf16.msra.mxu0 %v6328_v21  ;;  %v692_v21 = vld [vmem:[%s7623_s5] sm:$0x1] }
 0x1d6   :  { %1225 = vmatprep.subr.bf16.mxu0 %v6333_v22 }
 0x1d9   :  { %1226 = vmatpush1.bf16.msra.mxu0 %v6331_v23 }
 0x1da   :  { %1227 = vmatprep.subr.bf16.mxu0 %v6336_v24 }
 0x1dd   :  { %1228 = vmatpush1.bf16.msra.mxu0 %v6334_v25 }
 0x1de   :  { %1229 = vmatprep.subr.bf16.mxu0 %v6339_v26 }
 0x1e1   :  { %1230 = vmatpush1.bf16.msra.mxu0 %v6337_v27 }
 0x1e2   :  { %1231 = vmatprep.subr.bf16.mxu0 %v6342_v30 }
 0x1e5   :  { %1232 = vmatpush1.bf16.msra.mxu0 %v6340_v29 }
 0x1e6   :  { %1244 = vmatprep.subr.bf16.mxu0 %v6345_v31 }
 0x226   :  { %v294_v50 = vpop.permute.xlu1 %293  ;;  %v286_v55 = vpop.permute.xlu0 %285 }
 0x227   :  { %v296_v51 = vsel %vm7211_vm14, 0, %v294_v50 }
 0x228   :  { %v298_v52 = vrot.slane %v296_v51, 4 }
 0x22a   :  { %301 = vst.msk [vmem:[#allocation3 + $0x10] sm:$0xf0] %vm300_vm15, %v298_v52  ;;  %v264_v53 = vpop.permute.xlu1 %263 }
 0x22b   :  { %v269_v54 = vsel %vm7211_vm14, 0, %v264_v53 }
 0x22c   :  { %271 = vst.msk [vmem:[#allocation3 + $0x10] sm:$0xf] %vm270_vm0, %v269_v54 }
 0x22d   :  { %289 = vst.msk [vmem:[#allocation3 + $0x10] sm:$0xf] %vm288_vm1, %v286_v55  ;;  %vm1464_vm1 = vcmask 1042432  }
 0x22e   :  { %v310_v58 = vpop.permute.xlu1 %309 }
 0x22f   :  { %313 = vst.msk [vmem:[#allocation3 + $0x10] sm:$0xf0] %vm312_vm2, %v310_v58  ;;  %vm7275_vm2 = vmor %vm1435_vm9, %vm7198_vm11  ;;  %vm3498_vm9 = vcmask 1045504  }
 0x236   :  { %v316_v60 = vld [vmem:[#allocation3 + $0x10] sm:$0xff] }
 0x237   :  { %681 = vmatmul.mubr.bf16.vlgmr.msra.gmra.mrb[0].mxu1 %v316_v60 }
 0x30a   :  { %v682_v32 = vpop.f32.mrb[0].mxu1 }
 0x30b   :  { %v684_v33 = vpop.f32.mrb[1].mxu1 }
 0x30c   :  { %v686_v34 = vpop.f32.mrb[2].mxu1 }
 0x30d   :  { %v693_v35 = vadd.f32 %v686_v34, %v682_v32  ;;  %v688_v36 = vpop.f32.mrb[3].mxu1 }
 0x30e   :  { %v700_v37 = vadd.f32 %v688_v36, %v684_v33 }
 0x30f   :  { %v694_v38 = vrot.slane %v693_v35, 4 }
 0x310   :  { %v701_v1 = vrot.slane %v700_v37, 4 }
 0x311   :  { %v695_v39 = vadd.f32 %v694_v38, %v693_v35 }
 0x312   :  { %v702_v40 = vadd.f32 %v701_v1, %v700_v37 }
 0x313   :  { %v696_v41 = vrot.slane %v695_v39, 2 }
 0x314   :  { %v703_v42 = vrot.slane %v702_v40, 2 }
 0x315   :  { %v697_v43 = vadd.f32 %v696_v41, %v695_v39 }
 0x316   :  { %v704_v44 = vadd.f32 %v703_v42, %v702_v40 }
 0x317   :  { %v698_v45 = vrot.slane %v697_v43, 1 }
 0x318   :  { %v705_v46 = vrot.slane %v704_v44, 1 }
 0x319   :  { %v699_v47 = vadd.f32 %v698_v45, %v697_v43 }
 0x31a   :  { %v706_v48 = vadd.f32 %v705_v46, %v704_v44 }
 0x31c   :  { %v707_v50 = vadd.f32 %v706_v48, %v699_v47 }
 0x31e   :  { %v709_v51 = vmul.f32 0.03125, %v707_v50 }
 0x320   :  { %v713_v52 = vrot.slane %v709_v51, %v7186_v57 }
 0x322   :  { %v714_v53 = vsub.f32 %v682_v32, %v713_v52  ;;  %v715_v54 = vsub.f32 %v684_v33, %v713_v52  ;;  %v716_v55 = vsub.f32 %v686_v34, %v713_v52  ;;  %v717_v58 = vsub.f32 %v688_v36, %v713_v52 }
 0x324   :  { %v718_v60 = vmul.f32 %v714_v53, %v714_v53  ;;  %v719_v61 = vmul.f32 %v715_v54, %v715_v54  ;;  %v720_v62 = vmul.f32 %v716_v55, %v716_v55  ;;  %v721_v63 = vmul.f32 %v717_v58, %v717_v58 }
 0x326   :  { %v722_v0 = vadd.f32 %v720_v62, %v718_v60  ;;  %v729_v2 = vadd.f32 %v721_v63, %v719_v61 }
 0x328   :  { %v723_v3 = vrot.slane %v722_v0, 4  ;;  %v730_v4 = vrot.slane %v729_v2, 4 }
 0x32a   :  { %v724_v5 = vadd.f32 %v723_v3, %v722_v0  ;;  %v731_v6 = vadd.f32 %v730_v4, %v729_v2 }
 0x32c   :  { %v725_v7 = vrot.slane %v724_v5, 2  ;;  %v732_v8 = vrot.slane %v731_v6, 2 }
 0x32e   :  { %v726_v9 = vadd.f32 %v725_v7, %v724_v5  ;;  %v733_v10 = vadd.f32 %v732_v8, %v731_v6  ;;  %v6343_v5 = vld [vmem:[#allocation9 + $0x100] ss:$8 sps:$4 sm:$0xff]   ;;  %v6348_v7 = vld [vmem:[#allocation9 + $0x114] ss:$8 sps:$4 sm:$0xff]  }
 0x330   :  { %v727_v11 = vrot.slane %v726_v9, 1  ;;  %v734_v12 = vrot.slane %v733_v10, 1 }
 0x332   :  { %v728_v13 = vadd.f32 %v727_v11, %v726_v9  ;;  %v735_v14 = vadd.f32 %v734_v12, %v733_v10  ;;  %v6346_v9 = vld [vmem:[#allocation9 + $0x110] ss:$8 sps:$4 sm:$0xff]   ;;  %v6351_v10 = vld [vmem:[#allocation9 + $0x124] ss:$8 sps:$4 sm:$0xff]   ;;  %v6349_v11 = vld [vmem:[#allocation9 + $0x120] ss:$8 sps:$4 sm:$0xff]  }
 0x333   :  { %v6354_v12 = vld [vmem:[#allocation9 + $0x134] ss:$8 sps:$4 sm:$0xff]  }
 0x334   :  { %v736_v15 = vadd.f32 %v735_v14, %v728_v13  ;;  %v6352_v13 = vld [vmem:[#allocation9 + $0x130] ss:$8 sps:$4 sm:$0xff]   ;;  %v6357_v14 = vld [vmem:[#allocation9 + $0x144] ss:$8 sps:$4 sm:$0xff]  }
 0x336   :  { %v737_v16 = vmul.f32 0.03125, %v736_v15  ;;  %v6355_v15 = vld [vmem:[#allocation9 + $0x140] ss:$8 sps:$4 sm:$0xff]  }
 0x338   :  { %v738_v17 = vadd.f32 1e-05, %v737_v16  ;;  %v6360_v16 = vld [vmem:[#allocation9 + $0x154] ss:$8 sps:$4 sm:$0xff]  }
 0x33a   :  { %6903 = vrsqrt.f32 %v738_v17  ;;  %v6358_v17 = vld [vmem:[#allocation9 + $0x150] ss:$8 sps:$4 sm:$0xff]  }
 0x344   :  { %v6904_v19 = vpop.eup %6903 }
 0x345   :  { %v740_v20 = vmul.f32 %v6904_v19, %v691_v18  ;;  %v6363_v18 = vld [vmem:[#allocation9 + $0x164] ss:$8 sps:$4 sm:$0xff]   ;;  %v6361_v19 = vld [vmem:[#allocation9 + $0x160] ss:$8 sps:$4 sm:$0xff]  }
 0x347   :  { %v741_v22 = vmul.f32 %v740_v20, %v709_v51  ;;  %v746_v23 = vrot.slane %v740_v20, %v7186_v57  ;;  %v6366_v20 = vld [vmem:[#allocation9 + $0x174] ss:$8 sps:$4 sm:$0xff]  }
 0x349   :  { %v742_v24 = vsub.f32 %v692_v21, %v741_v22  ;;  %v747_v25 = vmul.f32 %v746_v23, %v682_v32  ;;  %v748_v26 = vmul.f32 %v746_v23, %v684_v33  ;;  %v749_v27 = vmul.f32 %v746_v23, %v686_v34  ;;  %v6364_v21 = vld [vmem:[#allocation9 + $0x170] ss:$8 sps:$4 sm:$0xff]   ;;  %v6369_v22 = vld [vmem:[#allocation9 + $0x184] ss:$8 sps:$4 sm:$0xff]  }
 0x34a   :  { %v750_v29 = vmul.f32 %v746_v23, %v688_v36  ;;  %v6367_v23 = vld [vmem:[#allocation9 + $0x180] ss:$8 sps:$4 sm:$0xff]  }
 0x34b   :  { %v754_v30 = vrot.slane %v742_v24, %v7186_v57  ;;  %v6372_v24 = vld [vmem:[#allocation9 + $0x194] ss:$8 sps:$4 sm:$0xff]  }
 0x34d   :  { %v755_v31 = vadd.f32 %v754_v30, %v747_v25  ;;  %v756_v35 = vadd.f32 %v754_v30, %v748_v26  ;;  %v757_v37 = vadd.f32 %v754_v30, %v749_v27  ;;  %v758_v38 = vadd.f32 %v754_v30, %v750_v29  ;;  %v6370_v25 = vld [vmem:[#allocation9 + $0x190] ss:$8 sps:$4 sm:$0xff]   ;;  %v6375_v26 = vld [vmem:[#allocation9 + $0x1a4] ss:$8 sps:$4 sm:$0xff]   ;;  %v6373_v27 = vld [vmem:[#allocation9 + $0x1a0] ss:$8 sps:$4 sm:$0xff]  }
 0x34e   :  { %v6378_v29 = vld [vmem:[#allocation9 + $0x1b4] ss:$8 sps:$4 sm:$0xff]   ;;  %v6376_v30 = vld [vmem:[#allocation9 + $0x1b0] ss:$8 sps:$4 sm:$0xff]  }
 0x34f   :  { %vm759_vm3 = vcmp.ge.f32.partialorder %v755_v31, 0.0  ;;  %vm760_vm4 = vcmp.ge.f32.partialorder %v756_v35, 0.0  ;;  %vm761_vm5 = vcmp.ge.f32.partialorder %v757_v37, 0.0  ;;  %vm762_vm6 = vcmp.ge.f32.partialorder %v758_v38, 0.0 }
 0x350   :  { %v763_v1 = vmul.f32 0.2, %v755_v31  ;;  %v764_v39 = vmul.f32 0.2, %v756_v35  ;;  %v765_v40 = vmul.f32 0.2, %v757_v37 }
 0x351   :  { %v766_v41 = vmul.f32 0.2, %v758_v38 }
 0x352   :  { %v767_v42 = vsel %vm759_vm3, %v755_v31, %v763_v1  ;;  %v768_v43 = vsel %vm760_vm4, %v756_v35, %v764_v39  ;;  %v769_v32 = vsel %vm761_vm5, %v757_v37, %v765_v40  ;;  %v6381_v31 = vld [vmem:[#allocation9 + $0x1c4] ss:$8 sps:$4 sm:$0xff]   ;;  %v6379_v35 = vld [vmem:[#allocation9 + $0x1c0] ss:$8 sps:$4 sm:$0xff]   ;;  %v6384_v37 = vld [vmem:[#allocation9 + $0x1d4] ss:$8 sps:$4 sm:$0xff]  }
 0x353   :  { %v770_v33 = vsel %vm762_vm6, %v758_v38, %v766_v41  ;;  %v771_v34 = vpack.c.bf16 %v769_v32, %v767_v42  ;;  %v6382_v38 = vld [vmem:[#allocation9 + $0x1d0] ss:$8 sps:$4 sm:$0xff]   ;;  %v6387_v1 = vld [vmem:[#allocation9 + $0x1e4] ss:$8 sps:$4 sm:$0xff]   ;;  %v6385_v39 = vld [vmem:[#allocation9 + $0x1e0] ss:$8 sps:$4 sm:$0xff]  }
 0x354   :  { %v7228_v36 = vpack.c.bf16 %v770_v33, %v768_v43  ;;  %v6390_v40 = vld [vmem:[#allocation9 + $0x1f4] ss:$8 sps:$4 sm:$0xff]   ;;  %v6388_v41 = vld [vmem:[#allocation9 + $0x1f0] ss:$8 sps:$4 sm:$0xff]   ;;  %vm1505_vm3 = vcmask 1043459   ;;  %vm1508_vm5 = vcmask 1047559  }
 0x355   :  { %v786_v44 = vshrl.u32 %v771_v34, 16  ;;  %v788_v45 = vshll.u32 %v771_v34, 16  ;;  %1233 = vmatprep.mubr.bf16.mxu0 %v771_v34  ;;  %v6393_v42 = vld [vmem:[#allocation11 + $0x4] ss:$16 sps:$4 sm:$0xff]   ;;  %v6396_v43 = vld [vmem:[#allocation11 + $0xc] ss:$16 sps:$4 sm:$0xff]  }
 0x356   :  { %v776_v46 = vshrl.u32 %v7228_v36, 16  ;;  %v779_v47 = vshll.u32 %v7228_v36, 16  ;;  %v6391_v32 = vld [vmem:[#allocation11] ss:$16 sps:$4 sm:$0xff]   ;;  %v6394_v33 = vld [vmem:[#allocation11 + $0x8] ss:$16 sps:$4 sm:$0xff]   ;;  %3152 = vmatprep.subr.bf16.mxu1 %v6393_v42 }
 0x357   :  { %v790_v48 = vrot.slane %v788_v45, 1  ;;  %v804_v50 = vrot.slane %v786_v44, 4  ;;  %v805_v51 = vrot.slane %v788_v45, 5  ;;  %3153 = vmatpush1.bf16.msra.mxu1 %v6391_v32  ;;  %v6399_v34 = vld [vmem:[#allocation11 + $0x24] ss:$16 sps:$4 sm:$0xff]  }
 0x358   :  { %v778_v52 = vrot.slane %v776_v46, 7  ;;  %v795_v53 = vrot.slane %v776_v46, 3  ;;  %v796_v54 = vrot.slane %v779_v47, 4  ;;  %v6397_v45 = vld [vmem:[#allocation11 + $0x20] ss:$16 sps:$4 sm:$0xff]   ;;  %3154 = vmatprep.subr.bf16.mxu1 %v6399_v34 }
 0x359   :  { %v791_v55 = vor.u32 %v790_v48, %v786_v44  ;;  %v806_v58 = vor.u32 %v805_v51, %v804_v50  ;;  %v6402_v44 = vld [vmem:[#allocation11 + $0x2c] ss:$16 sps:$4 sm:$0xff]   ;;  %v6400_v46 = vld [vmem:[#allocation11 + $0x28] ss:$16 sps:$4 sm:$0xff]   ;;  %v6403_v50 = vld [vmem:[#allocation11 + $0x40] ss:$16 sps:$4 sm:$0xff]  }
 0x35a   :  { %v781_v60 = vor.u32 %v779_v47, %v778_v52  ;;  %v797_v61 = vor.u32 %v796_v54, %v795_v53  ;;  %v6405_v47 = vld [vmem:[#allocation11 + $0x44] ss:$16 sps:$4 sm:$0xff]   ;;  %v6408_v48 = vld [vmem:[#allocation11 + $0x4c] ss:$16 sps:$4 sm:$0xff]   ;;  %v6409_v53 = vld [vmem:[#allocation11 + $0x60] ss:$16 sps:$4 sm:$0xff]  }
 0x35b   :  { %v793_v62 = vsel %vm7198_vm11, %v791_v55, 0  ;;  %v808_v63 = vsel %vm7198_vm11, %v806_v58, 0  ;;  %3155 = vmatpush1.bf16.msra.mxu1 %v6397_v45  ;;  %v6411_v51 = vld [vmem:[#allocation11 + $0x64] ss:$16 sps:$4 sm:$0xff]   ;;  %v6414_v52 = vld [vmem:[#allocation11 + $0x6c] ss:$16 sps:$4 sm:$0xff]  }
 0x35c   :  { %v783_v0 = vsel %vm7211_vm14, 0, %v781_v60  ;;  %v799_v2 = vsel %vm7211_vm14, 0, %v797_v61  ;;  %794 = vst [vmem:[#allocation4 + $0x18] sm:$0xf] %v793_v62  ;;  %v810_v3 = vrot.slane %v808_v63, 4  ;;  %3156 = vmatprep.subr.bf16.mxu1 %v6405_v47 }
 0x35d   :  { %784 = vst [vmem:[#allocation4] sm:$0xf] %v783_v0  ;;  %v801_v4 = vrot.slane %v799_v2, 4  ;;  %v6412_v54 = vld [vmem:[#allocation11 + $0x68] ss:$16 sps:$4 sm:$0xff]  }
 0x35e   :  { %812 = vst [vmem:[#allocation4 + $0x18] sm:$0xf0] %v810_v3  ;;  %v6417_v55 = vld [vmem:[#allocation11 + $0x84] ss:$16 sps:$4 sm:$0xff]   ;;  %v6420_v58 = vld [vmem:[#allocation11 + $0x8c] ss:$16 sps:$4 sm:$0xff]  }
 0x35f   :  { %803 = vst [vmem:[#allocation4] sm:$0xf0] %v801_v4  ;;  %3157 = vmatpush1.bf16.msra.mxu1 %v6403_v50  ;;  %v6415_v60 = vld [vmem:[#allocation11 + $0x80] ss:$16 sps:$4 sm:$0xff]   ;;  %v6418_v61 = vld [vmem:[#allocation11 + $0x88] ss:$16 sps:$4 sm:$0xff]  }
 0x360   :  { %3158 = vmatprep.subr.bf16.mxu1 %v6411_v51  ;;  %v6423_v62 = vld [vmem:[#allocation11 + $0xa4] ss:$16 sps:$4 sm:$0xff]   ;;  %v6426_v63 = vld [vmem:[#allocation11 + $0xac] ss:$16 sps:$4 sm:$0xff]   ;;  %v6421_v0 = vld [vmem:[#allocation11 + $0xa0] ss:$16 sps:$4 sm:$0xff]  }
 0x361   :  { %v6424_v2 = vld [vmem:[#allocation11 + $0xa8] ss:$16 sps:$4 sm:$0xff]   ;;  %v6429_v3 = vld [vmem:[#allocation11 + $0xc4] ss:$16 sps:$4 sm:$0xff]   ;;  %v6432_v4 = vld [vmem:[#allocation11 + $0xcc] ss:$16 sps:$4 sm:$0xff]  }
 0x362   :  { %v6478_v42 = vld [vmem:[#allocation11 + $0x1c8] ss:$16 sps:$4 sm:$0xff]   ;;  %v6486_v32 = vld [vmem:[#allocation11 + $0x1ec] ss:$16 sps:$4 sm:$0xff]   ;;  %vm1506_vm4 = vsmask.f32 7950 }
 0x363   :  { %3159 = vmatpush1.bf16.msra.mxu1 %v6409_v53  ;;  %v6484_v34 = vld [vmem:[#allocation11 + $0x1e8] ss:$16 sps:$4 sm:$0xff]   ;;  %v6492_v45 = vld [vmem:[#allocation11 + $0x20c] ss:$16 sps:$4 sm:$0xff]   ;;  %vm1509_vm6 = vsmask.f32 7966  ;;  %vm7296_vm11 = vmand %vm1505_vm3, %vm1506_vm4 }
 0x364   :  { %3160 = vmatprep.subr.bf16.mxu1 %v6417_v55  ;;  %vm7303_vm7 = vmand %vm1508_vm5, %vm1509_vm6  ;;  %vm3831_vm6 = vsmask.f32 2304 }
 0x365   :  { %v816_v6 = vld [vmem:[#allocation4 + $0x18] sm:$0xff]  ;;  %vm7321_vm8 = vmor %vm7303_vm7, %vm7296_vm11  ;;  %vm3891_vm11 = vsmask.f32 7440 }
 0x366   :  { %v813_v8 = vld [vmem:[#allocation4] sm:$0xff]  ;;  %vm7497_vm7 = vmand %vm1464_vm1, %vm3831_vm6 }
 0x367   :  { %1234 = vmatmul.mubr.bf16.vlgmr.msra.gmra.mrb[4].mxu0 %v813_v8  ;;  %3161 = vmatpush1.bf16.msra.mxu1 %v6415_v60  ;;  %v6438_v8 = vld [vmem:[#allocation11 + $0xec] ss:$16 sps:$4 sm:$0xff]  }
 0x368   :  { %1245 = vmatpush1.bf16.msra.mxu0 %v6343_v5  ;;  %1276 = vmatprep.mubr.bf16.mxu0 %v816_v6  ;;  %v6427_v5 = vld [vmem:[#allocation11 + $0xc0] ss:$16 sps:$4 sm:$0xff]   ;;  %v6430_v6 = vld [vmem:[#allocation11 + $0xc8] ss:$16 sps:$4 sm:$0xff]  }
 0x369   :  { %1246 = vmatprep.subr.bf16.mxu0 %v6348_v7  ;;  %3162 = vmatprep.subr.bf16.mxu1 %v6423_v62  ;;  %v6435_v7 = vld [vmem:[#allocation11 + $0xe4] ss:$16 sps:$4 sm:$0xff]  }
 0x36b   :  { %3163 = vmatpush1.bf16.msra.mxu1 %v6421_v0 }
 0x36c   :  { %1247 = vmatpush1.bf16.msra.mxu0 %v6346_v9  ;;  %3164 = vmatprep.subr.bf16.mxu1 %v6429_v3  ;;  %v6433_v9 = vld [vmem:[#allocation11 + $0xe0] ss:$16 sps:$4 sm:$0xff]  }
 0x36d   :  { %1248 = vmatprep.subr.bf16.mxu0 %v6351_v10  ;;  %v6436_v10 = vld [vmem:[#allocation11 + $0xe8] ss:$16 sps:$4 sm:$0xff]  }
 0x36f   :  { %3165 = vmatpush1.bf16.msra.mxu1 %v6427_v5 }
 0x370   :  { %1249 = vmatpush1.bf16.msra.mxu0 %v6349_v11  ;;  %3166 = vmatprep.subr.bf16.mxu1 %v6435_v7  ;;  %v6441_v11 = vld [vmem:[#allocation11 + $0x104] ss:$16 sps:$4 sm:$0xff]  }
 0x371   :  { %1250 = vmatprep.subr.bf16.mxu0 %v6354_v12  ;;  %v6444_v12 = vld [vmem:[#allocation11 + $0x10c] ss:$16 sps:$4 sm:$0xff]  }
 0x373   :  { %3167 = vmatpush1.bf16.msra.mxu1 %v6433_v9 }
 0x374   :  { %1251 = vmatpush1.bf16.msra.mxu0 %v6352_v13  ;;  %v6439_v13 = vld [vmem:[#allocation11 + $0x100] ss:$16 sps:$4 sm:$0xff]   ;;  %3168 = vmatprep.subr.bf16.mxu1 %v6441_v11 }
 0x375   :  { %1252 = vmatprep.subr.bf16.mxu0 %v6357_v14  ;;  %v6442_v14 = vld [vmem:[#allocation11 + $0x108] ss:$16 sps:$4 sm:$0xff]  }
 0x377   :  { %3169 = vmatpush1.bf16.msra.mxu1 %v6439_v13 }
 0x378   :  { %1253 = vmatpush1.bf16.msra.mxu0 %v6355_v15  ;;  %v6447_v15 = vld [vmem:[#allocation11 + $0x124] ss:$16 sps:$4 sm:$0xff]  }
 0x379   :  { %1254 = vmatprep.subr.bf16.mxu0 %v6360_v16  ;;  %v6450_v16 = vld [vmem:[#allocation11 + $0x12c] ss:$16 sps:$4 sm:$0xff]   ;;  %3170 = vmatprep.subr.bf16.mxu1 %v6447_v15 }
 0x37c   :  { %1255 = vmatpush1.bf16.msra.mxu0 %v6358_v17  ;;  %v6445_v17 = vld [vmem:[#allocation11 + $0x120] ss:$16 sps:$4 sm:$0xff]  }
 0x37d   :  { %1256 = vmatprep.subr.bf16.mxu0 %v6363_v18  ;;  %v6448_v18 = vld [vmem:[#allocation11 + $0x128] ss:$16 sps:$4 sm:$0xff]   ;;  %3171 = vmatpush1.bf16.msra.mxu1 %v6445_v17 }
 0x380   :  { %1257 = vmatpush1.bf16.msra.mxu0 %v6361_v19  ;;  %v6453_v19 = vld [vmem:[#allocation11 + $0x144] ss:$16 sps:$4 sm:$0xff]  }
 0x381   :  { %1258 = vmatprep.subr.bf16.mxu0 %v6366_v20  ;;  %v6456_v20 = vld [vmem:[#allocation11 + $0x14c] ss:$16 sps:$4 sm:$0xff]   ;;  %3172 = vmatprep.subr.bf16.mxu1 %v6453_v19 }
 0x384   :  { %1259 = vmatpush1.bf16.msra.mxu0 %v6364_v21  ;;  %v6451_v21 = vld [vmem:[#allocation11 + $0x140] ss:$16 sps:$4 sm:$0xff]  }
 0x385   :  { %1260 = vmatprep.subr.bf16.mxu0 %v6369_v22  ;;  %v6454_v22 = vld [vmem:[#allocation11 + $0x148] ss:$16 sps:$4 sm:$0xff]   ;;  %3173 = vmatpush1.bf16.msra.mxu1 %v6451_v21 }
 0x388   :  { %1261 = vmatpush1.bf16.msra.mxu0 %v6367_v23  ;;  %v6459_v23 = vld [vmem:[#allocation11 + $0x164] ss:$16 sps:$4 sm:$0xff]  }
 0x389   :  { %1262 = vmatprep.subr.bf16.mxu0 %v6372_v24  ;;  %v6462_v24 = vld [vmem:[#allocation11 + $0x16c] ss:$16 sps:$4 sm:$0xff]   ;;  %3174 = vmatprep.subr.bf16.mxu1 %v6459_v23 }
 0x38c   :  { %1263 = vmatpush1.bf16.msra.mxu0 %v6370_v25  ;;  %v6457_v25 = vld [vmem:[#allocation11 + $0x160] ss:$16 sps:$4 sm:$0xff]  }
 0x38d   :  { %1264 = vmatprep.subr.bf16.mxu0 %v6375_v26  ;;  %v6460_v26 = vld [vmem:[#allocation11 + $0x168] ss:$16 sps:$4 sm:$0xff]   ;;  %3175 = vmatpush1.bf16.msra.mxu1 %v6457_v25 }
 0x390   :  { %1265 = vmatpush1.bf16.msra.mxu0 %v6373_v27  ;;  %v6465_v27 = vld [vmem:[#allocation11 + $0x184] ss:$16 sps:$4 sm:$0xff]  }
 0x391   :  { %1266 = vmatprep.subr.bf16.mxu0 %v6378_v29  ;;  %v6468_v29 = vld [vmem:[#allocation11 + $0x18c] ss:$16 sps:$4 sm:$0xff]   ;;  %3176 = vmatprep.subr.bf16.mxu1 %v6465_v27 }
 0x394   :  { %1267 = vmatpush1.bf16.msra.mxu0 %v6376_v30  ;;  %v6463_v30 = vld [vmem:[#allocation11 + $0x180] ss:$16 sps:$4 sm:$0xff]  }
 0x395   :  { %1268 = vmatprep.subr.bf16.mxu0 %v6381_v31  ;;  %v6466_v31 = vld [vmem:[#allocation11 + $0x188] ss:$16 sps:$4 sm:$0xff]   ;;  %3177 = vmatpush1.bf16.msra.mxu1 %v6463_v30 }
 0x398   :  { %1269 = vmatpush1.bf16.msra.mxu0 %v6379_v35  ;;  %v6471_v35 = vld [vmem:[#allocation11 + $0x1a4] ss:$16 sps:$4 sm:$0xff]  }
 0x399   :  { %1270 = vmatprep.subr.bf16.mxu0 %v6384_v37  ;;  %v6469_v37 = vld [vmem:[#allocation11 + $0x1a0] ss:$16 sps:$4 sm:$0xff]   ;;  %3178 = vmatprep.subr.bf16.mxu1 %v6471_v35 }
 0x39a   :  { %3179 = vmatpush1.bf16.msra.mxu1 %v6469_v37  ;;  %v1287_v37 = vld [vmem:[%s7625_s7] sm:$0x3] }
 0x39c   :  { %1271 = vmatpush1.bf16.msra.mxu0 %v6382_v38  ;;  %v6472_v38 = vld [vmem:[#allocation11 + $0x1a8] ss:$16 sps:$4 sm:$0xff]  }
 0x39d   :  { %1272 = vmatprep.subr.bf16.mxu0 %v6387_v1  ;;  %v6474_v1 = vld [vmem:[#allocation11 + $0x1ac] ss:$16 sps:$4 sm:$0xff]  }
 0x3a0   :  { %1273 = vmatpush1.bf16.msra.mxu0 %v6385_v39  ;;  %v6477_v39 = vld [vmem:[#allocation11 + $0x1c4] ss:$16 sps:$4 sm:$0xff]  }
 0x3a1   :  { %1274 = vmatprep.subr.bf16.mxu0 %v6390_v40  ;;  %v6480_v40 = vld [vmem:[#allocation11 + $0x1cc] ss:$16 sps:$4 sm:$0xff]   ;;  %3180 = vmatprep.subr.bf16.mxu1 %v6477_v39  ;;  %v1338_v39 = vrot.slane %v1287_v37, %v7186_v57 }
 0x3a4   :  { %1275 = vmatpush1.bf16.msra.mxu0 %v6388_v41  ;;  %v6475_v41 = vld [vmem:[#allocation11 + $0x1c0] ss:$16 sps:$4 sm:$0xff]  }
 0x3a5   :  { %3324 = vmatprep.subr.bf16.mxu0 %v6396_v43  ;;  %v6483_v43 = vld [vmem:[#allocation11 + $0x1e4] ss:$16 sps:$4 sm:$0xff]   ;;  %3181 = vmatpush1.bf16.msra.mxu1 %v6475_v41 }
 0x3a6   :  { %3182 = vmatprep.subr.bf16.mxu1 %v6483_v43 }
 0x3a7   :  { %1277 = vmatmul.mubr.bf16.vlgmr.msra.gmra.mrb[4].mxu0 %v7228_v36  ;;  %v6406_v36 = vld [vmem:[#allocation11 + $0x48] ss:$16 sps:$4 sm:$0xff]  }
 0x3a8   :  { %3325 = vmatpush1.bf16.msra.mxu0 %v6394_v33  ;;  %v6481_v33 = vld [vmem:[#allocation11 + $0x1e0] ss:$16 sps:$4 sm:$0xff]  }
 0x3a9   :  { %3326 = vmatprep.subr.bf16.mxu0 %v6402_v44  ;;  %v6489_v44 = vld [vmem:[#allocation11 + $0x204] ss:$16 sps:$4 sm:$0xff]   ;;  %3183 = vmatpush1.bf16.msra.mxu1 %v6481_v33 }
 0x3aa   :  { %3195 = vmatprep.subr.bf16.mxu1 %v6489_v44 }
 0x3ac   :  { %3327 = vmatpush1.bf16.msra.mxu0 %v6400_v46 }
 0x3ad   :  { %3328 = vmatprep.subr.bf16.mxu0 %v6408_v48 }
 0x3b0   :  { %3329 = vmatpush1.bf16.msra.mxu0 %v6406_v36 }
 0x3b1   :  { %3330 = vmatprep.subr.bf16.mxu0 %v6414_v52 }
 0x3b4   :  { %3331 = vmatpush1.bf16.msra.mxu0 %v6412_v54 }
 0x3b5   :  { %3332 = vmatprep.subr.bf16.mxu0 %v6420_v58 }
 0x3b8   :  { %3333 = vmatpush1.bf16.msra.mxu0 %v6418_v61 }
 0x3b9   :  { %3334 = vmatprep.subr.bf16.mxu0 %v6426_v63 }
 0x3bc   :  { %3335 = vmatpush1.bf16.msra.mxu0 %v6424_v2 }
 0x3bd   :  { %3336 = vmatprep.subr.bf16.mxu0 %v6432_v4 }
 0x3c0   :  { %3337 = vmatpush1.bf16.msra.mxu0 %v6430_v6 }
 0x3c1   :  { %3338 = vmatprep.subr.bf16.mxu0 %v6438_v8 }
 0x3c4   :  { %3339 = vmatpush1.bf16.msra.mxu0 %v6436_v10 }
 0x3c5   :  { %3340 = vmatprep.subr.bf16.mxu0 %v6444_v12 }
 0x3c8   :  { %3341 = vmatpush1.bf16.msra.mxu0 %v6442_v14 }
 0x3c9   :  { %3342 = vmatprep.subr.bf16.mxu0 %v6450_v16 }
 0x3cc   :  { %3343 = vmatpush1.bf16.msra.mxu0 %v6448_v18 }
 0x3cd   :  { %3344 = vmatprep.subr.bf16.mxu0 %v6456_v20 }
 0x3d0   :  { %3345 = vmatpush1.bf16.msra.mxu0 %v6454_v22 }
 0x3d1   :  { %3346 = vmatprep.subr.bf16.mxu0 %v6462_v24 }
 0x3d4   :  { %3347 = vmatpush1.bf16.msra.mxu0 %v6460_v26 }
 0x3d5   :  { %3348 = vmatprep.subr.bf16.mxu0 %v6468_v29 }
 0x3d8   :  { %3349 = vmatpush1.bf16.msra.mxu0 %v6466_v31 }
 0x3d9   :  { %3350 = vmatprep.subr.bf16.mxu0 %v6474_v1 }
 0x3dc   :  { %3351 = vmatpush1.bf16.msra.mxu0 %v6472_v38  ;;  %v7022_v38 = vmov 1966171168  }
 0x3dd   :  { %3352 = vmatprep.subr.bf16.mxu0 %v6480_v40  ;;  %v1353_v1 = vunpack.c.l.s4 %v7022_v38  ;;  %v1342_v40 = vrot.slane %v1287_v37, %v7192_v59 }
 0x3e0   :  { %3353 = vmatpush1.bf16.msra.mxu0 %v6478_v42  ;;  %v1354_v42 = vunpack.c.0.s8 %v1353_v1 }
 0x3e1   :  { %3354 = vmatprep.subr.bf16.mxu0 %v6486_v32 }
 0x3e4   :  { %3355 = vmatpush1.bf16.msra.mxu0 %v6484_v34 }
 0x3e5   :  { %3367 = vmatprep.subr.bf16.mxu0 %v6492_v45 }
 0x47a   :  { %v7241_v46 = vpop.f32.mrb[4].mxu0 }
 0x47b   :  { %v7243_v47 = vpop.f32.mrb[5].mxu0 }
 0x47c   :  { %v1282_v48 = vpop.f32.mrb[6].mxu0 }
 0x47d   :  { %v1289_v50 = vadd.f32 %v1282_v48, %v7241_v46  ;;  %v7246_v36 = vpop.f32.mrb[7].mxu0 }
 0x47e   :  { %v1296_v51 = vadd.f32 %v7246_v36, %v7243_v47 }
 0x47f   :  { %v1290_v52 = vrot.slane %v1289_v50, 4 }
 0x480   :  { %v1297_v53 = vrot.slane %v1296_v51, 4 }
 0x481   :  { %v1291_v54 = vadd.f32 %v1290_v52, %v1289_v50  ;;  %v7260_v50 = vsub.s32 %v1354_v42, %v7183_v56 }
 0x482   :  { %v1298_v55 = vadd.f32 %v1297_v53, %v1296_v51 }
 0x483   :  { %v1292_v58 = vrot.slane %v1291_v54, 2 }
 0x484   :  { %v1299_v60 = vrot.slane %v1298_v55, 2 }
 0x485   :  { %v1293_v61 = vadd.f32 %v1292_v58, %v1291_v54 }
 0x486   :  { %v1300_v62 = vadd.f32 %v1299_v60, %v1298_v55 }
 0x487   :  { %v1294_v63 = vrot.slane %v1293_v61, 1 }
 0x488   :  { %v1301_v0 = vrot.slane %v1300_v62, 1 }
 0x489   :  { %v1295_v2 = vadd.f32 %v1294_v63, %v1293_v61  ;;  %v1288_v61 = vld [vmem:[%s7626_s8] sm:$0x3] }
 0x48a   :  { %v1302_v3 = vadd.f32 %v1301_v0, %v1300_v62 }
 0x48b   :  { %v1304_v4 = vmul.f32 0.0625, %v1295_v2 }
 0x48c   :  { %v1305_v5 = vmul.f32 0.0625, %v1302_v3 }
 0x48d   :  { %v1306_v6 = vsub.f32 %v7241_v46, %v1304_v4  ;;  %v1308_v7 = vsub.f32 %v1282_v48, %v1304_v4 }
 0x48e   :  { %v1307_v8 = vsub.f32 %v7243_v47, %v1305_v5  ;;  %v1309_v9 = vsub.f32 %v7246_v36, %v1305_v5 }
 0x48f   :  { %v1310_v10 = vmul.f32 %v1306_v6, %v1306_v6  ;;  %v1312_v11 = vmul.f32 %v1308_v7, %v1308_v7 }
 0x490   :  { %v1311_v12 = vmul.f32 %v1307_v8, %v1307_v8  ;;  %v1313_v13 = vmul.f32 %v1309_v9, %v1309_v9 }
 0x491   :  { %v1314_v14 = vadd.f32 %v1312_v11, %v1310_v10  ;;  %v1446_v11 = vld [vmem:[#allocation5 + $0x8] sm:$0xff] }
 0x492   :  { %v1321_v15 = vadd.f32 %v1313_v13, %v1311_v12 }
 0x493   :  { %v1315_v16 = vrot.slane %v1314_v14, 4 }
 0x494   :  { %v1322_v17 = vrot.slane %v1321_v15, 4 }
 0x495   :  { %v1316_v18 = vadd.f32 %v1315_v16, %v1314_v14 }
 0x496   :  { %v1323_v19 = vadd.f32 %v1322_v17, %v1321_v15 }
 0x497   :  { %v1317_v20 = vrot.slane %v1316_v18, 2 }
 0x498   :  { %v1324_v21 = vrot.slane %v1323_v19, 2 }
 0x499   :  { %v1318_v22 = vadd.f32 %v1317_v20, %v1316_v18 }
 0x49a   :  { %v1325_v23 = vadd.f32 %v1324_v21, %v1323_v19 }
 0x49b   :  { %v1319_v24 = vrot.slane %v1318_v22, 1 }
 0x49c   :  { %v1326_v25 = vrot.slane %v1325_v23, 1 }
 0x49d   :  { %v1320_v26 = vadd.f32 %v1319_v24, %v1318_v22 }
 0x49e   :  { %v1327_v27 = vadd.f32 %v1326_v25, %v1325_v23 }
 0x49f   :  { %v1328_v29 = vmul.f32 0.0625, %v1320_v26 }
 0x4a0   :  { %v1329_v30 = vmul.f32 0.0625, %v1327_v27 }
 0x4a1   :  { %v1330_v31 = vadd.f32 1e-05, %v1328_v29 }
 0x4a2   :  { %v1331_v35 = vadd.f32 1e-05, %v1329_v30 }
 0x4a3   :  { %6905 = vrsqrt.f32 %v1330_v31 }
 0x4a4   :  { %6907 = vrsqrt.f32 %v1331_v35 }
 0x4ad   :  { %v6906_v41 = vpop.eup %6905 }
 0x4ae   :  { %v6908_v43 = vpop.eup %6907  ;;  %v1345_v32 = vmul.f32 %v6906_v41, %v1338_v39  ;;  %v1476_v39 = vld [vmem:[#allocation5 + $0x18] sm:$0xff] }
 0x4af   :  { %v1346_v33 = vmul.f32 %v6908_v43, %v1342_v40 }
 0x4b0   :  { %v1347_v34 = vmul.f32 %v1345_v32, %v1304_v4  ;;  %v1371_v44 = vrot.slane %v1345_v32, %v7186_v57 }
 0x4b1   :  { %v1348_v45 = vmul.f32 %v1346_v33, %v1305_v5  ;;  %v1375_v51 = vrot.slane %v1346_v33, %v7186_v57 }
 0x4b2   :  { %v1376_v52 = vmul.f32 %v1371_v44, %v7241_v46  ;;  %v1378_v53 = vmul.f32 %v1371_v44, %v1282_v48 }
 0x4b3   :  { %v1351_v54 = vcombine.low %v1347_v34, %v1348_v45  ;;  %v1377_v55 = vmul.f32 %v1375_v51, %v7243_v47  ;;  %v1379_v58 = vmul.f32 %v1375_v51, %v7246_v36  ;;  %v1459_v45 = vld [vmem:[#allocation5 + $0x10] sm:$0xff] }
 0x4b5   :  { %v1358_v60 = vrot.slane %v1351_v54, %v7260_v50 }
 0x4b7   :  { %v1365_v62 = vrot.slane %v1358_v60, %v7260_v50 }
 0x4b9   :  { %v1367_v63 = vsub.f32 %v1288_v61, %v1365_v62  ;;  %v6516_v62 = vld [vmem:[#allocation11 + $0x28c] ss:$16 sps:$4 sm:$0xff]  }
 0x4bb   :  { %v1384_v0 = vrot.slane %v1367_v63, %v7186_v57  ;;  %v1388_v2 = vrot.slane %v1367_v63, %v7192_v59 }
 0x4bd   :  { %v1391_v46 = vadd.f32 %v1384_v0, %v1376_v52  ;;  %v1392_v48 = vadd.f32 %v1388_v2, %v1377_v55  ;;  %v1393_v47 = vadd.f32 %v1384_v0, %v1378_v53  ;;  %v1394_v3 = vadd.f32 %v1388_v2, %v1379_v58  ;;  %v1437_v55 = vld [vmem:[#allocation5] sm:$0xff] }
 0x4bf   :  { %vm1395_vm12 = vcmp.ge.f32.partialorder %v1391_v46, 0.0  ;;  %vm1396_vm13 = vcmp.ge.f32.partialorder %v1392_v48, 0.0  ;;  %vm1397_vm15 = vcmp.ge.f32.partialorder %v1393_v47, 0.0  ;;  %vm1398_vm0 = vcmp.ge.f32.partialorder %v1394_v3, 0.0 }
 0x4c0   :  { %v1399_v36 = vmul.f32 0.2, %v1391_v46  ;;  %v1400_v4 = vmul.f32 0.2, %v1392_v48  ;;  %v1401_v5 = vmul.f32 0.2, %v1393_v47 }
 0x4c1   :  { %v1402_v6 = vmul.f32 0.2, %v1394_v3 }
 0x4c2   :  { %v1403_v8 = vsel %vm1395_vm12, %v1391_v46, %v1399_v36  ;;  %v1404_v9 = vsel %vm1396_vm13, %v1392_v48, %v1400_v4  ;;  %v1405_v10 = vsel %vm1397_vm15, %v1393_v47, %v1401_v5 }
 0x4c3   :  { %v1406_v12 = vsel %vm1398_vm0, %v1394_v3, %v1402_v6  ;;  %v7279_v13 = vpack.c.bf16 %v1405_v10, %v1403_v8  ;;  %v5988_v14 = vpack.c.bf16 %v1404_v9, %v1403_v8 }
 0x4c4   :  { %v7281_v15 = vpack.c.bf16 %v1406_v12, %v1404_v9  ;;  %v7283_v16 = vpack.c.bf16 %v1406_v12, %v1405_v10 }
 0x4c5   :  { %v1410_v28 = vshrl.u32 %v7279_v13, 16  ;;  %v1413_v17 = vshll.u32 %v7279_v13, 16  ;;  %v1447_v18 = vsel %vm7275_vm2, %v5988_v14, %v1446_v11  ;;  %v1450_v19 = vshrl.u32 %v5988_v14, 16 }
 0x4c6   :  { %v1417_v20 = vshrl.u32 %v7281_v15, 16  ;;  %v1420_v21 = vshll.u32 %v7281_v15, 16  ;;  %1448 = vst [vmem:[#allocation5 + $0x8] sm:$0xff] %v1447_v18  ;;  %v1453_v22 = vshll.u32 %v5988_v14, 16  ;;  %v1462_v23 = vrot.slane %v7279_v13, 1 }
 0x4c7   :  { %v1412_v24 = vrot.slane %v1410_v28, 7  ;;  %v1452_v25 = vrot.slane %v1450_v19, 4  ;;  %v1463_v26 = vrot.slane %v7281_v15, 1  ;;  %v1479_v27 = vrot.slane %v1410_v28, 3 }
 0x4c8   :  { %v1419_v29 = vrot.slane %v1417_v20, 7  ;;  %v1455_v30 = vrot.slane %v1453_v22, 5  ;;  %v1467_v31 = vsel %vm1464_vm1, %v1462_v23, 0  ;;  %v1480_v35 = vrot.slane %v1413_v17, 4 }
 0x4c9   :  { %v1415_v38 = vor.u32 %v1413_v17, %v1412_v24  ;;  %v1469_v1 = vsel %vm1464_vm1, %v1463_v26, 0  ;;  %v1482_v40 = vrot.slane %v1417_v20, 3  ;;  %v1483_v41 = vrot.slane %v1420_v21, 4 }
 0x4ca   :  { %v1422_v43 = vor.u32 %v1420_v21, %v1419_v29  ;;  %v1456_v32 = vor.u32 %v1455_v30, %v1452_v25  ;;  %v5563_v33 = vcombine.low %v1467_v31, %v1469_v1  ;;  %v1481_v34 = vor.u32 %v1480_v35, %v1479_v27 }
 0x4cb   :  { %v1425_v44 = vsel %vm7211_vm14, 0, %v1415_v38  ;;  %v1484_v51 = vor.u32 %v1483_v41, %v1482_v40  ;;  %v1520_v52 = vshll.u32 %v7283_v16, 16  ;;  %v1523_v53 = vshrl.u32 %v7283_v16, 16  ;;  %v6490_v40 = vld [vmem:[#allocation11 + $0x208] ss:$16 sps:$4 sm:$0xff]  }
 0x4cc   :  { %v1426_v54 = vsel %vm7211_vm14, 0, %v1422_v43  ;;  %v1457_v58 = vrot.slane %v1456_v32, 4  ;;  %v1477_v60 = vsel %vm7275_vm2, %v5563_v33, %v1476_v39  ;;  %v1487_v61 = vsel %vm7211_vm14, 0, %v1481_v34  ;;  %v6487_v39 = vld [vmem:[#allocation11 + $0x200] ss:$16 sps:$4 sm:$0xff]  }
 0x4cd   :  { %v5561_v63 = vcombine.low %v1425_v44, %v1426_v54  ;;  %1478 = vst [vmem:[#allocation5 + $0x18] sm:$0xff] %v1477_v60  ;;  %v1488_v0 = vsel %vm7211_vm14, 0, %v1484_v51  ;;  %v1522_v2 = vrot.slane %v1520_v52, 5  ;;  %v1525_v46 = vrot.slane %v1523_v53, 4  ;;  %v1530_v48 = vld [vmem:[#allocation5 + $0x8] sm:$0x88] }
 0x4ce   :  { %v1460_v47 = vsel %vm7275_vm2, %v1457_v58, %v1459_v45  ;;  %v5564_v3 = vcombine.low %v1487_v61, %v1488_v0  ;;  %v1534_v36 = vrot.slane %v7283_v16, 5  ;;  %v1542_v4 = vrot.slane %v7279_v13, 5  ;;  %v6495_v43 = vld [vmem:[#allocation11 + $0x224] ss:$16 sps:$4 sm:$0xff]   ;;  %v6498_v32 = vld [vmem:[#allocation11 + $0x22c] ss:$16 sps:$4 sm:$0xff]  }
 0x4cf   :  { %v1438_v5 = vsel %vm7275_vm2, %v5561_v63, %v1437_v55  ;;  %1461 = vst [vmem:[#allocation5 + $0x10] sm:$0xff] %v1460_v47  ;;  %v1526_v6 = vor.u32 %v1525_v46, %v1522_v2  ;;  %v1531_v8 = vsel %vm7321_vm8, %v1522_v2, %v1530_v48  ;;  %v1543_v9 = vrot.slane %v7281_v15, 5  ;;  %v6493_v34 = vld [vmem:[#allocation11 + $0x220] ss:$16 sps:$4 sm:$0xff]   ;;  %v6496_v44 = vld [vmem:[#allocation11 + $0x228] ss:$16 sps:$4 sm:$0xff]  }
 0x4d0   :  { %1439 = vst [vmem:[#allocation5] sm:$0xff] %v1438_v5  ;;  %v1495_v10 = vshll.u32 %v5564_v3, 16  ;;  %v1498_v11 = vshrl.u32 %v5564_v3, 16  ;;  %1532 = vst [vmem:[#allocation5 + $0x8] sm:$0x88] %v1531_v8  ;;  %v1535_v12 = vrot.slane %v1534_v36, 4 }
 0x4d1   :  { %v1545_v14 = vsel %vm1464_vm1, %v1542_v4, 0  ;;  %v1527_v16 = vrot.slane %v1526_v6, 4  ;;  %v1547_v13 = vsel %vm1464_vm1, %v1543_v9, 0  ;;  %v6501_v45 = vld [vmem:[#allocation11 + $0x244] ss:$16 sps:$4 sm:$0xff]   ;;  %vm7529_vm1 = vmor %vm281_vm10, %vm3891_vm11 }
 0x4d2   :  { %v1497_v28 = vrot.slane %v1495_v10, 5  ;;  %v1500_v7 = vrot.slane %v1498_v11, 4  ;;  %1541 = vst [vmem:[#allocation5 + $0x30] sm:$0x77] %v1535_v12  ;;  %v5566_v17 = vcombine.low %v1545_v14, %v1547_v13  ;;  %v6504_v51 = vld [vmem:[#allocation11 + $0x24c] ss:$16 sps:$4 sm:$0xff]  }
 0x4d3   :  { %1533 = vst [vmem:[#allocation5 + $0x28] sm:$0x77] %v1527_v16  ;;  %v6499_v52 = vld [vmem:[#allocation11 + $0x240] ss:$16 sps:$4 sm:$0xff]   ;;  %v6502_v53 = vld [vmem:[#allocation11 + $0x248] ss:$16 sps:$4 sm:$0xff]  }
 0x4d4   :  { %v1501_v18 = vor.u32 %v1500_v7, %v1497_v28  ;;  %v1554_v19 = vshll.u32 %v5566_v17, 16  ;;  %v1557_v20 = vshrl.u32 %v5566_v17, 16  ;;  %v1564_v21 = vld [vmem:[#allocation5 + $0x18] sm:$0x88]  ;;  %v6507_v54 = vld [vmem:[#allocation11 + $0x264] ss:$16 sps:$4 sm:$0xff]  }
 0x4d5   :  { %v6510_v55 = vld [vmem:[#allocation11 + $0x26c] ss:$16 sps:$4 sm:$0xff]   ;;  %v6505_v58 = vld [vmem:[#allocation11 + $0x260] ss:$16 sps:$4 sm:$0xff]   ;;  %v6508_v60 = vld [vmem:[#allocation11 + $0x268] ss:$16 sps:$4 sm:$0xff]  }
 0x4d6   :  { %v1502_v15 = vrot.slane %v1501_v18, 4  ;;  %v1538_v22 = vld [vmem:[#allocation5 + $0x10] sm:$0x88]  ;;  %v1556_v23 = vrot.slane %v1554_v19, 5  ;;  %v1559_v24 = vrot.slane %v1557_v20, 4 }
 0x4d7   :  { %v1512_v25 = vld [vmem:[#allocation5] sm:$0x88]  ;;  %v1539_v26 = vsel %vm7321_vm8, %v1534_v36, %v1538_v22  ;;  %v7344_v41 = vld [vmem:[#allocation5 + $0x8] sm:$0xff] }
 0x4d8   :  { %v1513_v27 = vsel %vm7321_vm8, %v1497_v28, %v1512_v25  ;;  %1515 = vst [vmem:[#allocation5 + $0x20] sm:$0x77] %v1502_v15  ;;  %1540 = vst [vmem:[#allocation5 + $0x10] sm:$0x88] %v1539_v26  ;;  %v1560_v29 = vor.u32 %v1559_v24, %v1556_v23  ;;  %v1565_v30 = vsel %vm7321_vm8, %v1556_v23, %v1564_v21  ;;  %v6513_v61 = vld [vmem:[#allocation11 + $0x284] ss:$16 sps:$4 sm:$0xff]  }
 0x4d9   :  { %1514 = vst [vmem:[#allocation5] sm:$0x88] %v1513_v27  ;;  %1566 = vst [vmem:[#allocation5 + $0x18] sm:$0x88] %v1565_v30  ;;  %v6511_v63 = vld [vmem:[#allocation11 + $0x280] ss:$16 sps:$4 sm:$0xff]  }
 0x4da   :  { %v1561_v31 = vrot.slane %v1560_v29, 4  ;;  %v7346_v42 = vld [vmem:[#allocation5 + $0x28] sm:$0x77]  ;;  %v6519_v2 = vld [vmem:[#allocation11 + $0x2a4] ss:$16 sps:$4 sm:$0xff]  }
 0x4db   :  { %v5570_v33 = vcombine.high %v7344_v41, %v7346_v42  ;;  %v6514_v0 = vld [vmem:[#allocation11 + $0x288] ss:$16 sps:$4 sm:$0xff]   ;;  %v6522_v46 = vld [vmem:[#allocation11 + $0x2ac] ss:$16 sps:$4 sm:$0xff]   ;;  %v6517_v48 = vld [vmem:[#allocation11 + $0x2a0] ss:$16 sps:$4 sm:$0xff]  }
 0x4dc   :  { %1567 = vst [vmem:[#allocation5 + $0x38] sm:$0x77] %v1561_v31  ;;  %v6520_v47 = vld [vmem:[#allocation11 + $0x2a8] ss:$16 sps:$4 sm:$0xff]   ;;  %v6525_v3 = vld [vmem:[#allocation11 + $0x2c4] ss:$16 sps:$4 sm:$0xff]  }
 0x4dd   :  { %v6528_v36 = vld [vmem:[#allocation11 + $0x2cc] ss:$16 sps:$4 sm:$0xff]   ;;  %v6523_v4 = vld [vmem:[#allocation11 + $0x2c0] ss:$16 sps:$4 sm:$0xff]   ;;  %v6526_v5 = vld [vmem:[#allocation11 + $0x2c8] ss:$16 sps:$4 sm:$0xff]  }
 0x4de   :  { %v6531_v6 = vld [vmem:[#allocation11 + $0x2e4] ss:$16 sps:$4 sm:$0xff]   ;;  %v6534_v8 = vld [vmem:[#allocation11 + $0x2ec] ss:$16 sps:$4 sm:$0xff]   ;;  %v6529_v9 = vld [vmem:[#allocation11 + $0x2e0] ss:$16 sps:$4 sm:$0xff]  }
 0x4df   :  { %v1572_v37 = vld [vmem:[#allocation5 + $0x20] sm:$0x77]  ;;  %v6532_v10 = vld [vmem:[#allocation11 + $0x2e8] ss:$16 sps:$4 sm:$0xff]   ;;  %v6540_v12 = vld [vmem:[#allocation11 + $0x30c] ss:$16 sps:$4 sm:$0xff]  }
 0x4e0   :  { %v1568_v35 = vld [vmem:[#allocation5] sm:$0xff]  ;;  %v6538_v16 = vld [vmem:[#allocation11 + $0x308] ss:$16 sps:$4 sm:$0xff]   ;;  %v6546_v28 = vld [vmem:[#allocation11 + $0x32c] ss:$16 sps:$4 sm:$0xff]  }
 0x4e1   :  { %v5567_v38 = vcombine.low %v1568_v35, %v1572_v37  ;;  %v5568_v1 = vcombine.high %v1568_v35, %v1572_v37  ;;  %v6537_v11 = vld [vmem:[#allocation11 + $0x304] ss:$16 sps:$4 sm:$0xff]   ;;  %v6535_v14 = vld [vmem:[#allocation11 + $0x300] ss:$16 sps:$4 sm:$0xff]   ;;  %v6544_v17 = vld [vmem:[#allocation11 + $0x328] ss:$16 sps:$4 sm:$0xff]  }
 0x4e2   :  { %v6543_v13 = vld [vmem:[#allocation11 + $0x324] ss:$16 sps:$4 sm:$0xff]   ;;  %v6541_v7 = vld [vmem:[#allocation11 + $0x320] ss:$16 sps:$4 sm:$0xff]   ;;  %v6552_v19 = vld [vmem:[#allocation11 + $0x34c] ss:$16 sps:$4 sm:$0xff]  }
 0x4e3   :  { %3184 = vmatprep.mubr.bf16.mxu1 %v5568_v1  ;;  %3356 = vmatprep.mubr.bf16.mxu0 %v5568_v1  ;;  %v6549_v18 = vld [vmem:[#allocation11 + $0x344] ss:$16 sps:$4 sm:$0xff]   ;;  %v6547_v20 = vld [vmem:[#allocation11 + $0x340] ss:$16 sps:$4 sm:$0xff]   ;;  %v6550_v21 = vld [vmem:[#allocation11 + $0x348] ss:$16 sps:$4 sm:$0xff]  }
 0x4e4   :  { %3185 = vmatmul.mubr.bf16.vlgmr.msra.gmra.mrb[4].mxu1 %v5567_v38  ;;  %3357 = vmatmul.mubr.bf16.vlgmr.msra.gmra.mrb[8].mxu0 %v5567_v38  ;;  %v6555_v15 = vld [vmem:[#allocation11 + $0x364] ss:$16 sps:$4 sm:$0xff]   ;;  %v6558_v22 = vld [vmem:[#allocation11 + $0x36c] ss:$16 sps:$4 sm:$0xff]   ;;  %v6553_v23 = vld [vmem:[#allocation11 + $0x360] ss:$16 sps:$4 sm:$0xff]  }
 0x4e5   :  { %3196 = vmatpush1.bf16.msra.mxu1 %v6487_v39  ;;  %3368 = vmatpush1.bf16.msra.mxu0 %v6490_v40  ;;  %v6556_v24 = vld [vmem:[#allocation11 + $0x368] ss:$16 sps:$4 sm:$0xff]   ;;  %v6561_v25 = vld [vmem:[#allocation11 + $0x384] ss:$16 sps:$4 sm:$0xff]   ;;  %v6564_v26 = vld [vmem:[#allocation11 + $0x38c] ss:$16 sps:$4 sm:$0xff]  }
 0x4e6   :  { %3227 = vmatprep.mubr.bf16.mxu1 %v5570_v33  ;;  %3399 = vmatprep.mubr.bf16.mxu0 %v5570_v33  ;;  %v6559_v27 = vld [vmem:[#allocation11 + $0x380] ss:$16 sps:$4 sm:$0xff]   ;;  %v6562_v29 = vld [vmem:[#allocation11 + $0x388] ss:$16 sps:$4 sm:$0xff]   ;;  %v6567_v30 = vld [vmem:[#allocation11 + $0x3a4] ss:$16 sps:$4 sm:$0xff]  }
 0x4e7   :  { %3197 = vmatprep.subr.bf16.mxu1 %v6495_v43  ;;  %3369 = vmatprep.subr.bf16.mxu0 %v6498_v32  ;;  %v6570_v31 = vld [vmem:[#allocation11 + $0x3ac] ss:$16 sps:$4 sm:$0xff]   ;;  %v6565_v35 = vld [vmem:[#allocation11 + $0x3a0] ss:$16 sps:$4 sm:$0xff]   ;;  %v6568_v37 = vld [vmem:[#allocation11 + $0x3a8] ss:$16 sps:$4 sm:$0xff]  }
 0x4e8   :  { %v6573_v38 = vld [vmem:[#allocation11 + $0x3c4] ss:$16 sps:$4 sm:$0xff]   ;;  %v6576_v1 = vld [vmem:[#allocation11 + $0x3cc] ss:$16 sps:$4 sm:$0xff]   ;;  %v6571_v39 = vld [vmem:[#allocation11 + $0x3c0] ss:$16 sps:$4 sm:$0xff]  }
 0x4e9   :  { %3198 = vmatpush1.bf16.msra.mxu1 %v6493_v34  ;;  %3370 = vmatpush1.bf16.msra.mxu0 %v6496_v44  ;;  %v6574_v40 = vld [vmem:[#allocation11 + $0x3c8] ss:$16 sps:$4 sm:$0xff]   ;;  %v6579_v43 = vld [vmem:[#allocation11 + $0x3e4] ss:$16 sps:$4 sm:$0xff]   ;;  %v6582_v32 = vld [vmem:[#allocation11 + $0x3ec] ss:$16 sps:$4 sm:$0xff]  }
 0x4ea   :  { %3199 = vmatprep.subr.bf16.mxu1 %v6501_v45  ;;  %3371 = vmatprep.subr.bf16.mxu0 %v6504_v51  ;;  %v6577_v33 = vld [vmem:[#allocation11 + $0x3e0] ss:$16 sps:$4 sm:$0xff]   ;;  %v6580_v34 = vld [vmem:[#allocation11 + $0x3e8] ss:$16 sps:$4 sm:$0xff]   ;;  %v6585_v44 = vld [vmem:[#allocation11 + $0x404] ss:$16 sps:$4 sm:$0xff]  }
 0x4eb   :  { %v6588_v45 = vld [vmem:[#allocation11 + $0x40c] ss:$16 sps:$4 sm:$0xff]   ;;  %v7350_v51 = vld [vmem:[#allocation5 + $0x10] sm:$0xff] }
 0x4ed   :  { %3200 = vmatpush1.bf16.msra.mxu1 %v6499_v52  ;;  %3372 = vmatpush1.bf16.msra.mxu0 %v6502_v53  ;;  %v6583_v52 = vld [vmem:[#allocation11 + $0x400] ss:$16 sps:$4 sm:$0xff]   ;;  %v5569_v53 = vcombine.low %v7344_v41, %v7346_v42  ;;  %v6600_v41 = vld [vmem:[#allocation11 + $0x44c] ss:$16 sps:$4 sm:$0xff]  }
 0x4ee   :  { %3201 = vmatprep.subr.bf16.mxu1 %v6507_v54  ;;  %3373 = vmatprep.subr.bf16.mxu0 %v6510_v55  ;;  %v6586_v54 = vld [vmem:[#allocation11 + $0x408] ss:$16 sps:$4 sm:$0xff]   ;;  %v7354_v55 = vld [vmem:[#allocation5 + $0x30] sm:$0x77] }
 0x4ef   :  { %v6595_v42 = vld [vmem:[#allocation11 + $0x440] ss:$16 sps:$4 sm:$0xff]  }
 0x4f1   :  { %3202 = vmatpush1.bf16.msra.mxu1 %v6505_v58  ;;  %3374 = vmatpush1.bf16.msra.mxu0 %v6508_v60  ;;  %v5572_v58 = vcombine.high %v7350_v51, %v7354_v55  ;;  %v6591_v60 = vld [vmem:[#allocation11 + $0x424] ss:$16 sps:$4 sm:$0xff]  }
 0x4f2   :  { %3203 = vmatprep.subr.bf16.mxu1 %v6513_v61  ;;  %3375 = vmatprep.subr.bf16.mxu0 %v6516_v62  ;;  %v6594_v61 = vld [vmem:[#allocation11 + $0x42c] ss:$16 sps:$4 sm:$0xff]   ;;  %v6589_v62 = vld [vmem:[#allocation11 + $0x420] ss:$16 sps:$4 sm:$0xff]  }
 0x4f5   :  { %3204 = vmatpush1.bf16.msra.mxu1 %v6511_v63  ;;  %3376 = vmatpush1.bf16.msra.mxu0 %v6514_v0  ;;  %v6592_v63 = vld [vmem:[#allocation11 + $0x428] ss:$16 sps:$4 sm:$0xff]   ;;  %v6597_v0 = vld [vmem:[#allocation11 + $0x444] ss:$16 sps:$4 sm:$0xff]  }
 0x4f6   :  { %3205 = vmatprep.subr.bf16.mxu1 %v6519_v2  ;;  %3377 = vmatprep.subr.bf16.mxu0 %v6522_v46  ;;  %v6598_v2 = vld [vmem:[#allocation11 + $0x448] ss:$16 sps:$4 sm:$0xff]   ;;  %v6603_v46 = vld [vmem:[#allocation11 + $0x464] ss:$16 sps:$4 sm:$0xff]  }
 0x4f9   :  { %3206 = vmatpush1.bf16.msra.mxu1 %v6517_v48  ;;  %3378 = vmatpush1.bf16.msra.mxu0 %v6520_v47  ;;  %v6606_v48 = vld [vmem:[#allocation11 + $0x46c] ss:$16 sps:$4 sm:$0xff]   ;;  %v6601_v47 = vld [vmem:[#allocation11 + $0x460] ss:$16 sps:$4 sm:$0xff]  }
 0x4fa   :  { %3207 = vmatprep.subr.bf16.mxu1 %v6525_v3  ;;  %3379 = vmatprep.subr.bf16.mxu0 %v6528_v36  ;;  %v6604_v3 = vld [vmem:[#allocation11 + $0x468] ss:$16 sps:$4 sm:$0xff]   ;;  %v6609_v36 = vld [vmem:[#allocation11 + $0x484] ss:$16 sps:$4 sm:$0xff]  }
 0x4fd   :  { %3208 = vmatpush1.bf16.msra.mxu1 %v6523_v4  ;;  %3380 = vmatpush1.bf16.msra.mxu0 %v6526_v5  ;;  %v6612_v4 = vld [vmem:[#allocation11 + $0x48c] ss:$16 sps:$4 sm:$0xff]   ;;  %v6607_v5 = vld [vmem:[#allocation11 + $0x480] ss:$16 sps:$4 sm:$0xff]  }
 0x4fe   :  { %3209 = vmatprep.subr.bf16.mxu1 %v6531_v6  ;;  %3381 = vmatprep.subr.bf16.mxu0 %v6534_v8  ;;  %v6610_v6 = vld [vmem:[#allocation11 + $0x488] ss:$16 sps:$4 sm:$0xff]   ;;  %v6615_v8 = vld [vmem:[#allocation11 + $0x4a4] ss:$16 sps:$4 sm:$0xff]  }
 0x501   :  { %3210 = vmatpush1.bf16.msra.mxu1 %v6529_v9  ;;  %3382 = vmatpush1.bf16.msra.mxu0 %v6532_v10  ;;  %v6618_v9 = vld [vmem:[#allocation11 + $0x4ac] ss:$16 sps:$4 sm:$0xff]   ;;  %v6613_v10 = vld [vmem:[#allocation11 + $0x4a0] ss:$16 sps:$4 sm:$0xff]  }
 0x502   :  { %3211 = vmatprep.subr.bf16.mxu1 %v6537_v11  ;;  %3383 = vmatprep.subr.bf16.mxu0 %v6540_v12  ;;  %v6616_v11 = vld [vmem:[#allocation11 + $0x4a8] ss:$16 sps:$4 sm:$0xff]   ;;  %v6621_v12 = vld [vmem:[#allocation11 + $0x4c4] ss:$16 sps:$4 sm:$0xff]  }
 0x505   :  { %3212 = vmatpush1.bf16.msra.mxu1 %v6535_v14  ;;  %3384 = vmatpush1.bf16.msra.mxu0 %v6538_v16  ;;  %v6624_v14 = vld [vmem:[#allocation11 + $0x4cc] ss:$16 sps:$4 sm:$0xff]   ;;  %v6619_v16 = vld [vmem:[#allocation11 + $0x4c0] ss:$16 sps:$4 sm:$0xff]  }
 0x506   :  { %3213 = vmatprep.subr.bf16.mxu1 %v6543_v13  ;;  %3385 = vmatprep.subr.bf16.mxu0 %v6546_v28  ;;  %v6622_v13 = vld [vmem:[#allocation11 + $0x4c8] ss:$16 sps:$4 sm:$0xff]   ;;  %v6627_v28 = vld [vmem:[#allocation11 + $0x4e4] ss:$16 sps:$4 sm:$0xff]  }
 0x509   :  { %3214 = vmatpush1.bf16.msra.mxu1 %v6541_v7  ;;  %3386 = vmatpush1.bf16.msra.mxu0 %v6544_v17  ;;  %v6630_v7 = vld [vmem:[#allocation11 + $0x4ec] ss:$16 sps:$4 sm:$0xff]   ;;  %v6625_v17 = vld [vmem:[#allocation11 + $0x4e0] ss:$16 sps:$4 sm:$0xff]  }
 0x50a   :  { %3215 = vmatprep.subr.bf16.mxu1 %v6549_v18  ;;  %3387 = vmatprep.subr.bf16.mxu0 %v6552_v19  ;;  %v6628_v18 = vld [vmem:[#allocation11 + $0x4e8] ss:$16 sps:$4 sm:$0xff]   ;;  %v6633_v19 = vld [vmem:[#allocation11 + $0x504] ss:$16 sps:$4 sm:$0xff]  }
 0x50d   :  { %3216 = vmatpush1.bf16.msra.mxu1 %v6547_v20  ;;  %3388 = vmatpush1.bf16.msra.mxu0 %v6550_v21  ;;  %v6636_v20 = vld [vmem:[#allocation11 + $0x50c] ss:$16 sps:$4 sm:$0xff]   ;;  %v6631_v21 = vld [vmem:[#allocation11 + $0x500] ss:$16 sps:$4 sm:$0xff]  }
 0x50e   :  { %3217 = vmatprep.subr.bf16.mxu1 %v6555_v15  ;;  %3389 = vmatprep.subr.bf16.mxu0 %v6558_v22  ;;  %v6634_v15 = vld [vmem:[#allocation11 + $0x508] ss:$16 sps:$4 sm:$0xff]   ;;  %v6639_v22 = vld [vmem:[#allocation11 + $0x524] ss:$16 sps:$4 sm:$0xff]  }
 0x511   :  { %3218 = vmatpush1.bf16.msra.mxu1 %v6553_v23  ;;  %3390 = vmatpush1.bf16.msra.mxu0 %v6556_v24  ;;  %v6642_v23 = vld [vmem:[#allocation11 + $0x52c] ss:$16 sps:$4 sm:$0xff]   ;;  %v6637_v24 = vld [vmem:[#allocation11 + $0x520] ss:$16 sps:$4 sm:$0xff]  }
 0x512   :  { %3219 = vmatprep.subr.bf16.mxu1 %v6561_v25  ;;  %3391 = vmatprep.subr.bf16.mxu0 %v6564_v26  ;;  %v6640_v25 = vld [vmem:[#allocation11 + $0x528] ss:$16 sps:$4 sm:$0xff]   ;;  %v6645_v26 = vld [vmem:[#allocation11 + $0x544] ss:$16 sps:$4 sm:$0xff]  }
 0x515   :  { %3220 = vmatpush1.bf16.msra.mxu1 %v6559_v27  ;;  %3392 = vmatpush1.bf16.msra.mxu0 %v6562_v29  ;;  %v6648_v27 = vld [vmem:[#allocation11 + $0x54c] ss:$16 sps:$4 sm:$0xff]   ;;  %v6643_v29 = vld [vmem:[#allocation11 + $0x540] ss:$16 sps:$4 sm:$0xff]  }
 0x516   :  { %3221 = vmatprep.subr.bf16.mxu1 %v6567_v30  ;;  %3393 = vmatprep.subr.bf16.mxu0 %v6570_v31  ;;  %v6646_v30 = vld [vmem:[#allocation11 + $0x548] ss:$16 sps:$4 sm:$0xff]   ;;  %v6651_v31 = vld [vmem:[#allocation11 + $0x564] ss:$16 sps:$4 sm:$0xff]  }
 0x519   :  { %3222 = vmatpush1.bf16.msra.mxu1 %v6565_v35  ;;  %3394 = vmatpush1.bf16.msra.mxu0 %v6568_v37  ;;  %v6654_v35 = vld [vmem:[#allocation11 + $0x56c] ss:$16 sps:$4 sm:$0xff]   ;;  %v6649_v37 = vld [vmem:[#allocation11 + $0x560] ss:$16 sps:$4 sm:$0xff]  }
 0x51a   :  { %3223 = vmatprep.subr.bf16.mxu1 %v6573_v38  ;;  %3395 = vmatprep.subr.bf16.mxu0 %v6576_v1  ;;  %v6652_v38 = vld [vmem:[#allocation11 + $0x568] ss:$16 sps:$4 sm:$0xff]   ;;  %v6657_v1 = vld [vmem:[#allocation11 + $0x584] ss:$16 sps:$4 sm:$0xff]  }
 0x51d   :  { %3224 = vmatpush1.bf16.msra.mxu1 %v6571_v39  ;;  %3396 = vmatpush1.bf16.msra.mxu0 %v6574_v40  ;;  %v6660_v39 = vld [vmem:[#allocation11 + $0x58c] ss:$16 sps:$4 sm:$0xff]   ;;  %v6655_v40 = vld [vmem:[#allocation11 + $0x580] ss:$16 sps:$4 sm:$0xff]  }
 0x51e   :  { %3225 = vmatprep.subr.bf16.mxu1 %v6579_v43  ;;  %3397 = vmatprep.subr.bf16.mxu0 %v6582_v32  ;;  %v6658_v43 = vld [vmem:[#allocation11 + $0x588] ss:$16 sps:$4 sm:$0xff]   ;;  %v6663_v32 = vld [vmem:[#allocation11 + $0x5a4] ss:$16 sps:$4 sm:$0xff]  }
 0x521   :  { %3226 = vmatpush1.bf16.msra.mxu1 %v6577_v33  ;;  %3398 = vmatpush1.bf16.msra.mxu0 %v6580_v34  ;;  %v6666_v33 = vld [vmem:[#allocation11 + $0x5ac] ss:$16 sps:$4 sm:$0xff]   ;;  %v6661_v34 = vld [vmem:[#allocation11 + $0x5a0] ss:$16 sps:$4 sm:$0xff]  }
 0x522   :  { %3238 = vmatprep.subr.bf16.mxu1 %v6585_v44  ;;  %3410 = vmatprep.subr.bf16.mxu0 %v6588_v45  ;;  %v6664_v44 = vld [vmem:[#allocation11 + $0x5a8] ss:$16 sps:$4 sm:$0xff]   ;;  %v6669_v45 = vld [vmem:[#allocation11 + $0x5c4] ss:$16 sps:$4 sm:$0xff]  }
 0x524   :  { %3228 = vmatmul.mubr.bf16.vlgmr.msra.gmra.mrb[4].mxu1 %v5569_v53  ;;  %3400 = vmatmul.mubr.bf16.vlgmr.msra.gmra.mrb[8].mxu0 %v5569_v53  ;;  %v6667_v53 = vld [vmem:[#allocation11 + $0x5c0] ss:$16 sps:$4 sm:$0xff]  }
 0x525   :  { %3239 = vmatpush1.bf16.msra.mxu1 %v6583_v52  ;;  %3270 = vmatprep.mubr.bf16.mxu1 %v5572_v58  ;;  %v6672_v52 = vld [vmem:[#allocation11 + $0x5cc] ss:$16 sps:$4 sm:$0xff]  }
 0x526   :  { %3411 = vmatpush1.bf16.msra.mxu0 %v6586_v54  ;;  %3442 = vmatprep.mubr.bf16.mxu0 %v5572_v58  ;;  %v6670_v54 = vld [vmem:[#allocation11 + $0x5c8] ss:$16 sps:$4 sm:$0xff]   ;;  %v6675_v58 = vld [vmem:[#allocation11 + $0x5e4] ss:$16 sps:$4 sm:$0xff]  }
 0x527   :  { %3240 = vmatprep.subr.bf16.mxu1 %v6591_v60  ;;  %3412 = vmatprep.subr.bf16.mxu0 %v6594_v61  ;;  %v6678_v60 = vld [vmem:[#allocation11 + $0x5ec] ss:$16 sps:$4 sm:$0xff]   ;;  %v6673_v61 = vld [vmem:[#allocation11 + $0x5e0] ss:$16 sps:$4 sm:$0xff]  }
 0x529   :  { %3241 = vmatpush1.bf16.msra.mxu1 %v6589_v62  ;;  %v6676_v62 = vld [vmem:[#allocation11 + $0x5e8] ss:$16 sps:$4 sm:$0xff]  }
 0x52a   :  { %3413 = vmatpush1.bf16.msra.mxu0 %v6592_v63  ;;  %3242 = vmatprep.subr.bf16.mxu1 %v6597_v0  ;;  %v6681_v63 = vld [vmem:[#allocation11 + $0x604] ss:$16 sps:$4 sm:$0xff]   ;;  %v6684_v0 = vld [vmem:[#allocation11 + $0x60c] ss:$16 sps:$4 sm:$0xff]  }
 0x52b   :  { %3414 = vmatprep.subr.bf16.mxu0 %v6600_v41  ;;  %v6679_v41 = vld [vmem:[#allocation11 + $0x600] ss:$16 sps:$4 sm:$0xff]  }
 0x52d   :  { %3243 = vmatpush1.bf16.msra.mxu1 %v6595_v42  ;;  %v7358_v42 = vld [vmem:[#allocation5 + $0x18] sm:$0xff] }
 0x52e   :  { %3415 = vmatpush1.bf16.msra.mxu0 %v6598_v2  ;;  %3244 = vmatprep.subr.bf16.mxu1 %v6603_v46  ;;  %v5571_v2 = vcombine.low %v7350_v51, %v7354_v55  ;;  %v6682_v46 = vld [vmem:[#allocation11 + $0x608] ss:$16 sps:$4 sm:$0xff]   ;;  %v6696_v51 = vld [vmem:[#allocation11 + $0x64c] ss:$16 sps:$4 sm:$0xff]   ;;  %v6691_v55 = vld [vmem:[#allocation11 + $0x640] ss:$16 sps:$4 sm:$0xff]  }
 0x52f   :  { %3416 = vmatprep.subr.bf16.mxu0 %v6606_v48  ;;  %v7362_v48 = vld [vmem:[#allocation5 + $0x38] sm:$0x77] }
 0x531   :  { %3245 = vmatpush1.bf16.msra.mxu1 %v6601_v47  ;;  %v6687_v47 = vld [vmem:[#allocation11 + $0x624] ss:$16 sps:$4 sm:$0xff]  }
 0x532   :  { %3417 = vmatpush1.bf16.msra.mxu0 %v6604_v3  ;;  %3246 = vmatprep.subr.bf16.mxu1 %v6609_v36  ;;  %v5574_v3 = vcombine.high %v7358_v42, %v7362_v48  ;;  %v6690_v36 = vld [vmem:[#allocation11 + $0x62c] ss:$16 sps:$4 sm:$0xff]  }
 0x533   :  { %3418 = vmatprep.subr.bf16.mxu0 %v6612_v4  ;;  %v6685_v4 = vld [vmem:[#allocation11 + $0x620] ss:$16 sps:$4 sm:$0xff]  }
 0x535   :  { %3247 = vmatpush1.bf16.msra.mxu1 %v6607_v5  ;;  %v6688_v5 = vld [vmem:[#allocation11 + $0x628] ss:$16 sps:$4 sm:$0xff]  }
 0x536   :  { %3419 = vmatpush1.bf16.msra.mxu0 %v6610_v6  ;;  %3248 = vmatprep.subr.bf16.mxu1 %v6615_v8  ;;  %v6693_v6 = vld [vmem:[#allocation11 + $0x644] ss:$16 sps:$4 sm:$0xff]   ;;  %v6694_v8 = vld [vmem:[#allocation11 + $0x648] ss:$16 sps:$4 sm:$0xff]  }
 0x537   :  { %3420 = vmatprep.subr.bf16.mxu0 %v6618_v9  ;;  %v6699_v9 = vld [vmem:[#allocation11 + $0x664] ss:$16 sps:$4 sm:$0xff]  }
 0x539   :  { %3249 = vmatpush1.bf16.msra.mxu1 %v6613_v10  ;;  %v6702_v10 = vld [vmem:[#allocation11 + $0x66c] ss:$16 sps:$4 sm:$0xff]  }
 0x53a   :  { %3421 = vmatpush1.bf16.msra.mxu0 %v6616_v11  ;;  %3250 = vmatprep.subr.bf16.mxu1 %v6621_v12  ;;  %v6697_v11 = vld [vmem:[#allocation11 + $0x660] ss:$16 sps:$4 sm:$0xff]   ;;  %v6700_v12 = vld [vmem:[#allocation11 + $0x668] ss:$16 sps:$4 sm:$0xff]  }
 0x53b   :  { %3422 = vmatprep.subr.bf16.mxu0 %v6624_v14  ;;  %v6705_v14 = vld [vmem:[#allocation11 + $0x684] ss:$16 sps:$4 sm:$0xff]  }
 0x53d   :  { %3251 = vmatpush1.bf16.msra.mxu1 %v6619_v16  ;;  %v6708_v16 = vld [vmem:[#allocation11 + $0x68c] ss:$16 sps:$4 sm:$0xff]  }
 0x53e   :  { %3423 = vmatpush1.bf16.msra.mxu0 %v6622_v13  ;;  %3252 = vmatprep.subr.bf16.mxu1 %v6627_v28  ;;  %v6703_v13 = vld [vmem:[#allocation11 + $0x680] ss:$16 sps:$4 sm:$0xff]   ;;  %v6706_v28 = vld [vmem:[#allocation11 + $0x688] ss:$16 sps:$4 sm:$0xff]  }
 0x53f   :  { %3424 = vmatprep.subr.bf16.mxu0 %v6630_v7  ;;  %v6711_v7 = vld [vmem:[#allocation11 + $0x6a4] ss:$16 sps:$4 sm:$0xff]  }
 0x541   :  { %3253 = vmatpush1.bf16.msra.mxu1 %v6625_v17  ;;  %v6714_v17 = vld [vmem:[#allocation11 + $0x6ac] ss:$16 sps:$4 sm:$0xff]  }
 0x542   :  { %3425 = vmatpush1.bf16.msra.mxu0 %v6628_v18  ;;  %3254 = vmatprep.subr.bf16.mxu1 %v6633_v19  ;;  %v6709_v18 = vld [vmem:[#allocation11 + $0x6a0] ss:$16 sps:$4 sm:$0xff]   ;;  %v6712_v19 = vld [vmem:[#allocation11 + $0x6a8] ss:$16 sps:$4 sm:$0xff]  }
 0x543   :  { %3426 = vmatprep.subr.bf16.mxu0 %v6636_v20  ;;  %v6717_v20 = vld [vmem:[#allocation11 + $0x6c4] ss:$16 sps:$4 sm:$0xff]  }
 0x545   :  { %3255 = vmatpush1.bf16.msra.mxu1 %v6631_v21  ;;  %v6720_v21 = vld [vmem:[#allocation11 + $0x6cc] ss:$16 sps:$4 sm:$0xff]  }
 0x546   :  { %3427 = vmatpush1.bf16.msra.mxu0 %v6634_v15  ;;  %3256 = vmatprep.subr.bf16.mxu1 %v6639_v22  ;;  %v6715_v15 = vld [vmem:[#allocation11 + $0x6c0] ss:$16 sps:$4 sm:$0xff]   ;;  %v6718_v22 = vld [vmem:[#allocation11 + $0x6c8] ss:$16 sps:$4 sm:$0xff]  }
 0x547   :  { %3428 = vmatprep.subr.bf16.mxu0 %v6642_v23  ;;  %v6723_v23 = vld [vmem:[#allocation11 + $0x6e4] ss:$16 sps:$4 sm:$0xff]  }
 0x549   :  { %3257 = vmatpush1.bf16.msra.mxu1 %v6637_v24  ;;  %v6726_v24 = vld [vmem:[#allocation11 + $0x6ec] ss:$16 sps:$4 sm:$0xff]  }
 0x54a   :  { %3429 = vmatpush1.bf16.msra.mxu0 %v6640_v25  ;;  %3258 = vmatprep.subr.bf16.mxu1 %v6645_v26  ;;  %v6721_v25 = vld [vmem:[#allocation11 + $0x6e0] ss:$16 sps:$4 sm:$0xff]   ;;  %v6724_v26 = vld [vmem:[#allocation11 + $0x6e8] ss:$16 sps:$4 sm:$0xff]  }
 0x54b   :  { %3430 = vmatprep.subr.bf16.mxu0 %v6648_v27  ;;  %v6729_v27 = vld [vmem:[#allocation11 + $0x704] ss:$16 sps:$4 sm:$0xff]  }
 0x54d   :  { %3259 = vmatpush1.bf16.msra.mxu1 %v6643_v29  ;;  %v6732_v29 = vld [vmem:[#allocation11 + $0x70c] ss:$16 sps:$4 sm:$0xff]  }
 0x54e   :  { %3431 = vmatpush1.bf16.msra.mxu0 %v6646_v30  ;;  %3260 = vmatprep.subr.bf16.mxu1 %v6651_v31  ;;  %v6727_v30 = vld [vmem:[#allocation11 + $0x700] ss:$16 sps:$4 sm:$0xff]   ;;  %v6730_v31 = vld [vmem:[#allocation11 + $0x708] ss:$16 sps:$4 sm:$0xff]  }
 0x54f   :  { %3432 = vmatprep.subr.bf16.mxu0 %v6654_v35  ;;  %v6735_v35 = vld [vmem:[#allocation11 + $0x724] ss:$16 sps:$4 sm:$0xff]  }
 0x551   :  { %3261 = vmatpush1.bf16.msra.mxu1 %v6649_v37  ;;  %v6738_v37 = vld [vmem:[#allocation11 + $0x72c] ss:$16 sps:$4 sm:$0xff]  }
 0x552   :  { %3433 = vmatpush1.bf16.msra.mxu0 %v6652_v38  ;;  %3262 = vmatprep.subr.bf16.mxu1 %v6657_v1  ;;  %v6733_v38 = vld [vmem:[#allocation11 + $0x720] ss:$16 sps:$4 sm:$0xff]   ;;  %v6736_v1 = vld [vmem:[#allocation11 + $0x728] ss:$16 sps:$4 sm:$0xff]  }
 0x553   :  { %3434 = vmatprep.subr.bf16.mxu0 %v6660_v39  ;;  %v6741_v39 = vld [vmem:[#allocation11 + $0x744] ss:$16 sps:$4 sm:$0xff]  }
 0x555   :  { %3263 = vmatpush1.bf16.msra.mxu1 %v6655_v40  ;;  %v6744_v40 = vld [vmem:[#allocation11 + $0x74c] ss:$16 sps:$4 sm:$0xff]  }
 0x556   :  { %3435 = vmatpush1.bf16.msra.mxu0 %v6658_v43  ;;  %3264 = vmatprep.subr.bf16.mxu1 %v6663_v32  ;;  %v6739_v43 = vld [vmem:[#allocation11 + $0x740] ss:$16 sps:$4 sm:$0xff]   ;;  %v6742_v32 = vld [vmem:[#allocation11 + $0x748] ss:$16 sps:$4 sm:$0xff]  }
 0x557   :  { %3436 = vmatprep.subr.bf16.mxu0 %v6666_v33  ;;  %v6747_v33 = vld [vmem:[#allocation11 + $0x764] ss:$16 sps:$4 sm:$0xff]  }
 0x559   :  { %3265 = vmatpush1.bf16.msra.mxu1 %v6661_v34  ;;  %v6750_v34 = vld [vmem:[#allocation11 + $0x76c] ss:$16 sps:$4 sm:$0xff]  }
 0x55a   :  { %3437 = vmatpush1.bf16.msra.mxu0 %v6664_v44  ;;  %3266 = vmatprep.subr.bf16.mxu1 %v6669_v45  ;;  %v6745_v44 = vld [vmem:[#allocation11 + $0x760] ss:$16 sps:$4 sm:$0xff]   ;;  %v6748_v45 = vld [vmem:[#allocation11 + $0x768] ss:$16 sps:$4 sm:$0xff]  }
 0x55b   :  { %3438 = vmatprep.subr.bf16.mxu0 %v6672_v52  ;;  %v6753_v52 = vld [vmem:[#allocation11 + $0x784] ss:$16 sps:$4 sm:$0xff]  }
 0x55d   :  { %3267 = vmatpush1.bf16.msra.mxu1 %v6667_v53  ;;  %v6756_v53 = vld [vmem:[#allocation11 + $0x78c] ss:$16 sps:$4 sm:$0xff]  }
 0x55e   :  { %3439 = vmatpush1.bf16.msra.mxu0 %v6670_v54  ;;  %3268 = vmatprep.subr.bf16.mxu1 %v6675_v58  ;;  %v6751_v54 = vld [vmem:[#allocation11 + $0x780] ss:$16 sps:$4 sm:$0xff]   ;;  %v6754_v58 = vld [vmem:[#allocation11 + $0x788] ss:$16 sps:$4 sm:$0xff]  }
 0x55f   :  { %3440 = vmatprep.subr.bf16.mxu0 %v6678_v60  ;;  %v6759_v60 = vld [vmem:[#allocation11 + $0x7a4] ss:$16 sps:$4 sm:$0xff]  }
 0x561   :  { %3269 = vmatpush1.bf16.msra.mxu1 %v6673_v61  ;;  %v6762_v61 = vld [vmem:[#allocation11 + $0x7ac] ss:$16 sps:$4 sm:$0xff]  }
 0x562   :  { %3441 = vmatpush1.bf16.msra.mxu0 %v6676_v62  ;;  %3281 = vmatprep.subr.bf16.mxu1 %v6681_v63  ;;  %v6757_v62 = vld [vmem:[#allocation11 + $0x7a0] ss:$16 sps:$4 sm:$0xff]   ;;  %v6760_v63 = vld [vmem:[#allocation11 + $0x7a8] ss:$16 sps:$4 sm:$0xff]  }
 0x563   :  { %3453 = vmatprep.subr.bf16.mxu0 %v6684_v0  ;;  %v6765_v0 = vld [vmem:[#allocation11 + $0x7c4] ss:$16 sps:$4 sm:$0xff]  }
 0x564   :  { %3271 = vmatmul.mubr.bf16.vlgmr.msra.gmra.mrb[4].mxu1 %v5571_v2 }
 0x565   :  { %3443 = vmatmul.mubr.bf16.vlgmr.msra.gmra.mrb[8].mxu0 %v5571_v2  ;;  %3282 = vmatpush1.bf16.msra.mxu1 %v6679_v41  ;;  %v6768_v41 = vld [vmem:[#allocation11 + $0x7cc] ss:$16 sps:$4 sm:$0xff]   ;;  %v6763_v2 = vld [vmem:[#allocation11 + $0x7c0] ss:$16 sps:$4 sm:$0xff]  }
 0x566   :  { %3313 = vmatprep.mubr.bf16.mxu1 %v5574_v3  ;;  %3454 = vmatpush1.bf16.msra.mxu0 %v6682_v46  ;;  %v6766_v46 = vld [vmem:[#allocation11 + $0x7c8] ss:$16 sps:$4 sm:$0xff]  }
 0x567   :  { %3485 = vmatprep.mubr.bf16.mxu0 %v5574_v3  ;;  %3283 = vmatprep.subr.bf16.mxu1 %v6687_v47  ;;  %v6771_v47 = vld [vmem:[#allocation11 + $0x7e4] ss:$16 sps:$4 sm:$0xff]   ;;  %v6774_v3 = vld [vmem:[#allocation11 + $0x7ec] ss:$16 sps:$4 sm:$0xff]  }
 0x568   :  { %3455 = vmatprep.subr.bf16.mxu0 %v6690_v36  ;;  %v6769_v36 = vld [vmem:[#allocation11 + $0x7e0] ss:$16 sps:$4 sm:$0xff]  }
 0x569   :  { %3284 = vmatpush1.bf16.msra.mxu1 %v6685_v4  ;;  %v6772_v4 = vld [vmem:[#allocation11 + $0x7e8] ss:$16 sps:$4 sm:$0xff]  }
 0x56a   :  { %3456 = vmatpush1.bf16.msra.mxu0 %v6688_v5  ;;  %3285 = vmatprep.subr.bf16.mxu1 %v6693_v6  ;;  %v5573_v5 = vcombine.low %v7358_v42, %v7362_v48  ;;  %v6775_v6 = vld [vmem:[#allocation12 + $0x140] sm:$0xff]   ;;  %v6783_v42 = vld [vmem:[#allocation12 + $0x150] sm:$0xff]  }
 0x56b   :  { %3457 = vmatprep.subr.bf16.mxu0 %v6696_v51  ;;  %v6776_v51 = vld [vmem:[#allocation12 + $0x40] sm:$0xff]   ;;  %v6784_v48 = vld [vmem:[#allocation12 + $0x50] sm:$0xff]  }
 0x56d   :  { %3286 = vmatpush1.bf16.msra.mxu1 %v6691_v55  ;;  %v6777_v55 = vld [vmem:[#allocation12 + $0x100] sm:$0xff]  }
 0x56e   :  { %3458 = vmatpush1.bf16.msra.mxu0 %v6694_v8  ;;  %3287 = vmatprep.subr.bf16.mxu1 %v6699_v9  ;;  %v6778_v8 = vld [vmem:[#allocation12] sm:$0xff]   ;;  %v6779_v9 = vld [vmem:[#allocation12 + $0x148] sm:$0xff]  }
 0x56f   :  { %3459 = vmatprep.subr.bf16.mxu0 %v6702_v10  ;;  %v6780_v10 = vld [vmem:[#allocation12 + $0x48] sm:$0xff]  }
 0x571   :  { %3288 = vmatpush1.bf16.msra.mxu1 %v6697_v11  ;;  %v6781_v11 = vld [vmem:[#allocation12 + $0x108] sm:$0xff]  }
 0x572   :  { %3460 = vmatpush1.bf16.msra.mxu0 %v6700_v12  ;;  %3289 = vmatprep.subr.bf16.mxu1 %v6705_v14  ;;  %v6782_v12 = vld [vmem:[#allocation12 + $0x8] sm:$0xff]   ;;  %v6785_v14 = vld [vmem:[#allocation12 + $0x110] sm:$0xff]  }
 0x573   :  { %3461 = vmatprep.subr.bf16.mxu0 %v6708_v16  ;;  %v6786_v16 = vld [vmem:[#allocation12 + $0x10] sm:$0xff]  }
 0x575   :  { %3290 = vmatpush1.bf16.msra.mxu1 %v6703_v13  ;;  %v6787_v13 = vld [vmem:[#allocation12 + $0x158] sm:$0xff]  }
 0x576   :  { %3462 = vmatpush1.bf16.msra.mxu0 %v6706_v28  ;;  %3291 = vmatprep.subr.bf16.mxu1 %v6711_v7  ;;  %v6788_v28 = vld [vmem:[#allocation12 + $0x58] sm:$0xff]  }
 0x577   :  { %3463 = vmatprep.subr.bf16.mxu0 %v6714_v17  ;;  %v6789_v7 = vld [vmem:[#allocation12 + $0x118] sm:$0xff]  }
 0x578   :  { %v6790_v17 = vld [vmem:[#allocation12 + $0x18] sm:$0xff]  }
 0x579   :  { %3292 = vmatpush1.bf16.msra.mxu1 %v6709_v18  ;;  %v6791_v18 = vld [vmem:[#allocation12 + $0x160] sm:$0xff]  }
 0x57a   :  { %3464 = vmatpush1.bf16.msra.mxu0 %v6712_v19  ;;  %3293 = vmatprep.subr.bf16.mxu1 %v6717_v20  ;;  %v6792_v19 = vld [vmem:[#allocation12 + $0x60] sm:$0xff]  }
 0x57b   :  { %3465 = vmatprep.subr.bf16.mxu0 %v6720_v21  ;;  %v6793_v20 = vld [vmem:[#allocation12 + $0x120] sm:$0xff]  }
 0x57c   :  { %v6794_v21 = vld [vmem:[#allocation12 + $0x20] sm:$0xff]  }
 0x57d   :  { %3294 = vmatpush1.bf16.msra.mxu1 %v6715_v15  ;;  %v6795_v15 = vld [vmem:[#allocation12 + $0x168] sm:$0xff]  }
 0x57e   :  { %3466 = vmatpush1.bf16.msra.mxu0 %v6718_v22  ;;  %3295 = vmatprep.subr.bf16.mxu1 %v6723_v23  ;;  %v6796_v22 = vld [vmem:[#allocation12 + $0x68] sm:$0xff]  }
 0x57f   :  { %3467 = vmatprep.subr.bf16.mxu0 %v6726_v24  ;;  %v6797_v23 = vld [vmem:[#allocation12 + $0x128] sm:$0xff]  }
 0x580   :  { %v6798_v24 = vld [vmem:[#allocation12 + $0x28] sm:$0xff]  }
 0x581   :  { %3296 = vmatpush1.bf16.msra.mxu1 %v6721_v25  ;;  %v6799_v25 = vld [vmem:[#allocation12 + $0x170] sm:$0xff]  }
 0x582   :  { %3468 = vmatpush1.bf16.msra.mxu0 %v6724_v26  ;;  %3297 = vmatprep.subr.bf16.mxu1 %v6729_v27  ;;  %v6800_v26 = vld [vmem:[#allocation12 + $0x70] sm:$0xff]  }
 0x583   :  { %3469 = vmatprep.subr.bf16.mxu0 %v6732_v29  ;;  %v6801_v27 = vld [vmem:[#allocation12 + $0x130] sm:$0xff]  }
 0x584   :  { %v6802_v29 = vld [vmem:[#allocation12 + $0x30] sm:$0xff]  }
 0x585   :  { %3298 = vmatpush1.bf16.msra.mxu1 %v6727_v30  ;;  %v6803_v30 = vld [vmem:[#allocation12 + $0x178] sm:$0xff]  }
 0x586   :  { %3470 = vmatpush1.bf16.msra.mxu0 %v6730_v31  ;;  %3299 = vmatprep.subr.bf16.mxu1 %v6735_v35  ;;  %v6804_v31 = vld [vmem:[#allocation12 + $0x78] sm:$0xff]  }
 0x587   :  { %3471 = vmatprep.subr.bf16.mxu0 %v6738_v37  ;;  %v6805_v35 = vld [vmem:[#allocation12 + $0x138] sm:$0xff]  }
 0x588   :  { %v6806_v37 = vld [vmem:[#allocation12 + $0x38] sm:$0xff]  }
 0x589   :  { %3300 = vmatpush1.bf16.msra.mxu1 %v6733_v38  ;;  %v6807_v38 = vld [vmem:[#allocation12 + $0x240] sm:$0xff]  }
 0x58a   :  { %3472 = vmatpush1.bf16.msra.mxu0 %v6736_v1  ;;  %3301 = vmatprep.subr.bf16.mxu1 %v6741_v39  ;;  %v6808_v1 = vld [vmem:[#allocation12 + $0xc0] sm:$0xff]  }
 0x58b   :  { %3473 = vmatprep.subr.bf16.mxu0 %v6744_v40 }
 0x58d   :  { %3302 = vmatpush1.bf16.msra.mxu1 %v6739_v43 }
 0x58e   :  { %3474 = vmatpush1.bf16.msra.mxu0 %v6742_v32  ;;  %3303 = vmatprep.subr.bf16.mxu1 %v6747_v33 }
 0x58f   :  { %3475 = vmatprep.subr.bf16.mxu0 %v6750_v34 }
 0x591   :  { %3304 = vmatpush1.bf16.msra.mxu1 %v6745_v44 }
 0x592   :  { %3476 = vmatpush1.bf16.msra.mxu0 %v6748_v45  ;;  %3305 = vmatprep.subr.bf16.mxu1 %v6753_v52 }
 0x593   :  { %3477 = vmatprep.subr.bf16.mxu0 %v6756_v53 }
 0x595   :  { %3306 = vmatpush1.bf16.msra.mxu1 %v6751_v54 }
 0x596   :  { %3478 = vmatpush1.bf16.msra.mxu0 %v6754_v58  ;;  %3307 = vmatprep.subr.bf16.mxu1 %v6759_v60 }
 0x597   :  { %3479 = vmatprep.subr.bf16.mxu0 %v6762_v61 }
 0x599   :  { %3308 = vmatpush1.bf16.msra.mxu1 %v6757_v62 }
 0x59a   :  { %3480 = vmatpush1.bf16.msra.mxu0 %v6760_v63  ;;  %3309 = vmatprep.subr.bf16.mxu1 %v6765_v0 }
 0x59b   :  { %3481 = vmatprep.subr.bf16.mxu0 %v6768_v41 }
 0x59d   :  { %3310 = vmatpush1.bf16.msra.mxu1 %v6763_v2 }
 0x59e   :  { %3482 = vmatpush1.bf16.msra.mxu0 %v6766_v46  ;;  %3311 = vmatprep.subr.bf16.mxu1 %v6771_v47 }
 0x59f   :  { %3483 = vmatprep.subr.bf16.mxu0 %v6774_v3 }
 0x5a1   :  { %3312 = vmatpush1.bf16.msra.mxu1 %v6769_v36 }
 0x5a2   :  { %3484 = vmatpush1.bf16.msra.mxu0 %v6772_v4  ;;  %5994 = vmatprep.subr.bf16.mxu1 %v6776_v51 }
 0x5a3   :  { %6038 = vmatprep.subr.bf16.mxu0 %v6775_v6 }
 0x5a4   :  { %3314 = vmatmul.mubr.bf16.vlgmr.msra.gmra.mrb[4].mxu1 %v5573_v5 }
 0x5a5   :  { %3486 = vmatmul.mubr.bf16.vlgmr.msra.gmra.mrb[8].mxu0 %v5573_v5  ;;  %5995 = vmatpush3.bf16.msra.mxu1 %v6778_v8 }
 0x5a6   :  { %6039 = vmatpush3.bf16.msra.mxu0 %v6777_v55  ;;  %5996 = vmatprep.subr.bf16.mxu1 %v6780_v10 }
 0x5a7   :  { %6040 = vmatprep.subr.bf16.mxu0 %v6779_v9 }
 0x5a9   :  { %5997 = vmatpush3.bf16.msra.mxu1 %v6782_v12 }
 0x5aa   :  { %6041 = vmatpush3.bf16.msra.mxu0 %v6781_v11  ;;  %5998 = vmatprep.subr.bf16.mxu1 %v6784_v48 }
 0x5ab   :  { %6042 = vmatprep.subr.bf16.mxu0 %v6783_v42 }
 0x5ad   :  { %5999 = vmatpush3.bf16.msra.mxu1 %v6786_v16 }
 0x5ae   :  { %6043 = vmatpush3.bf16.msra.mxu0 %v6785_v14  ;;  %6000 = vmatprep.subr.bf16.mxu1 %v6788_v28 }
 0x5af   :  { %6044 = vmatprep.subr.bf16.mxu0 %v6787_v13 }
 0x5b1   :  { %6001 = vmatpush3.bf16.msra.mxu1 %v6790_v17 }
 0x5b2   :  { %6045 = vmatpush3.bf16.msra.mxu0 %v6789_v7  ;;  %6002 = vmatprep.subr.bf16.mxu1 %v6792_v19 }
 0x5b3   :  { %6046 = vmatprep.subr.bf16.mxu0 %v6791_v18 }
 0x5b5   :  { %6003 = vmatpush3.bf16.msra.mxu1 %v6794_v21 }
 0x5b6   :  { %6047 = vmatpush3.bf16.msra.mxu0 %v6793_v20  ;;  %6004 = vmatprep.subr.bf16.mxu1 %v6796_v22 }
 0x5b7   :  { %6048 = vmatprep.subr.bf16.mxu0 %v6795_v15 }
 0x5b9   :  { %6005 = vmatpush3.bf16.msra.mxu1 %v6798_v24 }
 0x5ba   :  { %6049 = vmatpush3.bf16.msra.mxu0 %v6797_v23  ;;  %6006 = vmatprep.subr.bf16.mxu1 %v6800_v26 }
 0x5bb   :  { %6050 = vmatprep.subr.bf16.mxu0 %v6799_v25 }
 0x5bd   :  { %6007 = vmatpush3.bf16.msra.mxu1 %v6802_v29 }
 0x5be   :  { %6051 = vmatpush3.bf16.msra.mxu0 %v6801_v27  ;;  %6008 = vmatprep.subr.bf16.mxu1 %v6804_v31 }
 0x5bf   :  { %6052 = vmatprep.subr.bf16.mxu0 %v6803_v30 }
 0x5c1   :  { %6009 = vmatpush3.bf16.msra.mxu1 %v6806_v37 }
 0x5c2   :  { %6053 = vmatpush3.bf16.msra.mxu0 %v6805_v35  ;;  %6016 = vmatprep.subr.bf16.mxu1 %v6808_v1 }
 0x5c3   :  { %6082 = vmatprep.subr.bf16.mxu0 %v6807_v38 }
 0x677   :  { %v7368_v39 = vpop.f32.mrb[4].mxu1 }
 0x678   :  { %v7370_v40 = vpop.f32.mrb[8].mxu0  ;;  %v7372_v43 = vpop.f32.mrb[5].mxu1 }
 0x679   :  { %v7374_v32 = vpop.f32.mrb[9].mxu0  ;;  %v7376_v33 = vpop.f32.mrb[6].mxu1 }
 0x67a   :  { %v3499_v34 = vsel %vm3498_vm9, %v7376_v33, 0.0  ;;  %v7380_v44 = vpop.f32.mrb[10].mxu0  ;;  %v7382_v45 = vpop.f32.mrb[7].mxu1 }
 0x67b   :  { %v3500_v52 = vadd.f32 %v3499_v34, %v7368_v39  ;;  %v3515_v53 = vsel %vm3498_vm9, %v7380_v44, 0.0  ;;  %v3507_v54 = vsel %vm3498_vm9, %v7382_v45, 0.0  ;;  %v7389_v58 = vpop.f32.mrb[11].mxu0 }
 0x67c   :  { %v3516_v60 = vadd.f32 %v3515_v53, %v7370_v40  ;;  %v3508_v61 = vadd.f32 %v3507_v54, %v7372_v43  ;;  %v3523_v62 = vsel %vm3498_vm9, %v7389_v58, 0.0 }
 0x67d   :  { %v3501_v63 = vrot.slane %v3500_v52, 4  ;;  %v3524_v0 = vadd.f32 %v3523_v62, %v7374_v32 }
 0x67e   :  { %v3517_v41 = vrot.slane %v3516_v60, 4  ;;  %v3509_v2 = vrot.slane %v3508_v61, 4 }
 0x67f   :  { %v3502_v46 = vadd.f32 %v3501_v63, %v3500_v52  ;;  %v3525_v47 = vrot.slane %v3524_v0, 4 }
 0x680   :  { %v3518_v3 = vadd.f32 %v3517_v41, %v3516_v60  ;;  %v3510_v36 = vadd.f32 %v3509_v2, %v3508_v61 }
 0x681   :  { %v3503_v4 = vrot.slane %v3502_v46, 2  ;;  %v3526_v5 = vadd.f32 %v3525_v47, %v3524_v0 }
 0x682   :  { %v3519_v6 = vrot.slane %v3518_v3, 2  ;;  %v3511_v51 = vrot.slane %v3510_v36, 2 }
 0x683   :  { %v3504_v55 = vadd.f32 %v3503_v4, %v3502_v46  ;;  %v3527_v8 = vrot.slane %v3526_v5, 2 }
 0x684   :  { %v3520_v9 = vadd.f32 %v3519_v6, %v3518_v3  ;;  %v3512_v10 = vadd.f32 %v3511_v51, %v3510_v36 }
 0x685   :  { %v3505_v11 = vrot.slane %v3504_v55, 1  ;;  %v3528_v12 = vadd.f32 %v3527_v8, %v3526_v5 }
 0x686   :  { %v3521_v42 = vrot.slane %v3520_v9, 1  ;;  %v3513_v48 = vrot.slane %v3512_v10, 1 }
 0x687   :  { %v3506_v14 = vadd.f32 %v3505_v11, %v3504_v55  ;;  %v3529_v16 = vrot.slane %v3528_v12, 1 }
 0x688   :  { %v3522_v13 = vadd.f32 %v3521_v42, %v3520_v9  ;;  %v3514_v28 = vadd.f32 %v3513_v48, %v3512_v10 }
 0x689   :  { %v7396_v7 = vmul.f32 0.071428575, %v3506_v14  ;;  %v3530_v17 = vadd.f32 %v3529_v16, %v3528_v12 }
 0x68a   :  { %v7398_v18 = vmul.f32 0.071428575, %v3522_v13  ;;  %v7400_v19 = vmul.f32 0.071428575, %v3514_v28 }
 0x68b   :  { %v3536_v20 = vsub.f32 %v7368_v39, %v7396_v7  ;;  %v3540_v21 = vsub.f32 %v7376_v33, %v7396_v7  ;;  %v7406_v15 = vmul.f32 0.071428575, %v3530_v17 }
 0x68c   :  { %v3538_v22 = vsub.f32 %v7370_v40, %v7398_v18  ;;  %v3542_v23 = vsub.f32 %v7380_v44, %v7398_v18  ;;  %v3537_v24 = vsub.f32 %v7372_v43, %v7400_v19  ;;  %v3541_v25 = vsub.f32 %v7382_v45, %v7400_v19 }
 0x68d   :  { %v3544_v26 = vmul.f32 %v3536_v20, %v3536_v20  ;;  %v3548_v27 = vmul.f32 %v3540_v21, %v3540_v21  ;;  %v3539_v29 = vsub.f32 %v7374_v32, %v7406_v15  ;;  %v3543_v30 = vsub.f32 %v7389_v58, %v7406_v15 }
 0x68e   :  { %v3546_v31 = vmul.f32 %v3538_v22, %v3538_v22  ;;  %v3550_v35 = vmul.f32 %v3542_v23, %v3542_v23  ;;  %v3545_v37 = vmul.f32 %v3537_v24, %v3537_v24  ;;  %v3549_v38 = vmul.f32 %v3541_v25, %v3541_v25 }
 0x68f   :  { %v3552_v1 = vsel %vm3498_vm9, %v3548_v27, 0.0  ;;  %v3547_v34 = vmul.f32 %v3539_v29, %v3539_v29  ;;  %v3551_v52 = vmul.f32 %v3543_v30, %v3543_v30  ;;  %v3496_v30 = vld [vmem:[%s7628_s10] sm:$0xf] }
 0x690   :  { %v3553_v53 = vadd.f32 %v3552_v1, %v3544_v26  ;;  %v3568_v54 = vsel %vm3498_vm9, %v3550_v35, 0.0  ;;  %v3560_v60 = vsel %vm3498_vm9, %v3549_v38, 0.0  ;;  %v3611_v35 = vsub.s32 3, %v7183_v56 }
 0x691   :  { %v3569_v61 = vadd.f32 %v3568_v54, %v3546_v31  ;;  %v3561_v62 = vadd.f32 %v3560_v60, %v3545_v37  ;;  %v3576_v63 = vsel %vm3498_vm9, %v3551_v52, 0.0  ;;  %v3607_v31 = vsub.s32 2, %v7183_v56 }
 0x692   :  { %v3554_v0 = vrot.slane %v3553_v53, 4  ;;  %v3577_v41 = vadd.f32 %v3576_v63, %v3547_v34  ;;  %v3600_v37 = vrot.slane %v3496_v30, %v7186_v57  ;;  %v3604_v1 = vrot.slane %v3496_v30, %v7192_v59 }
 0x693   :  { %v3570_v2 = vrot.slane %v3569_v61, 4  ;;  %v3562_v46 = vrot.slane %v3561_v62, 4  ;;  %v3608_v38 = vrot.slane %v3496_v30, %v3607_v31  ;;  %v3612_v52 = vrot.slane %v3496_v30, %v3611_v35 }
 0x694   :  { %v3555_v47 = vadd.f32 %v3554_v0, %v3553_v53  ;;  %v3578_v3 = vrot.slane %v3577_v41, 4 }
 0x695   :  { %v3571_v36 = vadd.f32 %v3570_v2, %v3569_v61  ;;  %v3563_v4 = vadd.f32 %v3562_v46, %v3561_v62 }
 0x696   :  { %v3556_v5 = vrot.slane %v3555_v47, 2  ;;  %v3579_v6 = vadd.f32 %v3578_v3, %v3577_v41 }
 0x697   :  { %v3572_v51 = vrot.slane %v3571_v36, 2  ;;  %v3564_v55 = vrot.slane %v3563_v4, 2 }
 0x698   :  { %v3557_v8 = vadd.f32 %v3556_v5, %v3555_v47  ;;  %v3580_v9 = vrot.slane %v3579_v6, 2 }
 0x699   :  { %v3573_v10 = vadd.f32 %v3572_v51, %v3571_v36  ;;  %v3565_v11 = vadd.f32 %v3564_v55, %v3563_v4 }
 0x69a   :  { %v3558_v12 = vrot.slane %v3557_v8, 1  ;;  %v3581_v42 = vadd.f32 %v3580_v9, %v3579_v6 }
 0x69b   :  { %v3574_v48 = vrot.slane %v3573_v10, 1  ;;  %v3566_v14 = vrot.slane %v3565_v11, 1 }
 0x69c   :  { %v3559_v16 = vadd.f32 %v3558_v12, %v3557_v8  ;;  %v3582_v13 = vrot.slane %v3581_v42, 1 }
 0x69d   :  { %v3575_v28 = vadd.f32 %v3574_v48, %v3573_v10  ;;  %v3567_v17 = vadd.f32 %v3566_v14, %v3565_v11 }
 0x69e   :  { %v3584_v20 = vmul.f32 0.071428575, %v3559_v16  ;;  %v3583_v21 = vadd.f32 %v3582_v13, %v3581_v42 }
 0x69f   :  { %v3586_v22 = vmul.f32 0.071428575, %v3575_v28  ;;  %v3585_v23 = vmul.f32 0.071428575, %v3567_v17 }
 0x6a0   :  { %v3588_v24 = vadd.f32 1e-05, %v3584_v20  ;;  %v3587_v25 = vmul.f32 0.071428575, %v3583_v21 }
 0x6a1   :  { %v3590_v26 = vadd.f32 1e-05, %v3586_v22  ;;  %v3589_v27 = vadd.f32 1e-05, %v3585_v23 }
 0x6a2   :  { %6909 = vrsqrt.f32 %v3588_v24  ;;  %v3591_v29 = vadd.f32 1e-05, %v3587_v25 }
 0x6a3   :  { %6911 = vrsqrt.f32 %v3590_v26 }
 0x6a4   :  { %6913 = vrsqrt.f32 %v3589_v27 }
 0x6a5   :  { %6915 = vrsqrt.f32 %v3591_v29 }
 0x6ac   :  { %v6910_v34 = vpop.eup %6909 }
 0x6ad   :  { %v6912_v53 = vpop.eup %6911  ;;  %v3617_v54 = vmul.f32 %v6910_v34, %v3600_v37 }
 0x6ae   :  { %v6914_v60 = vpop.eup %6913  ;;  %v3619_v61 = vmul.f32 %v6912_v53, %v3608_v38 }
 0x6af   :  { %v6916_v62 = vpop.eup %6915  ;;  %v3621_v63 = vmul.f32 %v3617_v54, %v7396_v7  ;;  %v3658_v0 = vrot.slane %v3617_v54, %v7186_v57  ;;  %v3618_v41 = vmul.f32 %v6914_v60, %v3604_v1 }
 0x6b0   :  { %v3623_v2 = vmul.f32 %v3619_v61, %v7398_v18  ;;  %v3666_v56 = vrot.slane %v3619_v61, %v7186_v57  ;;  %v3620_v46 = vmul.f32 %v6916_v62, %v3612_v52 }
 0x6b1   :  { %v3671_v47 = vmul.f32 %v3658_v0, %v7368_v39  ;;  %v3675_v3 = vmul.f32 %v3658_v0, %v7376_v33  ;;  %v3622_v36 = vmul.f32 %v3618_v41, %v7400_v19  ;;  %v3662_v4 = vrot.slane %v3618_v41, %v7186_v57 }
 0x6b2   :  { %v3673_v5 = vmul.f32 %v3666_v56, %v7370_v40  ;;  %v3677_v7 = vmul.f32 %v3666_v56, %v7380_v44  ;;  %v3624_v6 = vmul.f32 %v3620_v46, %v7406_v15  ;;  %v3670_v51 = vrot.slane %v3620_v46, %v7186_v57  ;;  %v3497_v44 = vld [vmem:[%s7629_s11] sm:$0xf] }
 0x6b3   :  { %v3629_v18 = vcombine.low %v3621_v63, %v3622_v36  ;;  %v3672_v55 = vmul.f32 %v3662_v4, %v7372_v43  ;;  %v3676_v8 = vmul.f32 %v3662_v4, %v7382_v45 }
 0x6b4   :  { %v3630_v39 = vcombine.low %v3623_v2, %v3624_v6  ;;  %v3674_v33 = vmul.f32 %v3670_v51, %v7374_v32  ;;  %v3678_v19 = vmul.f32 %v3670_v51, %v7389_v58 }
 0x6b5   :  { %v3637_v9 = vrot.slane %v3629_v18, %v7260_v50 }
 0x6b6   :  { %v3644_v40 = vrot.slane %v3630_v39, %v7260_v50  ;;  %v6811_v39 = vld [vmem:[#allocation12 + $0x248] sm:$0xff]  }
 0x6b8   :  { %v3645_v10 = vcombine.low %v3637_v9, %v3644_v40 }
 0x6ba   :  { %v3652_v15 = vrot.slane %v3645_v10, %v7260_v50 }
 0x6bc   :  { %v3654_v11 = vsub.f32 %v3497_v44, %v3652_v15 }
 0x6be   :  { %v3683_v43 = vrot.slane %v3654_v11, %v7186_v57  ;;  %v3687_v45 = vrot.slane %v3654_v11, %v7192_v59  ;;  %v3691_v12 = vrot.slane %v3654_v11, %v3607_v31  ;;  %v3695_v32 = vrot.slane %v3654_v11, %v3611_v35 }
 0x6c0   :  { %v3700_v42 = vadd.f32 %v3683_v43, %v3671_v47  ;;  %v3701_v58 = vadd.f32 %v3687_v45, %v3672_v55  ;;  %v3702_v48 = vadd.f32 %v3691_v12, %v3673_v5  ;;  %v3703_v14 = vadd.f32 %v3695_v32, %v3674_v33 }
 0x6c1   :  { %v3704_v16 = vadd.f32 %v3683_v43, %v3675_v3  ;;  %v3705_v13 = vadd.f32 %v3687_v45, %v3676_v8  ;;  %v3706_v28 = vadd.f32 %v3691_v12, %v3677_v7  ;;  %v3707_v17 = vadd.f32 %v3695_v32, %v3678_v19 }
 0x6c2   :  { %vm3708_vm12 = vcmp.ge.f32.partialorder %v3700_v42, 0.0  ;;  %vm3709_vm13 = vcmp.ge.f32.partialorder %v3701_v58, 0.0  ;;  %vm3710_vm15 = vcmp.ge.f32.partialorder %v3702_v48, 0.0  ;;  %vm3711_vm0 = vcmp.ge.f32.partialorder %v3703_v14, 0.0 }
 0x6c3   :  { %vm3712_vm2 = vcmp.ge.f32.partialorder %v3704_v16, 0.0  ;;  %vm3713_vm3 = vcmp.ge.f32.partialorder %v3705_v13, 0.0  ;;  %vm3714_vm4 = vcmp.ge.f32.partialorder %v3706_v28, 0.0  ;;  %vm3715_vm5 = vcmp.ge.f32.partialorder %v3707_v17, 0.0 }
 0x6c4   :  { %v3716_v57 = vmul.f32 0.2, %v3700_v42  ;;  %v3717_v59 = vmul.f32 0.2, %v3701_v58  ;;  %v3718_v50 = vmul.f32 0.2, %v3702_v48 }
 0x6c5   :  { %v3719_v20 = vmul.f32 0.2, %v3703_v14  ;;  %v3720_v21 = vmul.f32 0.2, %v3704_v16  ;;  %v3721_v22 = vmul.f32 0.2, %v3705_v13 }
 0x6c6   :  { %v3722_v23 = vmul.f32 0.2, %v3706_v28  ;;  %v3723_v24 = vmul.f32 0.2, %v3707_v17  ;;  %v3724_v25 = vsel %vm3708_vm12, %v3700_v42, %v3716_v57  ;;  %v3725_v26 = vsel %vm3709_vm13, %v3701_v58, %v3717_v59 }
 0x6c7   :  { %v3726_v27 = vsel %vm3710_vm15, %v3702_v48, %v3718_v50  ;;  %v3727_v29 = vsel %vm3711_vm0, %v3703_v14, %v3719_v20  ;;  %v3728_v30 = vsel %vm3712_vm2, %v3704_v16, %v3720_v21  ;;  %v3729_v31 = vsel %vm3713_vm3, %v3705_v13, %v3721_v22 }
 0x6c8   :  { %v3730_v35 = vsel %vm3714_vm4, %v3706_v28, %v3722_v23  ;;  %v3731_v37 = vsel %vm3715_vm5, %v3707_v17, %v3723_v24  ;;  %v7463_v38 = vpack.c.bf16 %v3728_v30, %v3724_v25  ;;  %v7465_v1 = vpack.c.bf16 %v3729_v31, %v3725_v26 }
 0x6c9   :  { %v7467_v34 = vpack.c.bf16 %v3730_v35, %v3726_v27  ;;  %v7469_v52 = vpack.c.bf16 %v3731_v37, %v3727_v29  ;;  %v5990_v53 = vpack.c.bf16 %v3725_v26, %v3724_v25  ;;  %v5991_v54 = vpack.c.bf16 %v3727_v29, %v3726_v27 }
 0x6ca   :  { %v3737_v60 = vshrl.u32 %v7463_v38, 16  ;;  %v3740_v61 = vshll.u32 %v7463_v38, 16  ;;  %v3744_v62 = vshrl.u32 %v7465_v1, 16  ;;  %v3747_v63 = vshll.u32 %v7465_v1, 16 }
 0x6cb   :  { %v3751_v0 = vshrl.u32 %v7467_v34, 16  ;;  %v3754_v41 = vshll.u32 %v7467_v34, 16  ;;  %v3758_v2 = vshrl.u32 %v7469_v52, 16  ;;  %v3761_v56 = vshll.u32 %v7469_v52, 16  ;;  %3798 = vst [vmem:[#allocation6 + $0x10] sm:$0x77] %v5990_v53 }
 0x6cc   :  { %3799 = vst [vmem:[#allocation6 + $0x18] sm:$0x77] %v5991_v54  ;;  %v3739_v46 = vrot.slane %v3737_v60, 7  ;;  %v3746_v47 = vrot.slane %v3744_v62, 7  ;;  %v3801_v3 = vshrl.u32 %v5990_v53, 16  ;;  %v3804_v36 = vshll.u32 %v5990_v53, 16 }
 0x6cd   :  { %v3753_v4 = vrot.slane %v3751_v0, 7  ;;  %v3760_v5 = vrot.slane %v3758_v2, 7  ;;  %v3810_v7 = vshrl.u32 %v5991_v54, 16  ;;  %v3813_v6 = vshll.u32 %v5991_v54, 16 }
 0x6ce   :  { %v7487_v51 = vor.u32 %v3740_v61, %v3739_v46  ;;  %v7491_v18 = vor.u32 %v3747_v63, %v3746_v47  ;;  %v7493_v55 = vrot.slane %v3801_v3, 4  ;;  %v3806_v8 = vrot.slane %v3804_v36, 5 }
 0x6cf   :  { %v3756_v33 = vor.u32 %v3754_v41, %v3753_v4  ;;  %v3763_v19 = vor.u32 %v3761_v56, %v3760_v5  ;;  %v3812_v9 = vrot.slane %v3810_v7, 4  ;;  %v3815_v40 = vrot.slane %v3813_v6, 5 }
 0x6d0   :  { %v3807_v10 = vor.u32 %v3806_v8, %v7493_v55  ;;  %v3822_v44 = vrot.slane %v7463_v38, 1  ;;  %v3823_v15 = vrot.slane %v7465_v1, 1  ;;  %v3824_v11 = vrot.slane %v7467_v34, 1 }
 0x6d1   :  { %v3770_v43 = vsel %vm7211_vm14, 0, %v3756_v33  ;;  %v3771_v45 = vsel %vm7211_vm14, 0, %v3763_v19  ;;  %v3816_v12 = vor.u32 %v3815_v40, %v3812_v9  ;;  %v3825_v32 = vrot.slane %v7469_v52, 1 }
 0x6d2   :  { %v5832_v42 = vcombine.low %v3770_v43, %v3771_v45  ;;  %v3808_v58 = vrot.slane %v3807_v10, 4  ;;  %v3835_v48 = vsel %vm7497_vm7, %v3824_v11, 0  ;;  %v3851_v14 = vrot.slane %v7463_v38, 3 }
 0x6d3   :  { %v3817_v16 = vrot.slane %v3816_v12, 4  ;;  %v3836_v13 = vsel %vm7497_vm7, %v3825_v32, 0  ;;  %v3852_v28 = vrot.slane %v7465_v1, 3  ;;  %v3853_v17 = vrot.slane %v7467_v34, 3 }
 0x6d4   :  { %3785 = vst [vmem:[#allocation6 + $0x8] sm:$0x77] %v5832_v42  ;;  %v5836_v57 = vcombine.low %v3835_v48, %v3836_v13  ;;  %v3854_v59 = vrot.slane %v7469_v52, 3  ;;  %v5992_v50 = vpack.c.bf16 %v3729_v31, %v3728_v30  ;;  %v5993_v20 = vpack.c.bf16 %v3731_v37, %v3730_v35  ;;  %3820 = vst [vmem:[#allocation6 + $0x20] sm:$0x77] %v3808_v58 }
 0x6d5   :  { %3821 = vst [vmem:[#allocation6 + $0x28] sm:$0x77] %v3817_v16  ;;  %v3861_v21 = vsel %vm7211_vm14, 0, %v3853_v17  ;;  %v3893_v22 = vrot.slane %v7493_v55, 4  ;;  %v3899_v23 = vrot.slane %v3812_v9, 4  ;;  %v3935_v24 = vrot.slane %v3737_v60, 4 }
 0x6d6   :  { %3850 = vst [vmem:[#allocation6 + $0x38] sm:$0x77] %v5836_v57  ;;  %v3862_v25 = vsel %vm7211_vm14, 0, %v3854_v59  ;;  %v3895_v26 = vshll.u32 %v5992_v50, 16  ;;  %v3901_v27 = vshll.u32 %v5993_v20, 16  ;;  %v3905_v29 = vshrl.u32 %v5992_v50, 16 }
 0x6d7   :  { %v5838_v31 = vcombine.low %v3861_v21, %v3862_v25  ;;  %v3910_v35 = vshrl.u32 %v5993_v20, 16  ;;  %v3923_v37 = vrot.slane %v5992_v50, 5  ;;  %v3924_v53 = vrot.slane %v5993_v20, 5  ;;  %v6809_v20 = vld [vmem:[#allocation12 + $0x200] sm:$0xff]  }
 0x6d8   :  { %v3897_v54 = vrot.slane %v3895_v26, 5  ;;  %v3903_v46 = vrot.slane %v3901_v27, 5  ;;  %v3907_v60 = vrot.slane %v3905_v29, 4  ;;  %v3936_v47 = vrot.slane %v3740_v61, 5  ;;  %v6813_v26 = vld [vmem:[#allocation12 + $0x208] sm:$0xff]   ;;  %v6815_v27 = vld [vmem:[#allocation12 + $0x250] sm:$0xff]  }
 0x6d9   :  { %v3874_v3 = vrot.slane %v5838_v31, 5  ;;  %v3912_v36 = vrot.slane %v3910_v35, 4  ;;  %v3925_v4 = vrot.slane %v3923_v37, 4  ;;  %v3926_v5 = vrot.slane %v3924_v53, 4  ;;  %3932 = vst [vmem:[#allocation6 + $0x28] sm:$0x88] %v3924_v53 }
 0x6da   :  { %3931 = vst [vmem:[#allocation6 + $0x20] sm:$0x88] %v3923_v37  ;;  %v3904_v7 = vsel %vm7529_vm1, %v3899_v23, %v3903_v46  ;;  %v3908_v6 = vor.u32 %v3907_v60, %v3897_v54  ;;  %v3938_v55 = vrot.slane %v3744_v62, 4  ;;  %v3939_v8 = vrot.slane %v3747_v63, 5  ;;  %v6810_v53 = vld [vmem:[#allocation12 + $0x80] sm:$0xff]  }
 0x6db   :  { %v3876_v33 = vrot.slane %v3874_v3, 4  ;;  %3882 = vst [vmem:[#allocation6 + $0x8] sm:$0x88] %v3874_v3  ;;  %v3913_v19 = vor.u32 %v3912_v36, %v3903_v46  ;;  %3920 = vst [vmem:[#allocation6 + $0x18] sm:$0x88] %v3904_v7  ;;  %v3941_v61 = vrot.slane %v3751_v0, 4  ;;  %v3898_v63 = vsel %vm7529_vm1, %v3893_v22, %v3897_v54 }
 0x6dc   :  { %3934 = vst [vmem:[#allocation6 + $0x68] sm:$0x33] %v3926_v5  ;;  %v3942_v9 = vrot.slane %v3754_v41, 5  ;;  %3933 = vst [vmem:[#allocation6 + $0x60] sm:$0x33] %v3925_v4  ;;  %v3909_v40 = vrot.slane %v3908_v6, 4  ;;  %v3937_v42 = vor.u32 %v3936_v47, %v3935_v24  ;;  %v3940_v58 = vor.u32 %v3939_v8, %v3938_v55 }
 0x6dd   :  { %v3944_v10 = vrot.slane %v3758_v2, 4  ;;  %v3945_v62 = vrot.slane %v3761_v56, 5  ;;  %3884 = vst [vmem:[#allocation6 + $0x48] sm:$0x33] %v3876_v33  ;;  %v3914_v11 = vrot.slane %v3913_v19, 4  ;;  %v3768_v34 = vsel %vm7211_vm14, 0, %v7487_v51 }
 0x6de   :  { %v3943_v43 = vor.u32 %v3942_v9, %v3941_v61  ;;  %3919 = vst [vmem:[#allocation6 + $0x10] sm:$0x88] %v3898_v63  ;;  %v3769_v0 = vsel %vm7211_vm14, 0, %v7491_v18  ;;  %3921 = vst [vmem:[#allocation6 + $0x50] sm:$0x33] %v3909_v40  ;;  %v3859_v52 = vsel %vm7211_vm14, 0, %v3851_v14 }
 0x6df   :  { %v3946_v41 = vor.u32 %v3945_v62, %v3944_v10  ;;  %v5831_v2 = vcombine.low %v3768_v34, %v3769_v0  ;;  %v3860_v56 = vsel %vm7211_vm14, 0, %v3852_v28  ;;  %3922 = vst [vmem:[#allocation6 + $0x58] sm:$0x33] %v3914_v11  ;;  %v3833_v51 = vsel %vm7497_vm7, %v3822_v44, 0  ;;  %v6812_v54 = vld [vmem:[#allocation12 + $0xc8] sm:$0xff]   ;;  %v6817_v46 = vld [vmem:[#allocation12 + $0x210] sm:$0xff]  }
 0x6e0   :  { %v3953_v45 = vsel %vm7497_vm7, %v3943_v43, 0  ;;  %v5837_v12 = vcombine.low %v3859_v52, %v3860_v56  ;;  %v3834_v18 = vsel %vm7497_vm7, %v3823_v15, 0  ;;  %v3951_v38 = vsel %vm7497_vm7, %v3937_v42, 0  ;;  %v6819_v47 = vld [vmem:[#allocation12 + $0x258] sm:$0xff]   ;;  %v6814_v3 = vld [vmem:[#allocation12 + $0x88] sm:$0xff]   ;;  %v6816_v36 = vld [vmem:[#allocation12 + $0xd0] sm:$0xff]  }
 0x6e1   :  { %v3954_v32 = vsel %vm7497_vm7, %v3946_v41, 0  ;;  %3784 = vst [vmem:[#allocation6] sm:$0x77] %v5831_v2  ;;  %v5835_v49 = vcombine.low %v3833_v51, %v3834_v18  ;;  %v3952_v44 = vsel %vm7497_vm7, %v3940_v58, 0  ;;  %v7577_v57 = vld [vmem:[#allocation6 + $0x20] sm:$0xff]  ;;  %v6821_v4 = vld [vmem:[#allocation12 + $0x218] sm:$0xff]  }
 0x6e2   :  { %v5842_v48 = vcombine.low %v3953_v45, %v3954_v32  ;;  %v3873_v14 = vrot.slane %v5837_v12, 5  ;;  %v5841_v13 = vcombine.low %v3951_v38, %v3952_v44  ;;  %v7583_v30 = vld [vmem:[#allocation6 + $0x8] sm:$0xff]  ;;  %v6823_v5 = vld [vmem:[#allocation12 + $0x260] sm:$0xff]   ;;  %v6818_v7 = vld [vmem:[#allocation12 + $0x90] sm:$0xff]  }
 0x6e3   :  { %3849 = vst [vmem:[#allocation6 + $0x30] sm:$0x77] %v5835_v49  ;;  %v7579_v22 = vld [vmem:[#allocation6 + $0x60] sm:$0x33]  ;;  %v6820_v6 = vld [vmem:[#allocation12 + $0xd8] sm:$0xff]   ;;  %v6827_v8 = vld [vmem:[#allocation12 + $0x268] sm:$0xff]  }
 0x6e4   :  { %v3966_v1 = vrot.slane %v5842_v48, 5  ;;  %v3875_v16 = vrot.slane %v3873_v14, 4  ;;  %3881 = vst [vmem:[#allocation6] sm:$0x88] %v3873_v14  ;;  %v3965_v21 = vrot.slane %v5841_v13, 5  ;;  %v5853_v23 = vcombine.high %v7577_v57, %v7579_v22  ;;  %v6825_v55 = vld [vmem:[#allocation12 + $0x220] sm:$0xff]  }
 0x6e5   :  { %v3979_v15 = vld [vmem:[#allocation6 + $0x10] sm:$0xff]  ;;  %v7585_v31 = vld [vmem:[#allocation6 + $0x48] sm:$0x33]  ;;  %v6822_v33 = vld [vmem:[#allocation12 + $0x98] sm:$0xff]   ;;  %v5852_v45 = vcombine.low %v7577_v57, %v7579_v22 }
 0x6e6   :  { %v3968_v28 = vrot.slane %v3966_v1, 4  ;;  %3974 = vst [vmem:[#allocation6 + $0x38] sm:$0x88] %v3966_v1  ;;  %v3987_v17 = vld [vmem:[#allocation6 + $0x50] sm:$0x33]  ;;  %v3967_v24 = vrot.slane %v3965_v21, 4  ;;  %v5847_v60 = vcombine.high %v7583_v30, %v7585_v31  ;;  %v5846_v44 = vcombine.low %v7583_v30, %v7585_v31 }
 0x6e7   :  { %3883 = vst [vmem:[#allocation6 + $0x40] sm:$0x33] %v3875_v16  ;;  %v5848_v59 = vcombine.low %v3979_v15, %v3987_v17  ;;  %v5849_v50 = vcombine.high %v3979_v15, %v3987_v17  ;;  %3973 = vst [vmem:[#allocation6 + $0x30] sm:$0x88] %v3965_v21  ;;  %v6824_v19 = vld [vmem:[#allocation12 + $0xe0] sm:$0xff]   ;;  %v6829_v61 = vld [vmem:[#allocation12 + $0x228] sm:$0xff]  }
 0x6e8   :  { %3976 = vst [vmem:[#allocation6 + $0x78] sm:$0x33] %v3968_v28  ;;  %3975 = vst [vmem:[#allocation6 + $0x70] sm:$0x33] %v3967_v24  ;;  %v6831_v9 = vld [vmem:[#allocation12 + $0x270] sm:$0xff]   ;;  %v6826_v40 = vld [vmem:[#allocation12 + $0xa0] sm:$0xff]  }
 0x6e9   :  { %5218 = vmatprep.mubr.bf16.mxu0 %v5849_v50  ;;  %v6828_v10 = vld [vmem:[#allocation12 + $0xe8] sm:$0xff]   ;;  %v6833_v62 = vld [vmem:[#allocation12 + $0x230] sm:$0xff]   ;;  %v6835_v63 = vld [vmem:[#allocation12 + $0x278] sm:$0xff]  }
 0x6ea   :  { %5219 = vmatmul.mubr.bf16.vlgmr.msra.gmra.mrb[12].mxu0 %v5848_v59  ;;  %v6830_v11 = vld [vmem:[#allocation12 + $0xa8] sm:$0xff]   ;;  %v6832_v43 = vld [vmem:[#allocation12 + $0xf0] sm:$0xff]   ;;  %v6837_v34 = vld [vmem:[#allocation12 + $0x238] sm:$0xff]  }
 0x6eb   :  { %v3977_v25 = vld [vmem:[#allocation6] sm:$0xff]  ;;  %6083 = vmatpush3.bf16.msra.mxu0 %v6809_v20  ;;  %5300 = vmatprep.mubr.bf16.mxu0 %v5853_v23  ;;  %v6834_v41 = vld [vmem:[#allocation12 + $0xb0] sm:$0xff]   ;;  %v6836_v2 = vld [vmem:[#allocation12 + $0xf8] sm:$0xff]  }
 0x6ec   :  { %6084 = vmatprep.subr.bf16.mxu0 %v6811_v39  ;;  %v6839_v0 = vld [vmem:[#allocation12 + $0x340] sm:$0xff]   ;;  %v6843_v12 = vld [vmem:[#allocation12 + $0x348] sm:$0xff]   ;;  %v6838_v18 = vld [vmem:[#allocation12 + $0xb8] sm:$0xff]  }
 0x6ed   :  { %v6841_v52 = vld [vmem:[#allocation12 + $0x300] sm:$0xff]   ;;  %v6845_v42 = vld [vmem:[#allocation12 + $0x308] sm:$0xff]   ;;  %v6847_v58 = vld [vmem:[#allocation12 + $0x350] sm:$0xff]  }
 0x6ee   :  { %v3985_v29 = vld [vmem:[#allocation6 + $0x40] sm:$0x33]  ;;  %v7593_v51 = vld [vmem:[#allocation6 + $0x30] sm:$0xff]  ;;  %v7597_v48 = vld [vmem:[#allocation6 + $0x18] sm:$0xff] }
 0x6ef   :  { %v5844_v35 = vcombine.low %v3977_v25, %v3985_v29  ;;  %v5845_v37 = vcombine.high %v3977_v25, %v3985_v29  ;;  %6085 = vmatpush3.bf16.msra.mxu0 %v6813_v26  ;;  %v7589_v56 = vld [vmem:[#allocation6 + $0x70] sm:$0x33]  ;;  %v6840_v49 = vld [vmem:[#allocation12 + $0x1c0] sm:$0xff]   ;;  %v7599_v14 = vld [vmem:[#allocation6 + $0x58] sm:$0x33] }
 0x6f0   :  { %6086 = vmatprep.subr.bf16.mxu0 %v6815_v27  ;;  %v5857_v32 = vcombine.high %v7593_v51, %v7589_v56  ;;  %v6842_v38 = vld [vmem:[#allocation12 + $0x180] sm:$0xff]   ;;  %v6844_v1 = vld [vmem:[#allocation12 + $0x1c8] sm:$0xff]   ;;  %v6849_v16 = vld [vmem:[#allocation12 + $0x310] sm:$0xff]   ;;  %v5851_v15 = vcombine.high %v7597_v48, %v7599_v14 }
 0x6f1   :  { %5136 = vmatprep.mubr.bf16.mxu1 %v5845_v37  ;;  %v6851_v13 = vld [vmem:[#allocation12 + $0x358] sm:$0xff]   ;;  %v6846_v28 = vld [vmem:[#allocation12 + $0x188] sm:$0xff]   ;;  %v6848_v17 = vld [vmem:[#allocation12 + $0x1d0] sm:$0xff]  }
 0x6f2   :  { %5137 = vmatmul.mubr.bf16.vlgmr.msra.gmra.mrb[8].mxu1 %v5844_v35  ;;  %v6853_v57 = vld [vmem:[#allocation12 + $0x318] sm:$0xff]   ;;  %v6855_v59 = vld [vmem:[#allocation12 + $0x360] sm:$0xff]   ;;  %v6850_v50 = vld [vmem:[#allocation12 + $0x190] sm:$0xff]  }
 0x6f3   :  { %6017 = vmatpush3.bf16.msra.mxu1 %v6810_v53  ;;  %5177 = vmatprep.mubr.bf16.mxu1 %v5847_v60  ;;  %v6852_v20 = vld [vmem:[#allocation12 + $0x1d8] sm:$0xff]   ;;  %v6857_v21 = vld [vmem:[#allocation12 + $0x320] sm:$0xff]   ;;  %v6859_v22 = vld [vmem:[#allocation12 + $0x368] sm:$0xff]  }
 0x6f4   :  { %6018 = vmatprep.subr.bf16.mxu1 %v6812_v54  ;;  %6087 = vmatpush3.bf16.msra.mxu0 %v6817_v46  ;;  %v6854_v39 = vld [vmem:[#allocation12 + $0x198] sm:$0xff]   ;;  %v6856_v23 = vld [vmem:[#allocation12 + $0x1e0] sm:$0xff]   ;;  %v6861_v24 = vld [vmem:[#allocation12 + $0x328] sm:$0xff]   ;;  %v5856_v46 = vcombine.low %v7593_v51, %v7589_v56 }
 0x6f5   :  { %6088 = vmatprep.subr.bf16.mxu0 %v6819_v47  ;;  %v6863_v25 = vld [vmem:[#allocation12 + $0x370] sm:$0xff]   ;;  %v6858_v26 = vld [vmem:[#allocation12 + $0x1a0] sm:$0xff]   ;;  %v6860_v27 = vld [vmem:[#allocation12 + $0x1e8] sm:$0xff]  }
 0x6f6   :  { %v6865_v29 = vld [vmem:[#allocation12 + $0x330] sm:$0xff]   ;;  %v6867_v30 = vld [vmem:[#allocation12 + $0x378] sm:$0xff]   ;;  %v6862_v31 = vld [vmem:[#allocation12 + $0x1a8] sm:$0xff]  }
 0x6f7   :  { %6019 = vmatpush3.bf16.msra.mxu1 %v6814_v3  ;;  %v6864_v35 = vld [vmem:[#allocation12 + $0x1f0] sm:$0xff]   ;;  %v6869_v37 = vld [vmem:[#allocation12 + $0x338] sm:$0xff]   ;;  %v6871_v47 = vld [vmem:[#allocation12 + $0x2c0] sm:$0xff]  }
 0x6f8   :  { %6020 = vmatprep.subr.bf16.mxu1 %v6816_v36  ;;  %6089 = vmatpush3.bf16.msra.mxu0 %v6821_v4  ;;  %v6866_v53 = vld [vmem:[#allocation12 + $0x1b0] sm:$0xff]   ;;  %v6868_v54 = vld [vmem:[#allocation12 + $0x1f8] sm:$0xff]   ;;  %v3982_v3 = vld [vmem:[#allocation6 + $0x28] sm:$0xff]  ;;  %v5850_v4 = vcombine.low %v7597_v48, %v7599_v14 }
 0x6f9   :  { %6090 = vmatprep.subr.bf16.mxu0 %v6823_v5  ;;  %v6870_v60 = vld [vmem:[#allocation12 + $0x1b8] sm:$0xff]   ;;  %v6872_v36 = vld [vmem:[#allocation12 + $0x280] sm:$0xff]   ;;  %v3990_v5 = vld [vmem:[#allocation6 + $0x68] sm:$0x33] }
 0x6fa   :  { %v3984_v56 = vld [vmem:[#allocation6 + $0x38] sm:$0xff]  ;;  %v6890_v51 = vld [vmem:[#allocation12 + $0x388] sm:$0xff]   ;;  %v6896_v48 = vld [vmem:[#allocation12 + $0x3a0] sm:$0xff]  }
 0x6fb   :  { %6021 = vmatpush3.bf16.msra.mxu1 %v6818_v7  ;;  %v6873_v7 = vld [vmem:[#allocation12 + $0x2c8] sm:$0xff]  }
 0x6fc   :  { %6022 = vmatprep.subr.bf16.mxu1 %v6820_v6  ;;  %6091 = vmatpush3.bf16.msra.mxu0 %v6825_v55  ;;  %v5855_v6 = vcombine.high %v3982_v3, %v3990_v5  ;;  %v6874_v55 = vld [vmem:[#allocation12 + $0x288] sm:$0xff]  }
 0x6fd   :  { %6092 = vmatprep.subr.bf16.mxu0 %v6827_v8  ;;  %v6875_v8 = vld [vmem:[#allocation12 + $0x2d0] sm:$0xff]   ;;  %v6897_v14 = vld [vmem:[#allocation12 + $0x3e8] sm:$0xff]  }
 0x6ff   :  { %6023 = vmatpush3.bf16.msra.mxu1 %v6822_v33  ;;  %v6876_v33 = vld [vmem:[#allocation12 + $0x290] sm:$0xff]  }
 0x700   :  { %6024 = vmatprep.subr.bf16.mxu1 %v6824_v19  ;;  %6093 = vmatpush3.bf16.msra.mxu0 %v6829_v61  ;;  %v6877_v19 = vld [vmem:[#allocation12 + $0x2d8] sm:$0xff]  }
 0x701   :  { %6094 = vmatprep.subr.bf16.mxu0 %v6831_v9  ;;  %v6878_v61 = vld [vmem:[#allocation12 + $0x298] sm:$0xff]   ;;  %v6879_v9 = vld [vmem:[#allocation12 + $0x2e0] sm:$0xff]  }
 0x703   :  { %6025 = vmatpush3.bf16.msra.mxu1 %v6826_v40  ;;  %v6880_v40 = vld [vmem:[#allocation12 + $0x2a0] sm:$0xff]  }
 0x704   :  { %6026 = vmatprep.subr.bf16.mxu1 %v6828_v10  ;;  %6095 = vmatpush3.bf16.msra.mxu0 %v6833_v62  ;;  %v6881_v10 = vld [vmem:[#allocation12 + $0x2e8] sm:$0xff]  }
 0x705   :  { %6096 = vmatprep.subr.bf16.mxu0 %v6835_v63  ;;  %v6882_v62 = vld [vmem:[#allocation12 + $0x2a8] sm:$0xff]   ;;  %v6883_v63 = vld [vmem:[#allocation12 + $0x2f0] sm:$0xff]  }
 0x707   :  { %6027 = vmatpush3.bf16.msra.mxu1 %v6830_v11  ;;  %v6884_v11 = vld [vmem:[#allocation12 + $0x2b0] sm:$0xff]  }
 0x708   :  { %6028 = vmatprep.subr.bf16.mxu1 %v6832_v43  ;;  %6097 = vmatpush3.bf16.msra.mxu0 %v6837_v34  ;;  %v6885_v43 = vld [vmem:[#allocation12 + $0x2f8] sm:$0xff]  }
 0x709   :  { %6126 = vmatprep.subr.bf16.mxu0 %v6839_v0  ;;  %v6886_v34 = vld [vmem:[#allocation12 + $0x2b8] sm:$0xff]   ;;  %v6887_v0 = vld [vmem:[#allocation12 + $0x3c0] sm:$0xff]  }
 0x70b   :  { %6029 = vmatpush3.bf16.msra.mxu1 %v6834_v41  ;;  %5301 = vmatmul.mubr.bf16.vlgmr.msra.gmra.mrb[16].mxu0 %v5852_v45  ;;  %v3992_v41 = vld [vmem:[#allocation6 + $0x78] sm:$0x33]  ;;  %v6889_v45 = vld [vmem:[#allocation12 + $0x3c8] sm:$0xff]  }
 0x70c   :  { %6030 = vmatprep.subr.bf16.mxu1 %v6836_v2  ;;  %6127 = vmatpush3.bf16.msra.mxu0 %v6841_v52  ;;  %v6888_v2 = vld [vmem:[#allocation12 + $0x380] sm:$0xff]   ;;  %v5854_v52 = vcombine.low %v3982_v3, %v3990_v5 }
 0x70d   :  { %5382 = vmatprep.mubr.bf16.mxu0 %v5857_v32  ;;  %6128 = vmatprep.subr.bf16.mxu0 %v6843_v12  ;;  %v5859_v12 = vcombine.high %v3984_v56, %v3992_v41  ;;  %v6892_v32 = vld [vmem:[#allocation12 + $0x390] sm:$0xff]  }
 0x70f   :  { %6031 = vmatpush3.bf16.msra.mxu1 %v6838_v18  ;;  %v6891_v18 = vld [vmem:[#allocation12 + $0x3d0] sm:$0xff]  }
 0x710   :  { %6060 = vmatprep.subr.bf16.mxu1 %v6840_v49  ;;  %6129 = vmatpush3.bf16.msra.mxu0 %v6845_v42  ;;  %v6893_v49 = vld [vmem:[#allocation12 + $0x3d8] sm:$0xff]  }
 0x711   :  { %6130 = vmatprep.subr.bf16.mxu0 %v6847_v58  ;;  %v6894_v42 = vld [vmem:[#allocation12 + $0x398] sm:$0xff]   ;;  %v6895_v58 = vld [vmem:[#allocation12 + $0x3e0] sm:$0xff]  }
 0x712   :  { %5178 = vmatmul.mubr.bf16.vlgmr.msra.gmra.mrb[12].mxu1 %v5846_v44  ;;  %v6899_v44 = vld [vmem:[#allocation12 + $0x3f0] sm:$0xff]  }
 0x713   :  { %6061 = vmatpush3.bf16.msra.mxu1 %v6842_v38  ;;  %5259 = vmatprep.mubr.bf16.mxu1 %v5851_v15  ;;  %v6898_v38 = vld [vmem:[#allocation12 + $0x3a8] sm:$0xff]   ;;  %v6902_v15 = vld [vmem:[#allocation12 + $0x3b8] sm:$0xff]  }
 0x714   :  { %6062 = vmatprep.subr.bf16.mxu1 %v6844_v1  ;;  %6131 = vmatpush3.bf16.msra.mxu0 %v6849_v16  ;;  %v6900_v1 = vld [vmem:[#allocation12 + $0x3b0] sm:$0xff]   ;;  %v6901_v16 = vld [vmem:[#allocation12 + $0x3f8] sm:$0xff]  }
 0x715   :  { %6132 = vmatprep.subr.bf16.mxu0 %v6851_v13  ;;  %v5858_v13 = vcombine.low %v3984_v56, %v3992_v41 }
 0x717   :  { %6063 = vmatpush3.bf16.msra.mxu1 %v6846_v28 }
 0x718   :  { %6064 = vmatprep.subr.bf16.mxu1 %v6848_v17  ;;  %6133 = vmatpush3.bf16.msra.mxu0 %v6853_v57 }
 0x719   :  { %6134 = vmatprep.subr.bf16.mxu0 %v6855_v59 }
 0x71b   :  { %6065 = vmatpush3.bf16.msra.mxu1 %v6850_v50 }
 0x71c   :  { %6066 = vmatprep.subr.bf16.mxu1 %v6852_v20  ;;  %6135 = vmatpush3.bf16.msra.mxu0 %v6857_v21 }
 0x71d   :  { %6136 = vmatprep.subr.bf16.mxu0 %v6859_v22 }
 0x71f   :  { %6067 = vmatpush3.bf16.msra.mxu1 %v6854_v39 }
 0x720   :  { %6068 = vmatprep.subr.bf16.mxu1 %v6856_v23  ;;  %6137 = vmatpush3.bf16.msra.mxu0 %v6861_v24 }
 0x721   :  { %6138 = vmatprep.subr.bf16.mxu0 %v6863_v25 }
 0x723   :  { %6069 = vmatpush3.bf16.msra.mxu1 %v6858_v26 }
 0x724   :  { %6070 = vmatprep.subr.bf16.mxu1 %v6860_v27  ;;  %6139 = vmatpush3.bf16.msra.mxu0 %v6865_v29 }
 0x725   :  { %6140 = vmatprep.subr.bf16.mxu0 %v6867_v30 }
 0x727   :  { %6071 = vmatpush3.bf16.msra.mxu1 %v6862_v31 }
 0x728   :  { %6072 = vmatprep.subr.bf16.mxu1 %v6864_v35  ;;  %6141 = vmatpush3.bf16.msra.mxu0 %v6869_v37  ;;  %v5843_v37 = vld [vmem:[%s7631_s13] ss:$0 sm:$0xff] }
 0x72b   :  { %6073 = vmatpush3.bf16.msra.mxu1 %v6866_v53  ;;  %5383 = vmatmul.mubr.bf16.vlgmr.msra.gmra.mrb[20].mxu0 %v5856_v46 }
 0x72c   :  { %6074 = vmatprep.subr.bf16.mxu1 %v6868_v54 }
 0x72f   :  { %6075 = vmatpush3.bf16.msra.mxu1 %v6870_v60 }
 0x730   :  { %6104 = vmatprep.subr.bf16.mxu1 %v6871_v47 }
 0x732   :  { %5260 = vmatmul.mubr.bf16.vlgmr.msra.gmra.mrb[16].mxu1 %v5850_v4 }
 0x733   :  { %6105 = vmatpush3.bf16.msra.mxu1 %v6872_v36  ;;  %5341 = vmatprep.mubr.bf16.mxu1 %v5855_v6 }
 0x734   :  { %6106 = vmatprep.subr.bf16.mxu1 %v6873_v7 }
 0x737   :  { %6107 = vmatpush3.bf16.msra.mxu1 %v6874_v55 }
 0x738   :  { %6108 = vmatprep.subr.bf16.mxu1 %v6875_v8 }
 0x73b   :  { %6109 = vmatpush3.bf16.msra.mxu1 %v6876_v33 }
 0x73c   :  { %6110 = vmatprep.subr.bf16.mxu1 %v6877_v19 }
 0x73f   :  { %6111 = vmatpush3.bf16.msra.mxu1 %v6878_v61 }
 0x740   :  { %6112 = vmatprep.subr.bf16.mxu1 %v6879_v9 }
 0x743   :  { %6113 = vmatpush3.bf16.msra.mxu1 %v6880_v40 }
 0x744   :  { %6114 = vmatprep.subr.bf16.mxu1 %v6881_v10 }
 0x747   :  { %6115 = vmatpush3.bf16.msra.mxu1 %v6882_v62 }
 0x748   :  { %6116 = vmatprep.subr.bf16.mxu1 %v6883_v63 }
 0x74b   :  { %6117 = vmatpush3.bf16.msra.mxu1 %v6884_v11 }
 0x74c   :  { %6118 = vmatprep.subr.bf16.mxu1 %v6885_v43 }
 0x74f   :  { %6119 = vmatpush3.bf16.msra.mxu1 %v6886_v34 }
 0x750   :  { %6148 = vmatprep.subr.bf16.mxu1 %v6887_v0 }
 0x752   :  { %5342 = vmatmul.mubr.bf16.vlgmr.msra.gmra.mrb[20].mxu1 %v5854_v52 }
 0x753   :  { %6149 = vmatpush3.bf16.msra.mxu1 %v6888_v2  ;;  %5423 = vmatprep.mubr.bf16.mxu1 %v5859_v12 }
 0x754   :  { %6150 = vmatprep.subr.bf16.mxu1 %v6889_v45 }
 0x757   :  { %6151 = vmatpush3.bf16.msra.mxu1 %v6890_v51 }
 0x758   :  { %6152 = vmatprep.subr.bf16.mxu1 %v6891_v18 }
 0x75b   :  { %6153 = vmatpush3.bf16.msra.mxu1 %v6892_v32 }
 0x75c   :  { %6154 = vmatprep.subr.bf16.mxu1 %v6893_v49 }
 0x75f   :  { %6155 = vmatpush3.bf16.msra.mxu1 %v6894_v42 }
 0x760   :  { %6156 = vmatprep.subr.bf16.mxu1 %v6895_v58 }
 0x763   :  { %6157 = vmatpush3.bf16.msra.mxu1 %v6896_v48 }
 0x764   :  { %6158 = vmatprep.subr.bf16.mxu1 %v6897_v14 }
 0x767   :  { %6159 = vmatpush3.bf16.msra.mxu1 %v6898_v38 }
 0x768   :  { %6160 = vmatprep.subr.bf16.mxu1 %v6899_v44 }
 0x76b   :  { %6161 = vmatpush3.bf16.msra.mxu1 %v6900_v1 }
 0x76c   :  { %6162 = vmatprep.subr.bf16.mxu1 %v6901_v16 }
 0x76f   :  { %6163 = vmatpush3.bf16.msra.mxu1 %v6902_v15 }
 0x772   :  { %5424 = vmatmul.mubr.bf16.vlgmr.msra.gmra.mrb[24].mxu1 %v5858_v13 }
 0x7bd   :  { %v6054_v28 = vpop.f32.mrb[12].mxu0 }
 0x7be   :  { %v6055_v17 = vpop.f32.mrb[13].mxu0 }
 0x7bf   :  { %v6056_v57 = vadd.f32 %v6055_v17, %v6054_v28  ;;  %v6057_v59 = vpop.f32.mrb[14].mxu0 }
 0x7c0   :  { %v6058_v50 = vpop.f32.mrb[15].mxu0 }
 0x7c1   :  { %v6059_v20 = vadd.f32 %v6058_v50, %v6057_v59 }
 0x7c5   :  { %v6010_v21 = vpop.f32.mrb[8].mxu1 }
 0x7c6   :  { %v6011_v22 = vpop.f32.mrb[9].mxu1 }
 0x7c7   :  { %v6012_v39 = vadd.f32 %v6011_v22, %v6010_v21  ;;  %v6013_v23 = vpop.f32.mrb[10].mxu1 }
 0x7c8   :  { %v6014_v24 = vpop.f32.mrb[11].mxu1 }
 0x7c9   :  { %v6015_v25 = vadd.f32 %v6014_v24, %v6013_v23  ;;  %v5139_v46 = vadd.f32 %v6012_v39, %v5843_v37 }
 0x7cb   :  { %v5142_v36 = vadd.f32 %v6015_v25, %v5843_v37 }
 0x7de   :  { %v6098_v26 = vpop.f32.mrb[16].mxu0 }
 0x7df   :  { %v6099_v27 = vpop.f32.mrb[17].mxu0 }
 0x7e0   :  { %v6100_v29 = vadd.f32 %v6099_v27, %v6098_v26  ;;  %v6101_v30 = vpop.f32.mrb[18].mxu0 }
 0x7e1   :  { %v6102_v31 = vpop.f32.mrb[19].mxu0 }
 0x7e2   :  { %v6103_v35 = vadd.f32 %v6102_v31, %v6101_v30 }
 0x7e5   :  { %v6032_v53 = vpop.f32.mrb[12].mxu1 }
 0x7e6   :  { %v6033_v54 = vpop.f32.mrb[13].mxu1 }
 0x7e7   :  { %v6034_v60 = vadd.f32 %v6033_v54, %v6032_v53  ;;  %v6035_v47 = vpop.f32.mrb[14].mxu1 }
 0x7e8   :  { %v6036_v3 = vpop.f32.mrb[15].mxu1 }
 0x7e9   :  { %v5180_v4 = vadd.f32 %v6034_v60, %v5139_v46  ;;  %v6037_v5 = vadd.f32 %v6036_v3, %v6035_v47 }
 0x7eb   :  { %v5183_v7 = vadd.f32 %v6037_v5, %v5142_v36  ;;  %v5221_v6 = vadd.f32 %v6056_v57, %v5180_v4 }
 0x7ed   :  { %v5224_v55 = vadd.f32 %v6059_v20, %v5183_v7 }
 0x7fe   :  { %v6142_v8 = vpop.f32.mrb[20].mxu0 }
 0x7ff   :  { %v6143_v33 = vpop.f32.mrb[21].mxu0 }
 0x800   :  { %v6144_v19 = vadd.f32 %v6143_v33, %v6142_v8  ;;  %v6145_v61 = vpop.f32.mrb[22].mxu0 }
 0x801   :  { %v6146_v9 = vpop.f32.mrb[23].mxu0 }
 0x802   :  { %v6147_v40 = vadd.f32 %v6146_v9, %v6145_v61 }
 0x805   :  { %v6076_v10 = vpop.f32.mrb[16].mxu1 }
 0x806   :  { %v6077_v62 = vpop.f32.mrb[17].mxu1 }
 0x807   :  { %v6078_v63 = vadd.f32 %v6077_v62, %v6076_v10  ;;  %v6079_v11 = vpop.f32.mrb[18].mxu1 }
 0x808   :  { %v6080_v43 = vpop.f32.mrb[19].mxu1 }
 0x809   :  { %v5262_v34 = vadd.f32 %v6078_v63, %v5221_v6  ;;  %v6081_v0 = vadd.f32 %v6080_v43, %v6079_v11 }
 0x80b   :  { %v5265_v41 = vadd.f32 %v6081_v0, %v5224_v55  ;;  %v5303_v2 = vadd.f32 %v6100_v29, %v5262_v34 }
 0x80d   :  { %v5306_v52 = vadd.f32 %v6103_v35, %v5265_v41 }
 0x825   :  { %v6120_v56 = vpop.f32.mrb[20].mxu1 }
 0x826   :  { %v6121_v45 = vpop.f32.mrb[21].mxu1 }
 0x827   :  { %v6122_v12 = vadd.f32 %v6121_v45, %v6120_v56  ;;  %v6123_v51 = vpop.f32.mrb[22].mxu1 }
 0x828   :  { %v6124_v18 = vpop.f32.mrb[23].mxu1 }
 0x829   :  { %v5344_v32 = vadd.f32 %v6122_v12, %v5303_v2  ;;  %v6125_v49 = vadd.f32 %v6124_v18, %v6123_v51 }
 0x82b   :  { %v5347_v42 = vadd.f32 %v6125_v49, %v5306_v52  ;;  %v5385_v58 = vadd.f32 %v6144_v19, %v5344_v32 }
 0x82d   :  { %v5388_v48 = vadd.f32 %v6147_v40, %v5347_v42 }
 0x845   :  { %v6164_v14 = vpop.f32.mrb[24].mxu1 }
 0x846   :  { %v6165_v38 = vpop.f32.mrb[25].mxu1 }
 0x847   :  { %v6166_v44 = vadd.f32 %v6165_v38, %v6164_v14  ;;  %v6167_v1 = vpop.f32.mrb[26].mxu1 }
 0x848   :  { %v6168_v16 = vpop.f32.mrb[27].mxu1 }
 0x849   :  { %v5426_v15 = vadd.f32 %v6166_v44, %v5385_v58  ;;  %v6169_v13 = vadd.f32 %v6168_v16, %v6167_v1 }
 0x84b   :  { %5432 = vst [vmem:[%s7632_s14] sm:$0xff] %v5426_v15  ;;  %v5429_v28 = vadd.f32 %v6169_v13, %v5388_v48 }
 0x84d   :  { %5433 = vst [vmem:[%s7632_s14 + $0x8] sm:$0xf] %v5429_v28 }
 0x84e   :  { %5438 = vsyncpa [#allocation8], 1 }
 0x84f   :  { %5439 = vsyncpa [#allocation10], 1 }
 0x850   :  { %5440 = vsyncpa [#allocation13], 1 }

</bundles_post_ra>
